<compile_context>
chip_gen: v5e
topology: v5e:2x2
jax: 0.10.0
libtpu: 0.0.40
codegen_flags: <defaults>
</compile_context>

<pallas_src>
import jax
import jax.numpy as jnp
from jax import lax
from jax.experimental import pallas as pl
from jax.experimental.pallas import tpu as pltpu

LANE = 128


# ----------------------------------------------------------------------------
# Fused Pallas kernel (built as a closure over the padded static sizes)
# ----------------------------------------------------------------------------

def _make_kernel(nd_p, np_p, nh_p, dim_p, hid_p):
    def kernel(feats_ref, w_proj_ref, b_proj_ref, w_fc_ref, b_fc_ref,
               aw1_ref, attn_b_ref, a_drug_ref, a_dis_ref,
               inv_drug_ref, inv_dis_ref, ddmask_ref,
               predict_ref, loss_ref):

        def dot_t(x, w):
            # x [N, in] contracted with W [out, in] along the shared last dim
            # (torch Linear layout, no transpose materialized).
            return lax.dot_general(x, w, (((1,), (1,)), ((), ())),
                                   preferred_element_type=jnp.float32)

        # ---- projections (weights/biases read from packed slabs) ----
        drug_e = (dot_t(feats_ref[0:nd_p, :], w_proj_ref[0:dim_p, :])
                  + b_proj_ref[:, 0:dim_p])
        prot_e = (dot_t(feats_ref[nd_p:nd_p + np_p, :],
                        w_proj_ref[dim_p:2 * dim_p, :])
                  + b_proj_ref[:, dim_p:2 * dim_p])
        dis_e = (dot_t(feats_ref[nd_p + np_p:nd_p + np_p + nh_p, :],
                       w_proj_ref[2 * dim_p:3 * dim_p, :])
                 + b_proj_ref[:, 2 * dim_p:3 * dim_p])

        # ---- fc layers; matmuls sharing an LHS are merged into wider dots ----
        # drug_e -> [fc_drug_drug | fc_drug_disease]
        h_d = jnp.maximum(dot_t(drug_e, w_fc_ref[0:2 * dim_p, :])
                          + b_fc_ref[:, 0:2 * dim_p], 0.0)
        h_dd = h_d[:, 0:dim_p]
        h_dh = h_d[:, dim_p:2 * dim_p]
        # prot_e -> [fc_protein_drug | fc_protein_disease]
        h_p = jnp.maximum(dot_t(prot_e, w_fc_ref[2 * dim_p:4 * dim_p, :])
                          + b_fc_ref[:, 2 * dim_p:4 * dim_p], 0.0)
        h_pd = h_p[:, 0:dim_p]
        h_ph = h_p[:, dim_p:2 * dim_p]
        # dis_e -> fc_disease_drug
        h_hd = jnp.maximum(dot_t(dis_e, w_fc_ref[4 * dim_p:5 * dim_p, :])
                           + b_fc_ref[:, 4 * dim_p:5 * dim_p], 0.0)

        # ---- aggregations: row_normalize(A) @ h == (A @ h) * inv_rowsum ----
        # inv_rowsum is precomputed in the wrapper; in-kernel it is only an
        # N x dim VPU multiply applied to the aggregation output.
        inv_d = inv_drug_ref[...]
        inv_h = inv_dis_ref[...]

        def agg(a, h, inv_col, base):
            return jnp.dot(a, h, preferred_element_type=jnp.float32) * inv_col + base

        dv = [
            agg(a_drug_ref[:, 0:nd_p], h_dd, inv_d[:, 0:1], drug_e),
            agg(a_drug_ref[:, nd_p:nd_p + nh_p], h_hd, inv_d[:, 1:2], drug_e),
            agg(a_drug_ref[:, nd_p + nh_p:nd_p + nh_p + np_p], h_pd,
                inv_d[:, 2:3], drug_e),
        ]
        hv = [
            agg(a_dis_ref[:, 0:nd_p], h_dh, inv_h[:, 0:1], dis_e),
            agg(a_dis_ref[:, nd_p:nd_p + np_p], h_ph, inv_h[:, 1:2], dis_e),
        ]

        # ---- attention: ONE batched MXU matmul over all 5 views of both
        #      branches; the [hid] -> [1] contraction is a VPU mul + lane sum.
        z = jnp.concatenate(dv + hv, axis=0)            # [3*nd_p + 2*nh_p, dim_p]
        hz = jnp.maximum(dot_t(z, aw1_ref[...]) + attn_b_ref[:, 0:hid_p], 0.0)
        s = jnp.sum(hz * attn_b_ref[:, hid_p:2 * hid_p], axis=-1, keepdims=True)

        def combine(views, scores):
            m = scores[0]
            for sc in scores[1:]:
                m = jnp.maximum(m, sc)
            exps = [jnp.exp(sc - m) for sc in scores]
            denom = exps[0]
            for e in exps[1:]:
                denom = denom + e
            inv = pl.reciprocal(denom, approx=True)      # EUP slot, free-ish
            out = (exps[0] * inv) * views[0]
            for i in range(1, len(views)):
                out = out + (exps[i] * inv) * views[i]
            return out

        s_d = [s[i * nd_p:(i + 1) * nd_p] for i in range(3)]
        off = 3 * nd_p
        s_h = [s[off + j * nh_p: off + (j + 1) * nh_p] for j in range(2)]
        drug_out = combine(dv, s_d)
        dis_out = combine(hv, s_h)

        # ---- predict (NT dot) + masked squared-error loss ----
        logits = lax.dot_general(drug_out, dis_out, (((1,), (1,)), ((), ())),
                                 preferred_element_type=jnp.float32)
        p = jax.nn.sigmoid(logits)
        predict_ref[...] = p                             # lane-dense unmasked store
        dd = ddmask_ref[:, 0:nh_p]
        msk = ddmask_ref[:, nh_p:2 * nh_p]
        t = msk * (p - dd)
        loss_ref[0] = jnp.sum(t * t)

    return kernel


# ----------------------------------------------------------------------------
# Wrapper: pack/pad everything lane-dense, launch the single fused kernel
# ----------------------------------------------------------------------------

def _rup(n, m):
    return ((n + m - 1) // m) * m


def _pad2(x, rows, cols):
    return jnp.pad(x, ((0, rows - x.shape[0]), (0, cols - x.shape[1])))


def _vmem():
    return pl.BlockSpec(memory_space=pltpu.MemorySpace.VMEM)


def mgnn_forward(params, drug_feat, protein_feat, disease_feat,
                 drug_agg, protein_agg, disease_agg, drug_disease, mask):
    del protein_agg  # dead for the returned (predict, loss); see header note.
    p = params

    nd, d = drug_feat.shape
    np_, p_dim = protein_feat.shape
    nh, h_dim = disease_feat.shape
    dim = p["project_drug"][0].shape[0]
    hid = p["attention"][0].shape[0]

    nd_p, np_p, nh_p = _rup(nd, LANE), _rup(np_, LANE), _rup(nh, LANE)
    dim_p = _rup(dim, LANE)
    hid_p = _rup(hid, LANE)
    feat_p = _rup(max(d, p_dim, h_dim), LANE)

    def bpad(b, width):
        return _pad2(b.reshape(1, -1), 1, width)

    # features slab: [nd_p + np_p + nh_p, feat_p]
    feats = jnp.concatenate([_pad2(drug_feat, nd_p, feat_p),
                             _pad2(protein_feat, np_p, feat_p),
                             _pad2(disease_feat, nh_p, feat_p)], axis=0)

    # projection slabs: W [3*dim_p, feat_p], b [1, 3*dim_p]
    w_proj = jnp.concatenate([_pad2(p["project_drug"][0], dim_p, feat_p),
                              _pad2(p["project_protein"][0], dim_p, feat_p),
                              _pad2(p["project_disease"][0], dim_p, feat_p)], axis=0)
    b_proj = jnp.concatenate([bpad(p["project_drug"][1], dim_p),
                              bpad(p["project_protein"][1], dim_p),
                              bpad(p["project_disease"][1], dim_p)], axis=1)

    # fc slabs (order chosen so shared-LHS matmuls are contiguous):
    #   [dd | dh | pd | ph | hd]
    fc_order = ("fc_drug_drug", "fc_drug_disease",
                "fc_protein_drug", "fc_protein_disease",
                "fc_disease_drug")
    w_fc = jnp.concatenate([_pad2(p[n][0], dim_p, dim_p) for n in fc_order], axis=0)
    b_fc = jnp.concatenate([bpad(p[n][1], dim_p) for n in fc_order], axis=1)

    # attention slabs
    aw1, ab1, aw2 = p["attention"]
    aw1_p = _pad2(aw1, hid_p, dim_p)
    attn_b = jnp.concatenate([bpad(ab1, hid_p), bpad(aw2.reshape(-1), hid_p)], axis=1)

    # adjacency slabs + hoisted row-normalization (inv rowsum, zero rows -> 0)
    def inv_rowsum(a):
        s = jnp.sum(a, axis=1, keepdims=True)
        return jnp.where(s != 0.0, 1.0 / s, 0.0)   # keep the where; do not simplify

    a_drug = jnp.concatenate([_pad2(drug_agg[0], nd_p, nd_p),
                              _pad2(drug_agg[1], nd_p, nh_p),
                              _pad2(drug_agg[2], nd_p, np_p)], axis=1)
    a_dis = jnp.concatenate([_pad2(disease_agg[0], nh_p, nd_p),
                             _pad2(disease_agg[1], nh_p, np_p)], axis=1)
    inv_drug = _pad2(jnp.concatenate([inv_rowsum(drug_agg[0]),
                                      inv_rowsum(drug_agg[1]),
                                      inv_rowsum(drug_agg[2])], axis=1), nd_p, LANE)
    inv_dis = _pad2(jnp.concatenate([inv_rowsum(disease_agg[0]),
                                     inv_rowsum(disease_agg[1])], axis=1), nh_p, LANE)

    # supervision slab [dd | mask]; zero-padded mask keeps the loss exact
    ddmask = jnp.concatenate([_pad2(drug_disease, nd_p, nh_p),
                              _pad2(mask, nd_p, nh_p)], axis=1)

    args = (feats, w_proj, b_proj, w_fc, b_fc, aw1_p, attn_b,
            a_drug, a_dis, inv_drug, inv_dis, ddmask)

    kernel = _make_kernel(nd_p, np_p, nh_p, dim_p, hid_p)
    predict_pad, loss = pl.pallas_call(
        kernel,
        out_shape=(jax.ShapeDtypeStruct((nd_p, nh_p), jnp.float32),
                   jax.ShapeDtypeStruct((1,), jnp.float32)),
        in_specs=[_vmem() for _ in args],
        out_specs=(_vmem(),
                   pl.BlockSpec(memory_space=pltpu.MemorySpace.SMEM)),
        compiler_params=pltpu.CompilerParams(
            vmem_limit_bytes=32 * 1024 * 1024),
    )(*args)

    return predict_pad[:nd, :nh], loss[0]


# ----------------------------------------------------------------------------
# Pure-JAX reference for verification
# ----------------------------------------------------------------------------

def _ref_forward(params, drug_feat, protein_feat, disease_feat,
                 drug_agg, protein_agg, disease_agg, drug_disease, mask):
    def lin(x, wb):
        w, b = wb
        return x @ w.T + b

    def rn(a):
        s = a.sum(1, keepdims=True)
        return a * jnp.where(s != 0, 1.0 / s, 0.0)

    def attn(z, w1, b1, w2):
        h = jnp.maximum(jnp.einsum('knd,hd->knh', z, w1) + b1, 0.0)
        s = jnp.einsum('knh,oh->kno', h, w2)            # [K, N, 1]
        alpha = jax.nn.softmax(s, axis=0)
        return jnp.sum(alpha * z, axis=0)

    p = params
    de = lin(drug_feat, p["project_drug"])
    pe = lin(protein_feat, p["project_protein"])
    he = lin(disease_feat, p["project_disease"])

    dv = jnp.stack([
        rn(drug_agg[0]) @ jnp.maximum(lin(de, p["fc_drug_drug"]), 0) + de,
        rn(drug_agg[1]) @ jnp.maximum(lin(he, p["fc_disease_drug"]), 0) + de,
        rn(drug_agg[2]) @ jnp.maximum(lin(pe, p["fc_protein_drug"]), 0) + de,
    ], 0)
    hv = jnp.stack([
        rn(disease_agg[0]) @ jnp.maximum(lin(de, p["fc_drug_disease"]), 0) + he,
        rn(disease_agg[1]) @ jnp.maximum(lin(pe, p["fc_protein_disease"]), 0) + he,
    ], 0)

    w1, b1, w2 = p["attention"]
    de2 = attn(dv, w1, b1, w2)
    he2 = attn(hv, w1, b1, w2)
    pred = jax.nn.sigmoid(de2 @ he2.T)
    tmp = mask * (pred - drug_disease)
    return pred, jnp.sum(tmp ** 2)


# ----------------------------------------------------------------------------
# Main
# ----------------------------------------------------------------------------

if __name__ == "__main__":
    key = jax.random.PRNGKey(0)

    # small shapes consistent with the module's forward
    Nd, Np, Nh = 16, 24, 20          # drugs, proteins, diseases
    d, p_dim, h_dim = 12, 10, 8      # raw feature dims
    dim = 32                         # embedding dim
    hid = 128                        # attention hidden size (module default)

    def init_linear(k, out_f, in_f, scale=0.1):
        kw, kb = jax.random.split(k)
        w = scale * jax.random.normal(kw, (out_f, in_f), jnp.float32)
        b = scale * jax.random.normal(kb, (out_f,), jnp.float32)
        return w, b

    keys = jax.random.split(key, 32)
    ki = iter(keys)

    params = {
        "project_drug": init_linear(next(ki), dim, d),
        "project_protein": init_linear(next(ki), dim, p_dim),
        "project_disease": init_linear(next(ki), dim, h_dim),
        "fc_drug_drug": init_linear(next(ki), dim, dim),
        "fc_drug_disease": init_linear(next(ki), dim, dim),
        "fc_disease_drug": init_linear(next(ki), dim, dim),
        "fc_protein_protein": init_linear(next(ki), dim, dim),
        "fc_protein_disease": init_linear(next(ki), dim, dim),
        "fc_disease_protein": init_linear(next(ki), dim, dim),
        "fc_drug_protein": init_linear(next(ki), dim, dim),
        "fc_protein_drug": init_linear(next(ki), dim, dim),
        "fc_disease_disease": init_linear(next(ki), dim, dim),     # unused in forward
        "fc_protein_sideeffect": init_linear(next(ki), dim, dim),  # unused in forward
    }
    aw1, ab1 = init_linear(next(ki), hid, dim)
    aw2 = 0.1 * jax.random.normal(next(ki), (1, hid), jnp.float32)  # no bias
    params["attention"] = (aw1, ab1, aw2)

    drug_feat = jax.random.normal(next(ki), (Nd, d), jnp.float32)
    protein_feat = jax.random.normal(next(ki), (Np, p_dim), jnp.float32)
    disease_feat = jax.random.normal(next(ki), (Nh, h_dim), jnp.float32)

    def rand_adj(k, shape):
        # non-negative, sparse-ish adjacency; some rows may be all-zero
        a = jax.random.uniform(k, shape, jnp.float32)
        return jnp.where(a > 0.6, a, 0.0)

    drug_agg = [rand_adj(next(ki), (Nd, Nd)),
                rand_adj(next(ki), (Nd, Nh)),
                rand_adj(next(ki), (Nd, Np))]
    protein_agg = [rand_adj(next(ki), (Np, Np)),
                   rand_adj(next(ki), (Np, Nh)),
                   rand_adj(next(ki), (Np, Nd))]
    disease_agg = [rand_adj(next(ki), (Nh, Nd)),
                   rand_adj(next(ki), (Nh, Np))]

    drug_disease = (jax.random.uniform(next(ki), (Nd, Nh)) > 0.5).astype(jnp.float32)
    mask = (jax.random.uniform(next(ki), (Nd, Nh)) > 0.3).astype(jnp.float32)

    fwd = jax.jit(mgnn_forward)
    predict, loss = fwd(params, drug_feat, protein_feat, disease_feat,
                        drug_agg, protein_agg, disease_agg,
                        drug_disease, mask)
    jax.block_until_ready(predict)
    jax.block_until_ready(loss)

    # verify against pure-JAX reference (tolerance covers pl.reciprocal approx)
    ref_pred, ref_loss = _ref_forward(params, drug_feat, protein_feat,
                                      disease_feat, drug_agg, protein_agg,
                                      disease_agg, drug_disease, mask)
    assert predict.shape == (Nd, Nh)
    assert jnp.allclose(predict, ref_pred, rtol=5e-3, atol=5e-3)
    assert jnp.allclose(loss, ref_loss, rtol=5e-3, atol=5e-3)

    print("KERNEL_OK")
</pallas_src>

<mosaic_0001>
module attributes {stable_mosaic.version = 11 : i64} {
  func.func @kernel(%arg0: memref<384x128xf32, #tpu.memory_space<vmem>>, %arg1: memref<384x128xf32, #tpu.memory_space<vmem>>, %arg2: memref<1x384xf32, #tpu.memory_space<vmem>>, %arg3: memref<640x128xf32, #tpu.memory_space<vmem>>, %arg4: memref<1x640xf32, #tpu.memory_space<vmem>>, %arg5: memref<128x128xf32, #tpu.memory_space<vmem>>, %arg6: memref<1x256xf32, #tpu.memory_space<vmem>>, %arg7: memref<128x384xf32, #tpu.memory_space<vmem>>, %arg8: memref<128x256xf32, #tpu.memory_space<vmem>>, %arg9: memref<128x128xf32, #tpu.memory_space<vmem>>, %arg10: memref<128x128xf32, #tpu.memory_space<vmem>>, %arg11: memref<128x256xf32, #tpu.memory_space<vmem>>, %arg12: memref<128x128xf32, #tpu.memory_space<vmem>>, %arg13: memref<1xf32, #tpu.memory_space<smem>>) attributes {dimension_semantics = [], scalar_prefetch = 0 : i64, scratch_operands = 0 : i64, tpu.core_type = #tpu.core_type<tc>} {
    %c0 = arith.constant 0 : index
    %c0_0 = arith.constant 0 : index
    %0 = vector.load %arg0[%c0, %c0_0] : memref<384x128xf32, #tpu.memory_space<vmem>>, vector<128x128xf32>
    %c0_1 = arith.constant 0 : index
    %c0_2 = arith.constant 0 : index
    %1 = vector.load %arg1[%c0_1, %c0_2] : memref<384x128xf32, #tpu.memory_space<vmem>>, vector<128x128xf32>
    %cst = arith.constant dense<0.000000e+00> : vector<128x128xf32>
    %2 = tpu.matmul %0, %1, %cst {dimension_numbers = #tpu.dot_dimension_numbers<[1], [1], [0], [0], [0, 0, 1, 0], [], []>} : vector<128x128xf32>, vector<128x128xf32>, vector<128x128xf32> -> vector<128x128xf32>
    %c0_3 = arith.constant 0 : index
    %c0_4 = arith.constant 0 : index
    %3 = vector.load %arg2[%c0_3, %c0_4] : memref<1x384xf32, #tpu.memory_space<vmem>>, vector<1x128xf32>
    %4 = vector.broadcast %3 : vector<1x128xf32> to vector<128x128xf32>
    %5 = arith.addf %2, %4 : vector<128x128xf32>
    %c128 = arith.constant 128 : index
    %c0_5 = arith.constant 0 : index
    %6 = vector.load %arg0[%c128, %c0_5] : memref<384x128xf32, #tpu.memory_space<vmem>>, vector<128x128xf32>
    %c128_6 = arith.constant 128 : index
    %c0_7 = arith.constant 0 : index
    %7 = vector.load %arg1[%c128_6, %c0_7] : memref<384x128xf32, #tpu.memory_space<vmem>>, vector<128x128xf32>
    %cst_8 = arith.constant dense<0.000000e+00> : vector<128x128xf32>
    %8 = tpu.matmul %6, %7, %cst_8 {dimension_numbers = #tpu.dot_dimension_numbers<[1], [1], [0], [0], [0, 0, 1, 0], [], []>} : vector<128x128xf32>, vector<128x128xf32>, vector<128x128xf32> -> vector<128x128xf32>
    %c0_9 = arith.constant 0 : index
    %c128_10 = arith.constant 128 : index
    %9 = vector.load %arg2[%c0_9, %c128_10] : memref<1x384xf32, #tpu.memory_space<vmem>>, vector<1x128xf32>
    %10 = vector.broadcast %9 : vector<1x128xf32> to vector<128x128xf32>
    %11 = arith.addf %8, %10 : vector<128x128xf32>
    %c256 = arith.constant 256 : index
    %c0_11 = arith.constant 0 : index
    %12 = vector.load %arg0[%c256, %c0_11] : memref<384x128xf32, #tpu.memory_space<vmem>>, vector<128x128xf32>
    %c256_12 = arith.constant 256 : index
    %c0_13 = arith.constant 0 : index
    %13 = vector.load %arg1[%c256_12, %c0_13] : memref<384x128xf32, #tpu.memory_space<vmem>>, vector<128x128xf32>
    %cst_14 = arith.constant dense<0.000000e+00> : vector<128x128xf32>
    %14 = tpu.matmul %12, %13, %cst_14 {dimension_numbers = #tpu.dot_dimension_numbers<[1], [1], [0], [0], [0, 0, 1, 0], [], []>} : vector<128x128xf32>, vector<128x128xf32>, vector<128x128xf32> -> vector<128x128xf32>
    %c0_15 = arith.constant 0 : index
    %c256_16 = arith.constant 256 : index
    %15 = vector.load %arg2[%c0_15, %c256_16] : memref<1x384xf32, #tpu.memory_space<vmem>>, vector<1x128xf32>
    %16 = vector.broadcast %15 : vector<1x128xf32> to vector<128x128xf32>
    %17 = arith.addf %14, %16 : vector<128x128xf32>
    %c0_17 = arith.constant 0 : index
    %c0_18 = arith.constant 0 : index
    %18 = vector.load %arg3[%c0_17, %c0_18] : memref<640x128xf32, #tpu.memory_space<vmem>>, vector<256x128xf32>
    %cst_19 = arith.constant dense<0.000000e+00> : vector<128x256xf32>
    %19 = tpu.matmul %5, %18, %cst_19 {dimension_numbers = #tpu.dot_dimension_numbers<[1], [1], [0], [0], [0, 0, 1, 0], [], []>} : vector<128x128xf32>, vector<256x128xf32>, vector<128x256xf32> -> vector<128x256xf32>
    %c0_20 = arith.constant 0 : index
    %c0_21 = arith.constant 0 : index
    %20 = vector.load %arg4[%c0_20, %c0_21] : memref<1x640xf32, #tpu.memory_space<vmem>>, vector<1x256xf32>
    %21 = vector.broadcast %20 : vector<1x256xf32> to vector<128x256xf32>
    %22 = arith.addf %19, %21 : vector<128x256xf32>
    %cst_22 = arith.constant 0.000000e+00 : f32
    %23 = vector.broadcast %cst_22 : f32 to vector<128x256xf32>
    %24 = arith.maximumf %22, %23 : vector<128x256xf32>
    %25 = vector.extract_strided_slice %24 {offsets = [0, 0], sizes = [128, 128], strides = [1, 1]} : vector<128x256xf32> to vector<128x128xf32>
    %26 = vector.extract_strided_slice %24 {offsets = [0, 128], sizes = [128, 128], strides = [1, 1]} : vector<128x256xf32> to vector<128x128xf32>
    %c256_23 = arith.constant 256 : index
    %c0_24 = arith.constant 0 : index
    %27 = vector.load %arg3[%c256_23, %c0_24] : memref<640x128xf32, #tpu.memory_space<vmem>>, vector<256x128xf32>
    %cst_25 = arith.constant dense<0.000000e+00> : vector<128x256xf32>
    %28 = tpu.matmul %11, %27, %cst_25 {dimension_numbers = #tpu.dot_dimension_numbers<[1], [1], [0], [0], [0, 0, 1, 0], [], []>} : vector<128x128xf32>, vector<256x128xf32>, vector<128x256xf32> -> vector<128x256xf32>
    %c0_26 = arith.constant 0 : index
    %c256_27 = arith.constant 256 : index
    %29 = vector.load %arg4[%c0_26, %c256_27] : memref<1x640xf32, #tpu.memory_space<vmem>>, vector<1x256xf32>
    %30 = vector.broadcast %29 : vector<1x256xf32> to vector<128x256xf32>
    %31 = arith.addf %28, %30 : vector<128x256xf32>
    %cst_28 = arith.constant 0.000000e+00 : f32
    %32 = vector.broadcast %cst_28 : f32 to vector<128x256xf32>
    %33 = arith.maximumf %31, %32 : vector<128x256xf32>
    %34 = vector.extract_strided_slice %33 {offsets = [0, 0], sizes = [128, 128], strides = [1, 1]} : vector<128x256xf32> to vector<128x128xf32>
    %35 = vector.extract_strided_slice %33 {offsets = [0, 128], sizes = [128, 128], strides = [1, 1]} : vector<128x256xf32> to vector<128x128xf32>
    %c512 = arith.constant 512 : index
    %c0_29 = arith.constant 0 : index
    %36 = vector.load %arg3[%c512, %c0_29] : memref<640x128xf32, #tpu.memory_space<vmem>>, vector<128x128xf32>
    %cst_30 = arith.constant dense<0.000000e+00> : vector<128x128xf32>
    %37 = tpu.matmul %17, %36, %cst_30 {dimension_numbers = #tpu.dot_dimension_numbers<[1], [1], [0], [0], [0, 0, 1, 0], [], []>} : vector<128x128xf32>, vector<128x128xf32>, vector<128x128xf32> -> vector<128x128xf32>
    %c0_31 = arith.constant 0 : index
    %c512_32 = arith.constant 512 : index
    %38 = vector.load %arg4[%c0_31, %c512_32] : memref<1x640xf32, #tpu.memory_space<vmem>>, vector<1x128xf32>
    %39 = vector.broadcast %38 : vector<1x128xf32> to vector<128x128xf32>
    %40 = arith.addf %37, %39 : vector<128x128xf32>
    %cst_33 = arith.constant 0.000000e+00 : f32
    %41 = vector.broadcast %cst_33 : f32 to vector<128x128xf32>
    %42 = arith.maximumf %40, %41 : vector<128x128xf32>
    %c0_34 = arith.constant 0 : index
    %c0_35 = arith.constant 0 : index
    %43 = vector.load %arg9[%c0_34, %c0_35] : memref<128x128xf32, #tpu.memory_space<vmem>>, vector<128x128xf32>
    %c0_36 = arith.constant 0 : index
    %c0_37 = arith.constant 0 : index
    %44 = vector.load %arg10[%c0_36, %c0_37] : memref<128x128xf32, #tpu.memory_space<vmem>>, vector<128x128xf32>
    %c0_38 = arith.constant 0 : index
    %c0_39 = arith.constant 0 : index
    %45 = vector.load %arg7[%c0_38, %c0_39] : memref<128x384xf32, #tpu.memory_space<vmem>>, vector<128x128xf32>
    %46 = vector.extract_strided_slice %43 {offsets = [0, 0], sizes = [128, 1], strides = [1, 1]} : vector<128x128xf32> to vector<128x1xf32>
    %cst_40 = arith.constant dense<0.000000e+00> : vector<128x128xf32>
    %47 = tpu.matmul %45, %25, %cst_40 {dimension_numbers = #tpu.dot_dimension_numbers<[1], [0], [0], [1], [0, 0, 1, 1], [], []>} : vector<128x128xf32>, vector<128x128xf32>, vector<128x128xf32> -> vector<128x128xf32>
    %48 = vector.broadcast %46 : vector<128x1xf32> to vector<128x128xf32>
    %49 = arith.mulf %47, %48 : vector<128x128xf32>
    %50 = arith.addf %49, %5 : vector<128x128xf32>
    %c0_41 = arith.constant 0 : index
    %c128_42 = arith.constant 128 : index
    %51 = vector.load %arg7[%c0_41, %c128_42] : memref<128x384xf32, #tpu.memory_space<vmem>>, vector<128x128xf32>
    %52 = vector.extract_strided_slice %43 {offsets = [0, 1], sizes = [128, 1], strides = [1, 1]} : vector<128x128xf32> to vector<128x1xf32>
    %cst_43 = arith.constant dense<0.000000e+00> : vector<128x128xf32>
    %53 = tpu.matmul %51, %42, %cst_43 {dimension_numbers = #tpu.dot_dimension_numbers<[1], [0], [0], [1], [0, 0, 1, 1], [], []>} : vector<128x128xf32>, vector<128x128xf32>, vector<128x128xf32> -> vector<128x128xf32>
    %54 = vector.broadcast %52 : vector<128x1xf32> to vector<128x128xf32>
    %55 = arith.mulf %53, %54 : vector<128x128xf32>
    %56 = arith.addf %55, %5 : vector<128x128xf32>
    %c0_44 = arith.constant 0 : index
    %c256_45 = arith.constant 256 : index
    %57 = vector.load %arg7[%c0_44, %c256_45] : memref<128x384xf32, #tpu.memory_space<vmem>>, vector<128x128xf32>
    %58 = vector.extract_strided_slice %43 {offsets = [0, 2], sizes = [128, 1], strides = [1, 1]} : vector<128x128xf32> to vector<128x1xf32>
    %cst_46 = arith.constant dense<0.000000e+00> : vector<128x128xf32>
    %59 = tpu.matmul %57, %34, %cst_46 {dimension_numbers = #tpu.dot_dimension_numbers<[1], [0], [0], [1], [0, 0, 1, 1], [], []>} : vector<128x128xf32>, vector<128x128xf32>, vector<128x128xf32> -> vector<128x128xf32>
    %60 = vector.broadcast %58 : vector<128x1xf32> to vector<128x128xf32>
    %61 = arith.mulf %59, %60 : vector<128x128xf32>
    %62 = arith.addf %61, %5 : vector<128x128xf32>
    %c0_47 = arith.constant 0 : index
    %c0_48 = arith.constant 0 : index
    %63 = vector.load %arg8[%c0_47, %c0_48] : memref<128x256xf32, #tpu.memory_space<vmem>>, vector<128x128xf32>
    %64 = vector.extract_strided_slice %44 {offsets = [0, 0], sizes = [128, 1], strides = [1, 1]} : vector<128x128xf32> to vector<128x1xf32>
    %cst_49 = arith.constant dense<0.000000e+00> : vector<128x128xf32>
    %65 = tpu.matmul %63, %26, %cst_49 {dimension_numbers = #tpu.dot_dimension_numbers<[1], [0], [0], [1], [0, 0, 1, 1], [], []>} : vector<128x128xf32>, vector<128x128xf32>, vector<128x128xf32> -> vector<128x128xf32>
    %66 = vector.broadcast %64 : vector<128x1xf32> to vector<128x128xf32>
    %67 = arith.mulf %65, %66 : vector<128x128xf32>
    %68 = arith.addf %67, %17 : vector<128x128xf32>
    %c0_50 = arith.constant 0 : index
    %c128_51 = arith.constant 128 : index
    %69 = vector.load %arg8[%c0_50, %c128_51] : memref<128x256xf32, #tpu.memory_space<vmem>>, vector<128x128xf32>
    %70 = vector.extract_strided_slice %44 {offsets = [0, 1], sizes = [128, 1], strides = [1, 1]} : vector<128x128xf32> to vector<128x1xf32>
    %cst_52 = arith.constant dense<0.000000e+00> : vector<128x128xf32>
    %71 = tpu.matmul %69, %35, %cst_52 {dimension_numbers = #tpu.dot_dimension_numbers<[1], [0], [0], [1], [0, 0, 1, 1], [], []>} : vector<128x128xf32>, vector<128x128xf32>, vector<128x128xf32> -> vector<128x128xf32>
    %72 = vector.broadcast %70 : vector<128x1xf32> to vector<128x128xf32>
    %73 = arith.mulf %71, %72 : vector<128x128xf32>
    %74 = arith.addf %73, %17 : vector<128x128xf32>
    %75 = tpu.concatenate %50, %56, %62, %68, %74 in 0 : vector<128x128xf32>, vector<128x128xf32>, vector<128x128xf32>, vector<128x128xf32>, vector<128x128xf32> -> vector<640x128xf32>
    %c0_53 = arith.constant 0 : index
    %c0_54 = arith.constant 0 : index
    %76 = vector.load %arg5[%c0_53, %c0_54] : memref<128x128xf32, #tpu.memory_space<vmem>>, vector<128x128xf32>
    %cst_55 = arith.constant dense<0.000000e+00> : vector<640x128xf32>
    %77 = tpu.matmul %75, %76, %cst_55 {dimension_numbers = #tpu.dot_dimension_numbers<[1], [1], [0], [0], [0, 0, 1, 0], [], []>} : vector<640x128xf32>, vector<128x128xf32>, vector<640x128xf32> -> vector<640x128xf32>
    %c0_56 = arith.constant 0 : index
    %c0_57 = arith.constant 0 : index
    %78 = vector.load %arg6[%c0_56, %c0_57] : memref<1x256xf32, #tpu.memory_space<vmem>>, vector<1x128xf32>
    %79 = vector.broadcast %78 : vector<1x128xf32> to vector<640x128xf32>
    %80 = arith.addf %77, %79 : vector<640x128xf32>
    %cst_58 = arith.constant 0.000000e+00 : f32
    %81 = vector.broadcast %cst_58 : f32 to vector<640x128xf32>
    %82 = arith.maximumf %80, %81 : vector<640x128xf32>
    %c0_59 = arith.constant 0 : index
    %c128_60 = arith.constant 128 : index
    %83 = vector.load %arg6[%c0_59, %c128_60] : memref<1x256xf32, #tpu.memory_space<vmem>>, vector<1x128xf32>
    %84 = vector.broadcast %83 : vector<1x128xf32> to vector<640x128xf32>
    %85 = arith.mulf %82, %84 : vector<640x128xf32>
    %cst_61 = arith.constant dense<0.000000e+00> : vector<640xf32>
    %86 = vector.multi_reduction <add>, %85, %cst_61 [1] : vector<640x128xf32> to vector<640xf32>
    %87 = vector.shape_cast %86 : vector<640xf32> to vector<640x1xf32>
    %88 = vector.extract_strided_slice %87 {offsets = [0, 0], sizes = [128, 1], strides = [1, 1]} : vector<640x1xf32> to vector<128x1xf32>
    %89 = vector.extract_strided_slice %87 {offsets = [128, 0], sizes = [128, 1], strides = [1, 1]} : vector<640x1xf32> to vector<128x1xf32>
    %90 = vector.extract_strided_slice %87 {offsets = [256, 0], sizes = [128, 1], strides = [1, 1]} : vector<640x1xf32> to vector<128x1xf32>
    %91 = vector.extract_strided_slice %87 {offsets = [384, 0], sizes = [128, 1], strides = [1, 1]} : vector<640x1xf32> to vector<128x1xf32>
    %92 = vector.extract_strided_slice %87 {offsets = [512, 0], sizes = [128, 1], strides = [1, 1]} : vector<640x1xf32> to vector<128x1xf32>
    %93 = arith.maximumf %88, %89 : vector<128x1xf32>
    %94 = arith.maximumf %93, %90 : vector<128x1xf32>
    %95 = arith.subf %88, %94 : vector<128x1xf32>
    %96 = math.exp %95 : vector<128x1xf32>
    %97 = arith.subf %89, %94 : vector<128x1xf32>
    %98 = math.exp %97 : vector<128x1xf32>
    %99 = arith.subf %90, %94 : vector<128x1xf32>
    %100 = math.exp %99 : vector<128x1xf32>
    %101 = arith.addf %96, %98 : vector<128x1xf32>
    %102 = arith.addf %101, %100 : vector<128x1xf32>
    %103 = tpu.reciprocal %102 {approx = true} : vector<128x1xf32> -> vector<128x1xf32>
    %104 = arith.mulf %96, %103 : vector<128x1xf32>
    %105 = vector.broadcast %104 : vector<128x1xf32> to vector<128x128xf32>
    %106 = arith.mulf %105, %50 : vector<128x128xf32>
    %107 = arith.mulf %98, %103 : vector<128x1xf32>
    %108 = vector.broadcast %107 : vector<128x1xf32> to vector<128x128xf32>
    %109 = arith.mulf %108, %56 : vector<128x128xf32>
    %110 = arith.addf %106, %109 : vector<128x128xf32>
    %111 = arith.mulf %100, %103 : vector<128x1xf32>
    %112 = vector.broadcast %111 : vector<128x1xf32> to vector<128x128xf32>
    %113 = arith.mulf %112, %62 : vector<128x128xf32>
    %114 = arith.addf %110, %113 : vector<128x128xf32>
    %115 = arith.maximumf %91, %92 : vector<128x1xf32>
    %116 = arith.subf %91, %115 : vector<128x1xf32>
    %117 = math.exp %116 : vector<128x1xf32>
    %118 = arith.subf %92, %115 : vector<128x1xf32>
    %119 = math.exp %118 : vector<128x1xf32>
    %120 = arith.addf %117, %119 : vector<128x1xf32>
    %121 = tpu.reciprocal %120 {approx = true} : vector<128x1xf32> -> vector<128x1xf32>
    %122 = arith.mulf %117, %121 : vector<128x1xf32>
    %123 = vector.broadcast %122 : vector<128x1xf32> to vector<128x128xf32>
    %124 = arith.mulf %123, %68 : vector<128x128xf32>
    %125 = arith.mulf %119, %121 : vector<128x1xf32>
    %126 = vector.broadcast %125 : vector<128x1xf32> to vector<128x128xf32>
    %127 = arith.mulf %126, %74 : vector<128x128xf32>
    %128 = arith.addf %124, %127 : vector<128x128xf32>
    %cst_62 = arith.constant dense<0.000000e+00> : vector<128x128xf32>
    %129 = tpu.matmul %114, %128, %cst_62 {dimension_numbers = #tpu.dot_dimension_numbers<[1], [1], [0], [0], [0, 0, 1, 0], [], []>} : vector<128x128xf32>, vector<128x128xf32>, vector<128x128xf32> -> vector<128x128xf32>
    %130 = arith.negf %129 : vector<128x128xf32>
    %131 = math.exp %130 : vector<128x128xf32>
    %cst_63 = arith.constant 1.000000e+00 : f32
    %132 = vector.broadcast %cst_63 : f32 to vector<128x128xf32>
    %133 = arith.addf %132, %131 : vector<128x128xf32>
    %134 = arith.divf %132, %133 : vector<128x128xf32>
    %c0_64 = arith.constant 0 : index
    %c0_65 = arith.constant 0 : index
    %135 = vector.load %arg12[%c0_64, %c0_65] : memref<128x128xf32, #tpu.memory_space<vmem>>, vector<128x128xf32>
    tpu.vector_store %arg12[%c0_64, %c0_65], %134 {strides = array<i32>} : memref<128x128xf32, #tpu.memory_space<vmem>>, vector<128x128xf32>,
    %c0_66 = arith.constant 0 : index
    %c0_67 = arith.constant 0 : index
    %136 = vector.load %arg11[%c0_66, %c0_67] : memref<128x256xf32, #tpu.memory_space<vmem>>, vector<128x128xf32>
    %c0_68 = arith.constant 0 : index
    %c128_69 = arith.constant 128 : index
    %137 = vector.load %arg11[%c0_68, %c128_69] : memref<128x256xf32, #tpu.memory_space<vmem>>, vector<128x128xf32>
    %138 = arith.subf %134, %136 : vector<128x128xf32>
    %139 = arith.mulf %137, %138 : vector<128x128xf32>
    %140 = arith.mulf %139, %139 : vector<128x128xf32>
    %141 = vector.shape_cast %140 : vector<128x128xf32> to vector<1x128x128xf32>
    %cst_70 = arith.constant dense<0.000000e+00> : vector<1xf32>
    %142 = vector.multi_reduction <add>, %141, %cst_70 [1, 2] : vector<1x128x128xf32> to vector<1xf32>
    %143 = vector.shape_cast %142 : vector<1xf32> to vector<1x1x1xf32>
    %144 = vector.extract %143[0, 0, 0] : f32 from vector<1x1x1xf32>
    %c0_71 = arith.constant 0 : index
    %145 = memref.load %arg13[%c0_71] : memref<1xf32, #tpu.memory_space<smem>>
    memref.store %144, %arg13[%c0_71] : memref<1xf32, #tpu.memory_space<smem>>
    return
  }
}

</mosaic_0001>

<bundles_post_ra>
// kernel: mgnn_forward.1
= control target key start
LH: loop header
LB: loop body
LE: loop exit
PB: predicated region body
PF: predicated region fallthrough
CT: control target
= control target key end

     0   :  { %s6961_s0 = inlined_call_operand.vmem [shape: f32[384,128], index: 0, kind: input, shape index: {}]   ;;  %s6962_s1 = inlined_call_operand.vmem [shape: f32[384,128], index: 1, kind: input, shape index: {}]   ;;  %s6963_s2 = inlined_call_operand.vmem [shape: f32[1,384], index: 2, kind: input, shape index: {}]   ;;  %s6964_s3 = inlined_call_operand.vmem [shape: f32[640,128], index: 3, kind: input, shape index: {}]   ;;  %s6965_s4 = inlined_call_operand.vmem [shape: f32[1,640], index: 4, kind: input, shape index: {}]   ;;  %s6966_s5 = inlined_call_operand.vmem [shape: f32[128,128], index: 5, kind: input, shape index: {}]   ;;  %s6967_s6 = inlined_call_operand.vmem [shape: f32[1,256], index: 6, kind: input, shape index: {}]   ;;  %s6968_s7 = inlined_call_operand.vmem [shape: f32[128,384], index: 7, kind: input, shape index: {}]   ;;  %s6969_s8 = inlined_call_operand.vmem [shape: f32[128,256], index: 8, kind: input, shape index: {}]   ;;  %s6970_s9 = inlined_call_operand.vmem [shape: f32[128,128], index: 9, kind: input, shape index: {}]   ;;  %s6971_s10 = inlined_call_operand.vmem [shape: f32[128,128], index: 10, kind: input, shape index: {}]   ;;  %s6972_s11 = inlined_call_operand.vmem [shape: f32[128,256], index: 11, kind: input, shape index: {}]   ;;  %s6973_s12 = inlined_call_operand.vmem [shape: f32[128,128], index: 12, kind: output, shape index: {0}]   ;;  %s6974_s13 = inlined_call_operand.hbm [shape: f32[1], index: 13, kind: output, shape index: {1}]  }
   0x1   :  { %v75_v0 = vld [vmem:[%s6962_s1 + $0x78] sm:$0xff]  ;;  %v74_v3 = vld [vmem:[%s6962_s1 + $0x70] sm:$0xff]  ;;  %v73_v6 = vld [vmem:[%s6962_s1 + $0x68] sm:$0xff] }
   0x2   :  { %v176_v1 = vld [vmem:[%s6962_s1 + $0xf8] sm:$0xff]  ;;  %80 = vmatpush.xpose.msra.mxu0 %v75_v0  ;;  %v175_v4 = vld [vmem:[%s6962_s1 + $0xf0] sm:$0xff]  ;;  %v174_v7 = vld [vmem:[%s6962_s1 + $0xe8] sm:$0xff] }
   0x3   :  { %v277_v2 = vld [vmem:[%s6962_s1 + $0x178] sm:$0xff]  ;;  %181 = vmatpush.xpose.msra.mxu1 %v176_v1  ;;  %v276_v5 = vld [vmem:[%s6962_s1 + $0x170] sm:$0xff]  ;;  %v275_v8 = vld [vmem:[%s6962_s1 + $0x168] sm:$0xff] }
   0x4   :  { %282 = vmatpush.xpose.msra.mxu2 %v277_v2  ;;  %v72_v9 = vld [vmem:[%s6962_s1 + $0x60] sm:$0xff]  ;;  %v71_v12 = vld [vmem:[%s6962_s1 + $0x58] sm:$0xff] }
   0x5   :  { %v173_v10 = vld [vmem:[%s6962_s1 + $0xe0] sm:$0xff]  ;;  %v172_v13 = vld [vmem:[%s6962_s1 + $0xd8] sm:$0xff] }
   0x6   :  { %81 = vmatpush.xpose.msra.mxu0 %v74_v3  ;;  %v274_v11 = vld [vmem:[%s6962_s1 + $0x160] sm:$0xff] }
   0x7   :  { %182 = vmatpush.xpose.msra.mxu1 %v175_v4 }
   0x8   :  { %283 = vmatpush.xpose.msra.mxu2 %v276_v5 }
   0xa   :  { %82 = vmatpush.xpose.msra.mxu0 %v73_v6 }
   0xb   :  { %183 = vmatpush.xpose.msra.mxu1 %v174_v7 }
   0xc   :  { %284 = vmatpush.xpose.msra.mxu2 %v275_v8 }
   0xe   :  { %83 = vmatpush.xpose.msra.mxu0 %v72_v9 }
   0xf   :  { %184 = vmatpush.xpose.msra.mxu1 %v173_v10 }
  0x10   :  { %285 = vmatpush.xpose.msra.mxu2 %v274_v11 }
  0x11   :  { %19 = vsyncpa [#allocation3], 0  ;;  %v273_v14 = vld [vmem:[%s6962_s1 + $0x158] sm:$0xff]  ;;  %v70_v15 = vld [vmem:[%s6962_s1 + $0x50] sm:$0xff]  ;;  %s3472_s22 = sshll.u32 %s6974_s13, 4  ;;  %s3894_s23 = smov [#allocation2]   ;;  %s3473_s22 = int_to_ptr.hbm [resolvable:$true] %s3472_s22 }
  0x12   :  { %84 = vmatpush.xpose.msra.mxu0 %v71_v12  ;;  %v171_v16 = vld [vmem:[%s6962_s1 + $0xd0] sm:$0xff]  ;;  %v69_v18 = vld [vmem:[%s6962_s1 + $0x48] sm:$0xff]  ;;  %v68_v21 = vld [vmem:[%s6962_s1 + $0x40] sm:$0xff] }
  0x13   :  { %185 = vmatpush.xpose.msra.mxu1 %v172_v13  ;;  %v272_v17 = vld [vmem:[%s6962_s1 + $0x150] sm:$0xff]  ;;  %v170_v19 = vld [vmem:[%s6962_s1 + $0xc8] sm:$0xff]  ;;  %v169_v22 = vld [vmem:[%s6962_s1 + $0xc0] sm:$0xff] }
  0x14   :  { %286 = vmatpush.xpose.msra.mxu2 %v273_v14  ;;  %v271_v20 = vld [vmem:[%s6962_s1 + $0x148] sm:$0xff]  ;;  %v270_v23 = vld [vmem:[%s6962_s1 + $0x140] sm:$0xff]  ;;  %v67_v24 = vld [vmem:[%s6962_s1 + $0x38] sm:$0xff] }
  0x15   :  { %v168_v25 = vld [vmem:[%s6962_s1 + $0xb8] sm:$0xff]  ;;  %v66_v27 = vld [vmem:[%s6962_s1 + $0x30] sm:$0xff]  ;;  %v65_v30 = vld [vmem:[%s6962_s1 + $0x28] sm:$0xff] }
  0x16   :  { %85 = vmatpush.xpose.msra.mxu0 %v70_v15  ;;  %v269_v26 = vld [vmem:[%s6962_s1 + $0x138] sm:$0xff]  ;;  %v167_v28 = vld [vmem:[%s6962_s1 + $0xb0] sm:$0xff]  ;;  %v166_v31 = vld [vmem:[%s6962_s1 + $0xa8] sm:$0xff] }
  0x17   :  { %186 = vmatpush.xpose.msra.mxu1 %v171_v16  ;;  %v268_v29 = vld [vmem:[%s6962_s1 + $0x130] sm:$0xff]  ;;  %v267_v32 = vld [vmem:[%s6962_s1 + $0x128] sm:$0xff]  ;;  %v64_v33 = vld [vmem:[%s6962_s1 + $0x20] sm:$0xff] }
  0x18   :  { %287 = vmatpush.xpose.msra.mxu2 %v272_v17  ;;  %v165_v34 = vld [vmem:[%s6962_s1 + $0xa0] sm:$0xff]  ;;  %v63_v36 = vld [vmem:[%s6962_s1 + $0x18] sm:$0xff]  ;;  %v62_v39 = vld [vmem:[%s6962_s1 + $0x10] sm:$0xff] }
  0x19   :  { %v266_v35 = vld [vmem:[%s6962_s1 + $0x120] sm:$0xff]  ;;  %v164_v37 = vld [vmem:[%s6962_s1 + $0x98] sm:$0xff]  ;;  %v163_v40 = vld [vmem:[%s6962_s1 + $0x90] sm:$0xff] }
  0x1a   :  { %86 = vmatpush.xpose.msra.mxu0 %v69_v18  ;;  %v265_v38 = vld [vmem:[%s6962_s1 + $0x118] sm:$0xff]  ;;  %v264_v41 = vld [vmem:[%s6962_s1 + $0x110] sm:$0xff]  ;;  %v61_v42 = vld [vmem:[%s6962_s1 + $0x8] sm:$0xff] }
  0x1b   :  { %187 = vmatpush.xpose.msra.mxu1 %v170_v19  ;;  %v162_v43 = vld [vmem:[%s6962_s1 + $0x88] sm:$0xff]  ;;  %v60_v45 = vld [vmem:[%s6962_s1] sm:$0xff]  ;;  %v46_v54 = vld [vmem:[%s6961_s0 + $0x10] sm:$0xff] }
  0x1c   :  { %288 = vmatpush.xpose.msra.mxu2 %v271_v20  ;;  %v263_v44 = vld [vmem:[%s6962_s1 + $0x108] sm:$0xff]  ;;  %v161_v46 = vld [vmem:[%s6962_s1 + $0x80] sm:$0xff]  ;;  %v147_v55 = vld [vmem:[%s6961_s0 + $0x90] sm:$0xff] }
  0x1d   :  { %v262_v47 = vld [vmem:[%s6962_s1 + $0x100] sm:$0xff]  ;;  %v45_v51 = vld [vmem:[%s6961_s0 + $0x8] sm:$0xff]  ;;  %v248_v56 = vld [vmem:[%s6961_s0 + $0x110] sm:$0xff] }
  0x1e   :  { %87 = vmatpush.xpose.msra.mxu0 %v68_v21  ;;  %v44_v48 = vld [vmem:[%s6961_s0] sm:$0xff]  ;;  %v146_v52 = vld [vmem:[%s6961_s0 + $0x88] sm:$0xff]  ;;  %v47_v57 = vld [vmem:[%s6961_s0 + $0x18] sm:$0xff] }
  0x1f   :  { %188 = vmatpush.xpose.msra.mxu1 %v169_v22  ;;  %v145_v49 = vld [vmem:[%s6961_s0 + $0x80] sm:$0xff]  ;;  %v247_v53 = vld [vmem:[%s6961_s0 + $0x108] sm:$0xff]  ;;  %v148_v58 = vld [vmem:[%s6961_s0 + $0x98] sm:$0xff] }
  0x20   :  { %289 = vmatpush.xpose.msra.mxu2 %v270_v23  ;;  %v246_v50 = vld [vmem:[%s6961_s0 + $0x100] sm:$0xff]  ;;  %v249_v59 = vld [vmem:[%s6961_s0 + $0x118] sm:$0xff]  ;;  %v361_v2 = vld [vmem:[%s6964_s3 + $0x70] sm:$0xff] }
  0x21   :  { %v48_v60 = vld [vmem:[%s6961_s0 + $0x20] sm:$0xff]  ;;  %v362_v63 = vld [vmem:[%s6964_s3 + $0x78] sm:$0xff]  ;;  %v561_v3 = vld [vmem:[%s6964_s3 + $0x170] sm:$0xff] }
  0x22   :  { %88 = vmatpush.xpose.msra.mxu0 %v67_v24  ;;  %v149_v61 = vld [vmem:[%s6961_s0 + $0xa0] sm:$0xff]  ;;  %v562_v0 = vld [vmem:[%s6964_s3 + $0x178] sm:$0xff]  ;;  %v577_v4 = vld [vmem:[%s6964_s3 + $0x1f0] sm:$0xff] }
  0x23   :  { %189 = vmatpush.xpose.msra.mxu1 %v168_v25  ;;  %v250_v62 = vld [vmem:[%s6961_s0 + $0x120] sm:$0xff]  ;;  %v578_v1 = vld [vmem:[%s6964_s3 + $0x1f8] sm:$0xff]  ;;  %v49_v5 = vld [vmem:[%s6961_s0 + $0x28] sm:$0xff] }
  0x24   :  { %290 = vmatpush.xpose.msra.mxu2 %v269_v26  ;;  %v150_v6 = vld [vmem:[%s6961_s0 + $0xa8] sm:$0xff]  ;;  %v359_v11 = vld [vmem:[%s6964_s3 + $0x60] sm:$0xff]  ;;  %v50_v14 = vld [vmem:[%s6961_s0 + $0x30] sm:$0xff] }
  0x25   :  { %v251_v7 = vld [vmem:[%s6961_s0 + $0x128] sm:$0xff]  ;;  %v559_v12 = vld [vmem:[%s6964_s3 + $0x160] sm:$0xff]  ;;  %v151_v15 = vld [vmem:[%s6961_s0 + $0xb0] sm:$0xff] }
  0x26   :  { %89 = vmatpush.xpose.msra.mxu0 %v66_v27  ;;  %v360_v8 = vld [vmem:[%s6964_s3 + $0x68] sm:$0xff]  ;;  %v575_v13 = vld [vmem:[%s6964_s3 + $0x1e0] sm:$0xff]  ;;  %v252_v16 = vld [vmem:[%s6961_s0 + $0x130] sm:$0xff] }
  0x27   :  { %190 = vmatpush.xpose.msra.mxu1 %v167_v28  ;;  %v560_v9 = vld [vmem:[%s6964_s3 + $0x168] sm:$0xff]  ;;  %v358_v17 = vld [vmem:[%s6964_s3 + $0x58] sm:$0xff]  ;;  %v357_v20 = vld [vmem:[%s6964_s3 + $0x50] sm:$0xff] }
  0x28   :  { %291 = vmatpush.xpose.msra.mxu2 %v268_v29  ;;  %v576_v10 = vld [vmem:[%s6964_s3 + $0x1e8] sm:$0xff]  ;;  %v558_v18 = vld [vmem:[%s6964_s3 + $0x158] sm:$0xff]  ;;  %v557_v21 = vld [vmem:[%s6964_s3 + $0x150] sm:$0xff] }
  0x29   :  { %v574_v19 = vld [vmem:[%s6964_s3 + $0x1d8] sm:$0xff]  ;;  %v573_v22 = vld [vmem:[%s6964_s3 + $0x1d0] sm:$0xff]  ;;  %v356_v26 = vld [vmem:[%s6964_s3 + $0x48] sm:$0xff] }
  0x2a   :  { %90 = vmatpush.xpose.msra.mxu0 %v65_v30  ;;  %v51_v23 = vld [vmem:[%s6961_s0 + $0x38] sm:$0xff]  ;;  %v556_v27 = vld [vmem:[%s6964_s3 + $0x148] sm:$0xff]  ;;  %v355_v29 = vld [vmem:[%s6964_s3 + $0x40] sm:$0xff] }
  0x2b   :  { %191 = vmatpush.xpose.msra.mxu1 %v166_v31  ;;  %v152_v24 = vld [vmem:[%s6961_s0 + $0xb8] sm:$0xff]  ;;  %v572_v28 = vld [vmem:[%s6964_s3 + $0x1c8] sm:$0xff]  ;;  %v555_v30 = vld [vmem:[%s6964_s3 + $0x140] sm:$0xff] }
  0x2c   :  { %292 = vmatpush.xpose.msra.mxu2 %v267_v32  ;;  %v253_v25 = vld [vmem:[%s6961_s0 + $0x138] sm:$0xff]  ;;  %v571_v31 = vld [vmem:[%s6964_s3 + $0x1c0] sm:$0xff] }
  0x2d   :  { %v52_v32 = vld [vmem:[%s6961_s0 + $0x40] sm:$0xff] }
  0x2e   :  { %91 = vmatpush.xpose.msra.mxu0 %v64_v33  ;;  %v153_v33 = vld [vmem:[%s6961_s0 + $0xc0] sm:$0xff] }
  0x2f   :  { %192 = vmatpush.xpose.msra.mxu1 %v165_v34  ;;  %v254_v34 = vld [vmem:[%s6961_s0 + $0x140] sm:$0xff] }
  0x30   :  { %293 = vmatpush.xpose.msra.mxu2 %v266_v35  ;;  %v354_v35 = vld [vmem:[%s6964_s3 + $0x38] sm:$0xff] }
  0x32   :  { %92 = vmatpush.xpose.msra.mxu0 %v63_v36  ;;  %v554_v36 = vld [vmem:[%s6964_s3 + $0x138] sm:$0xff] }
  0x33   :  { %193 = vmatpush.xpose.msra.mxu1 %v164_v37  ;;  %v570_v37 = vld [vmem:[%s6964_s3 + $0x1b8] sm:$0xff] }
  0x34   :  { %294 = vmatpush.xpose.msra.mxu2 %v265_v38  ;;  %v353_v38 = vld [vmem:[%s6964_s3 + $0x30] sm:$0xff] }
  0x36   :  { %93 = vmatpush.xpose.msra.mxu0 %v62_v39  ;;  %v553_v39 = vld [vmem:[%s6964_s3 + $0x130] sm:$0xff] }
  0x37   :  { %194 = vmatpush.xpose.msra.mxu1 %v163_v40  ;;  %v569_v40 = vld [vmem:[%s6964_s3 + $0x1b0] sm:$0xff] }
  0x38   :  { %295 = vmatpush.xpose.msra.mxu2 %v264_v41  ;;  %v53_v41 = vld [vmem:[%s6961_s0 + $0x48] sm:$0xff] }
  0x3a   :  { %94 = vmatpush.xpose.msra.mxu0 %v61_v42  ;;  %v154_v42 = vld [vmem:[%s6961_s0 + $0xc8] sm:$0xff] }
  0x3b   :  { %195 = vmatpush.xpose.msra.mxu1 %v162_v43  ;;  %v255_v43 = vld [vmem:[%s6961_s0 + $0x148] sm:$0xff] }
  0x3c   :  { %296 = vmatpush.xpose.msra.mxu2 %v263_v44  ;;  %v352_v44 = vld [vmem:[%s6964_s3 + $0x28] sm:$0xff] }
  0x3e   :  { %95 = vmatpush.xpose.msra.mxu0 %v60_v45  ;;  %v552_v45 = vld [vmem:[%s6964_s3 + $0x128] sm:$0xff] }
  0x3f   :  { %196 = vmatpush.xpose.msra.mxu1 %v161_v46  ;;  %v568_v46 = vld [vmem:[%s6964_s3 + $0x1a8] sm:$0xff] }
  0x40   :  { %297 = vmatpush.xpose.msra.mxu2 %v262_v47  ;;  %v351_v47 = vld [vmem:[%s6964_s3 + $0x20] sm:$0xff] }
  0x41   :  { %96 = vmatmul.f32.vlgmr.msra.gmra.mxu0 %v44_v48  ;;  %v551_v48 = vld [vmem:[%s6964_s3 + $0x120] sm:$0xff] }
  0x42   :  { %197 = vmatmul.f32.vlgmr.msra.gmra.mxu1 %v145_v49  ;;  %385 = vmatpush.xpose.msrb.mxu0 %v362_v63  ;;  %v567_v49 = vld [vmem:[%s6964_s3 + $0x1a0] sm:$0xff]  ;;  %v548_v63 = vld [vmem:[%s6964_s3 + $0x108] sm:$0xff] }
  0x43   :  { %298 = vmatmul.f32.vlgmr.msra.gmra.mxu2 %v246_v50  ;;  %585 = vmatpush.xpose.msrb.mxu1 %v562_v0  ;;  %v54_v50 = vld [vmem:[%s6961_s0 + $0x50] sm:$0xff]  ;;  %v564_v0 = vld [vmem:[%s6964_s3 + $0x188] sm:$0xff] }
  0x44   :  { %650 = vmatpush.xpose.msrb.mxu2 %v578_v1  ;;  %v56_v1 = vld [vmem:[%s6961_s0 + $0x60] sm:$0xff] }
  0x46   :  { %386 = vmatpush.xpose.msrb.mxu0 %v361_v2  ;;  %v157_v2 = vld [vmem:[%s6961_s0 + $0xe0] sm:$0xff] }
  0x47   :  { %586 = vmatpush.xpose.msrb.mxu1 %v561_v3  ;;  %v347_v3 = vld [vmem:[%s6964_s3] sm:$0xff] }
  0x48   :  { %651 = vmatpush.xpose.msrb.mxu2 %v577_v4  ;;  %v547_v4 = vld [vmem:[%s6964_s3 + $0x100] sm:$0xff] }
  0x49   :  { %99 = vmatmul.f32.gmra.mxu0 %v45_v51  ;;  %v155_v51 = vld [vmem:[%s6961_s0 + $0xd0] sm:$0xff] }
  0x4a   :  { %200 = vmatmul.f32.gmra.mxu1 %v146_v52  ;;  %387 = vmatpush.xpose.msrb.mxu0 %v360_v8  ;;  %v256_v52 = vld [vmem:[%s6961_s0 + $0x150] sm:$0xff]  ;;  %v158_v8 = vld [vmem:[%s6961_s0 + $0xe8] sm:$0xff] }
  0x4b   :  { %301 = vmatmul.f32.gmra.mxu2 %v247_v53  ;;  %587 = vmatpush.xpose.msrb.mxu1 %v560_v9  ;;  %v350_v53 = vld [vmem:[%s6964_s3 + $0x18] sm:$0xff]  ;;  %v259_v9 = vld [vmem:[%s6961_s0 + $0x168] sm:$0xff] }
  0x4c   :  { %652 = vmatpush.xpose.msrb.mxu2 %v576_v10  ;;  %v58_v10 = vld [vmem:[%s6961_s0 + $0x70] sm:$0xff] }
  0x4e   :  { %388 = vmatpush.xpose.msrb.mxu0 %v359_v11  ;;  %v159_v11 = vld [vmem:[%s6961_s0 + $0xf0] sm:$0xff] }
  0x4f   :  { %588 = vmatpush.xpose.msrb.mxu1 %v559_v12  ;;  %v260_v12 = vld [vmem:[%s6961_s0 + $0x170] sm:$0xff] }
  0x50   :  { %653 = vmatpush.xpose.msrb.mxu2 %v575_v13  ;;  %v59_v13 = vld [vmem:[%s6961_s0 + $0x78] sm:$0xff] }
  0x51   :  { %102 = vmatmul.f32.gmra.mxu0 %v46_v54  ;;  %v550_v54 = vld [vmem:[%s6964_s3 + $0x118] sm:$0xff] }
  0x52   :  { %203 = vmatmul.f32.gmra.mxu1 %v147_v55  ;;  %389 = vmatpush.xpose.msrb.mxu0 %v358_v17  ;;  %v566_v55 = vld [vmem:[%s6964_s3 + $0x198] sm:$0xff]  ;;  %v4405_v17 = vld [vmem:[%s6963_s2 + $0x1] ss:$0 sm:$0xff] }
  0x53   :  { %304 = vmatmul.f32.gmra.mxu2 %v248_v56  ;;  %589 = vmatpush.xpose.msrb.mxu1 %v558_v18  ;;  %v349_v56 = vld [vmem:[%s6964_s3 + $0x10] sm:$0xff] }
  0x54   :  { %654 = vmatpush.xpose.msrb.mxu2 %v574_v19 }
  0x56   :  { %390 = vmatpush.xpose.msrb.mxu0 %v357_v20 }
  0x57   :  { %590 = vmatpush.xpose.msrb.mxu1 %v557_v21 }
  0x58   :  { %655 = vmatpush.xpose.msrb.mxu2 %v573_v22 }
  0x59   :  { %105 = vmatmul.f32.gmra.mxu0 %v47_v57  ;;  %v549_v57 = vld [vmem:[%s6964_s3 + $0x110] sm:$0xff] }
  0x5a   :  { %206 = vmatmul.f32.gmra.mxu1 %v148_v58  ;;  %391 = vmatpush.xpose.msrb.mxu0 %v356_v26  ;;  %v565_v58 = vld [vmem:[%s6964_s3 + $0x190] sm:$0xff] }
  0x5b   :  { %307 = vmatmul.f32.gmra.mxu2 %v249_v59  ;;  %591 = vmatpush.xpose.msrb.mxu1 %v556_v27  ;;  %v55_v59 = vld [vmem:[%s6961_s0 + $0x58] sm:$0xff] }
  0x5c   :  { %656 = vmatpush.xpose.msrb.mxu2 %v572_v28  ;;  %v762_v27 = vld [vmem:[%s6964_s3 + $0x278] sm:$0xff]  ;;  %v761_v28 = vld [vmem:[%s6964_s3 + $0x270] sm:$0xff] }
  0x5d   :  { %3500 = vmatpush.xpose.msra.mxu3 %v762_v27 }
  0x5e   :  { %392 = vmatpush.xpose.msrb.mxu0 %v355_v29 }
  0x5f   :  { %592 = vmatpush.xpose.msrb.mxu1 %v555_v30 }
  0x60   :  { %657 = vmatpush.xpose.msrb.mxu2 %v571_v31 }
  0x61   :  { %108 = vmatmul.f32.gmra.mxu0 %v48_v60  ;;  %v156_v60 = vld [vmem:[%s6961_s0 + $0xd8] sm:$0xff]  ;;  %3501 = vmatpush.xpose.msra.mxu3 %v761_v28 }
  0x62   :  { %209 = vmatmul.f32.gmra.mxu1 %v149_v61  ;;  %393 = vmatpush.xpose.msrb.mxu0 %v354_v35  ;;  %v257_v61 = vld [vmem:[%s6961_s0 + $0x158] sm:$0xff]  ;;  %v759_v35 = vld [vmem:[%s6964_s3 + $0x260] sm:$0xff] }
  0x63   :  { %310 = vmatmul.f32.gmra.mxu2 %v250_v62  ;;  %593 = vmatpush.xpose.msrb.mxu1 %v554_v36  ;;  %v348_v62 = vld [vmem:[%s6964_s3 + $0x8] sm:$0xff] }
  0x64   :  { %658 = vmatpush.xpose.msrb.mxu2 %v570_v37 }
  0x66   :  { %394 = vmatpush.xpose.msrb.mxu0 %v353_v38 }
  0x67   :  { %594 = vmatpush.xpose.msrb.mxu1 %v553_v39 }
  0x68   :  { %659 = vmatpush.xpose.msrb.mxu2 %v569_v40 }
  0x69   :  { %111 = vmatmul.f32.gmra.mxu0 %v49_v5  ;;  %v258_v5 = vld [vmem:[%s6961_s0 + $0x160] sm:$0xff] }
  0x6a   :  { %212 = vmatmul.f32.gmra.mxu1 %v150_v6  ;;  %395 = vmatpush.xpose.msrb.mxu0 %v352_v44  ;;  %v563_v6 = vld [vmem:[%s6964_s3 + $0x180] sm:$0xff] }
  0x6b   :  { %313 = vmatmul.f32.gmra.mxu2 %v251_v7  ;;  %595 = vmatpush.xpose.msrb.mxu1 %v552_v45  ;;  %v57_v7 = vld [vmem:[%s6961_s0 + $0x68] sm:$0xff] }
  0x6c   :  { %660 = vmatpush.xpose.msrb.mxu2 %v568_v46 }
  0x6e   :  { %396 = vmatpush.xpose.msrb.mxu0 %v351_v47 }
  0x6f   :  { %596 = vmatpush.xpose.msrb.mxu1 %v551_v48  ;;  %v756_v48 = vld [vmem:[%s6964_s3 + $0x248] sm:$0xff] }
  0x70   :  { %661 = vmatpush.xpose.msrb.mxu2 %v567_v49  ;;  %v378_v49 = vld [vmem:[%s6964_s3 + $0xf8] sm:$0xff] }
  0x71   :  { %114 = vmatmul.f32.gmra.mxu0 %v50_v14  ;;  %v160_v14 = vld [vmem:[%s6961_s0 + $0xf8] sm:$0xff] }
  0x72   :  { %215 = vmatmul.f32.gmra.mxu1 %v151_v15  ;;  %397 = vmatpush.xpose.msrb.mxu0 %v350_v53  ;;  %v261_v15 = vld [vmem:[%s6961_s0 + $0x178] sm:$0xff] }
  0x73   :  { %316 = vmatmul.f32.gmra.mxu2 %v252_v16  ;;  %597 = vmatpush.xpose.msrb.mxu1 %v550_v54  ;;  %v4400_v16 = vld [vmem:[%s6963_s2] ss:$0 sm:$0xff]  ;;  %v377_v54 = vld [vmem:[%s6964_s3 + $0xf0] sm:$0xff] }
  0x74   :  { %662 = vmatpush.xpose.msrb.mxu2 %v566_v55 }
  0x76   :  { %398 = vmatpush.xpose.msrb.mxu0 %v349_v56 }
  0x77   :  { %598 = vmatpush.xpose.msrb.mxu1 %v549_v57  ;;  %v754_v57 = vld [vmem:[%s6964_s3 + $0x238] sm:$0xff] }
  0x78   :  { %663 = vmatpush.xpose.msrb.mxu2 %v565_v58  ;;  %v376_v58 = vld [vmem:[%s6964_s3 + $0xe8] sm:$0xff] }
  0x79   :  { %117 = vmatmul.f32.gmra.mxu0 %v51_v23 }
  0x7a   :  { %218 = vmatmul.f32.gmra.mxu1 %v152_v24  ;;  %399 = vmatpush.xpose.msrb.mxu0 %v348_v62 }
  0x7b   :  { %319 = vmatmul.f32.gmra.mxu2 %v253_v25  ;;  %599 = vmatpush.xpose.msrb.mxu1 %v548_v63  ;;  %v375_v63 = vld [vmem:[%s6964_s3 + $0xe0] sm:$0xff] }
  0x7c   :  { %664 = vmatpush.xpose.msrb.mxu2 %v564_v0 }
  0x7e   :  { %400 = vmatpush.xpose.msrb.mxu0 %v347_v3  ;;  %v374_v3 = vld [vmem:[%s6964_s3 + $0xd8] sm:$0xff] }
  0x7f   :  { %600 = vmatpush.xpose.msrb.mxu1 %v547_v4  ;;  %v751_v4 = vld [vmem:[%s6964_s3 + $0x220] sm:$0xff] }
  0x80   :  { %665 = vmatpush.xpose.msrb.mxu2 %v563_v6 }
  0x81   :  { %120 = vmatmul.f32.gmra.mxu0 %v52_v32 }
  0x82   :  { %221 = vmatmul.f32.gmra.mxu1 %v153_v33  ;;  %450 = vmatpush.xpose.msra.mxu0 %v378_v49  ;;  %v6975_v49 = vmov 1  }
  0x83   :  { %322 = vmatmul.f32.gmra.mxu2 %v254_v34  ;;  %v760_v34 = vld [vmem:[%s6964_s3 + $0x268] sm:$0xff]  ;;  %3555 = vset.pattern.permute.xlu1 %v6975_v49 }
  0x84   :  { %767 = vmatpush.xpose.msra.mxu2 %v762_v27  ;;  %3502 = vmatpush.xpose.msra.mxu3 %v760_v34  ;;  %v747_v27 = vld [vmem:[%s6964_s3 + $0x200] sm:$0xff] }
  0x85   :  { %3554 = vset.pattern.permute.xlu0 %v6975_v49 }
  0x86   :  { %451 = vmatpush.xpose.msra.mxu0 %v377_v54  ;;  %v365_v54 = vld [vmem:[%s6964_s3 + $0x90] sm:$0xff] }
  0x88   :  { %768 = vmatpush.xpose.msra.mxu2 %v761_v28  ;;  %3503 = vmatpush.xpose.msra.mxu3 %v759_v35 }
  0x89   :  { %123 = vmatmul.f32.gmra.mxu0 %v53_v41  ;;  %v758_v41 = vld [vmem:[%s6964_s3 + $0x258] sm:$0xff] }
  0x8a   :  { %224 = vmatmul.f32.gmra.mxu1 %v154_v42  ;;  %v757_v42 = vld [vmem:[%s6964_s3 + $0x250] sm:$0xff]  ;;  %452 = vmatpush.xpose.msra.mxu0 %v376_v58  ;;  %v364_v58 = vld [vmem:[%s6964_s3 + $0x88] sm:$0xff] }
  0x8b   :  { %325 = vmatmul.f32.gmra.mxu2 %v255_v43 }
  0x8c   :  { %769 = vmatpush.xpose.msra.mxu2 %v760_v34  ;;  %3504 = vmatpush.xpose.msra.mxu3 %v758_v41 }
  0x8e   :  { %453 = vmatpush.xpose.msra.mxu0 %v375_v63 }
  0x90   :  { %770 = vmatpush.xpose.msra.mxu2 %v759_v35  ;;  %3505 = vmatpush.xpose.msra.mxu3 %v757_v42 }
  0x91   :  { %126 = vmatmul.f32.gmra.mxu0 %v54_v50  ;;  %v755_v50 = vld [vmem:[%s6964_s3 + $0x240] sm:$0xff] }
  0x92   :  { %227 = vmatmul.f32.gmra.mxu1 %v155_v51  ;;  %454 = vmatpush.xpose.msra.mxu0 %v374_v3 }
  0x93   :  { %328 = vmatmul.f32.gmra.mxu2 %v256_v52 }
  0x94   :  { %771 = vmatpush.xpose.msra.mxu2 %v758_v41  ;;  %3506 = vmatpush.xpose.msra.mxu3 %v756_v48 }
  0x98   :  { %772 = vmatpush.xpose.msra.mxu2 %v757_v42  ;;  %3507 = vmatpush.xpose.msra.mxu3 %v755_v50  ;;  %v367_v42 = vld [vmem:[%s6964_s3 + $0xa0] sm:$0xff] }
  0x99   :  { %129 = vmatmul.f32.gmra.mxu0 %v55_v59  ;;  %v753_v59 = vld [vmem:[%s6964_s3 + $0x230] sm:$0xff] }
  0x9a   :  { %230 = vmatmul.f32.gmra.mxu1 %v156_v60 }
  0x9b   :  { %331 = vmatmul.f32.gmra.mxu2 %v257_v61 }
  0x9c   :  { %773 = vmatpush.xpose.msra.mxu2 %v756_v48  ;;  %3508 = vmatpush.xpose.msra.mxu3 %v754_v57  ;;  %v4572_v48 = vld [vmem:[%s6970_s9 + $0x70] sm:$0xff] }
  0x9d   :  { %7148 = vst [vmem:[#allocation16_spill] sm:$0xff] %v4572_v48  ;;  %1211 = vperm.xlu1 %3555, %v4572_v48  }
  0xa0   :  { %774 = vmatpush.xpose.msra.mxu2 %v755_v50  ;;  %3509 = vmatpush.xpose.msra.mxu3 %v753_v59 }
  0xa1   :  { %132 = vmatmul.f32.gmra.mxu0 %v56_v1 }
  0xa2   :  { %233 = vmatmul.f32.gmra.mxu1 %v157_v2  ;;  %v752_v2 = vld [vmem:[%s6964_s3 + $0x228] sm:$0xff] }
  0xa3   :  { %334 = vmatmul.f32.gmra.mxu2 %v258_v5 }
  0xa4   :  { %775 = vmatpush.xpose.msra.mxu2 %v754_v57  ;;  %3510 = vmatpush.xpose.msra.mxu3 %v752_v2 }
  0xa8   :  { %776 = vmatpush.xpose.msra.mxu2 %v753_v59  ;;  %3511 = vmatpush.xpose.msra.mxu3 %v751_v4  ;;  %v4593_v59 = vld [vmem:[%s6970_s9 + $0x78] sm:$0xff] }
  0xa9   :  { %135 = vmatmul.f32.gmra.mxu0 %v57_v7  ;;  %7150 = vst [vmem:[#allocation18_spill] sm:$0xff] %v4593_v59  ;;  %1215 = vperm.xlu1 %3555, %v4593_v59  }
  0xaa   :  { %236 = vmatmul.f32.gmra.mxu1 %v158_v8  ;;  %v373_v8 = vld [vmem:[%s6964_s3 + $0xd0] sm:$0xff] }
  0xab   :  { %337 = vmatmul.f32.gmra.mxu2 %v259_v9  ;;  %455 = vmatpush.xpose.msra.mxu0 %v373_v8 }
  0xac   :  { %777 = vmatpush.xpose.msra.mxu2 %v752_v2 }
  0xb0   :  { %778 = vmatpush.xpose.msra.mxu2 %v751_v4  ;;  %v4609_v4 = vld [vmem:[%s6970_s9 + $0x18] sm:$0xff] }
  0xb1   :  { %138 = vmatmul.f32.gmra.mxu0 %v58_v10  ;;  %7152 = vst [vmem:[#allocation20_spill] sm:$0xff] %v4609_v4 }
  0xb2   :  { %239 = vmatmul.f32.gmra.mxu1 %v159_v11  ;;  %v750_v11 = vld [vmem:[%s6964_s3 + $0x218] sm:$0xff] }
  0xb3   :  { %340 = vmatmul.f32.gmra.mxu2 %v260_v12  ;;  %3512 = vmatpush.xpose.msra.mxu3 %v750_v11  ;;  %v372_v12 = vld [vmem:[%s6964_s3 + $0xc8] sm:$0xff] }
  0xb4   :  { %456 = vmatpush.xpose.msra.mxu0 %v372_v12  ;;  %779 = vmatpush.xpose.msra.mxu2 %v750_v11 }
  0xb9   :  { %141 = vmatmul.f32.gmra.mxu0 %v59_v13  ;;  %v749_v13 = vld [vmem:[%s6964_s3 + $0x210] sm:$0xff] }
  0xba   :  { %242 = vmatmul.f32.gmra.mxu1 %v160_v14  ;;  %3513 = vmatpush.xpose.msra.mxu3 %v749_v13 }
  0xbb   :  { %343 = vmatmul.f32.gmra.mxu2 %v261_v15 }
  0xbc   :  { %780 = vmatpush.xpose.msra.mxu2 %v749_v13  ;;  %v4625_v13 = vld [vmem:[%s6970_s9] sm:$0xff] }
  0xbd   :  { %7154 = vst [vmem:[#allocation22_spill] sm:$0xff] %v4625_v13 }
  0xbe   :  { %v97_v18 = vpop.f32.mrf.mxu0 }
  0xbf   :  { %v198_v19 = vpop.f32.mrf.mxu1  ;;  %v4408_v20 = vadd.f32 %v4400_v16, %v97_v18 }
  0xc0   :  { %v199_v21 = vadd.f32 %v4405_v17, %v198_v19  ;;  %v371_v19 = vld [vmem:[%s6964_s3 + $0xc0] sm:$0xff] }
  0xc1   :  { %7137 = vst [vmem:[#allocation5_spill] sm:$0xff] %v4408_v20  ;;  %401 = vmatmul.f32.vlgmr.msrb.gmra.mxu0 %v4408_v20 }
  0xc2   :  { %601 = vmatmul.f32.vlgmr.msrb.gmra.mxu1 %v199_v21  ;;  %457 = vmatpush.xpose.msra.mxu0 %v371_v19  ;;  %v4637_v19 = vld [vmem:[%s6970_s9 + $0x28] sm:$0xff] }
  0xc3   :  { %666 = vmatmul.f32.vlgmr.msrb.gmra.mxu2 %v199_v21  ;;  %7156 = vst [vmem:[#allocation24_spill] sm:$0xff] %v4637_v19 }
  0xc6   :  { %v4412_v22 = vpop.f32.mrf.mxu2  ;;  %v100_v23 = vpop.f32.mrf.mxu0 }
  0xc7   :  { %v201_v24 = vpop.f32.mrf.mxu1  ;;  %v4415_v25 = vadd.f32 %v4400_v16, %v100_v23 }
  0xc8   :  { %v202_v26 = vadd.f32 %v4405_v17, %v201_v24  ;;  %v748_v24 = vld [vmem:[%s6964_s3 + $0x208] sm:$0xff] }
  0xc9   :  { %7138 = vst [vmem:[#allocation6_spill] sm:$0xff] %v4415_v25  ;;  %404 = vmatmul.f32.gmra.mxu0 %v4415_v25  ;;  %3514 = vmatpush.xpose.msra.mxu3 %v748_v24 }
  0xca   :  { %604 = vmatmul.f32.gmra.mxu1 %v202_v26  ;;  %781 = vmatpush.xpose.msra.mxu2 %v748_v24 }
  0xcb   :  { %669 = vmatmul.f32.gmra.mxu2 %v202_v26  ;;  %v370_v26 = vld [vmem:[%s6964_s3 + $0xb8] sm:$0xff] }
  0xcc   :  { %458 = vmatpush.xpose.msra.mxu0 %v370_v26 }
  0xcd   :  { %3515 = vmatpush.xpose.msra.mxu3 %v747_v27 }
  0xce   :  { %v4425_v29 = vpop.f32.mrf.mxu2  ;;  %v103_v30 = vpop.f32.mrf.mxu0  ;;  %782 = vmatpush.xpose.msra.mxu2 %v747_v27 }
  0xcf   :  { %v204_v31 = vpop.f32.mrf.mxu1  ;;  %v4428_v32 = vadd.f32 %v4400_v16, %v103_v30 }
  0xd0   :  { %v205_v33 = vadd.f32 %v4405_v17, %v204_v31 }
  0xd1   :  { %7139 = vst [vmem:[#allocation7_spill] sm:$0xff] %v4428_v32  ;;  %407 = vmatmul.f32.gmra.mxu0 %v4428_v32 }
  0xd2   :  { %607 = vmatmul.f32.gmra.mxu1 %v205_v33 }
  0xd3   :  { %672 = vmatmul.f32.gmra.mxu2 %v205_v33  ;;  %v369_v33 = vld [vmem:[%s6964_s3 + $0xb0] sm:$0xff] }
  0xd4   :  { %459 = vmatpush.xpose.msra.mxu0 %v369_v33 }
  0xd6   :  { %v4438_v36 = vpop.f32.mrf.mxu2  ;;  %v106_v37 = vpop.f32.mrf.mxu0 }
  0xd7   :  { %v207_v38 = vpop.f32.mrf.mxu1  ;;  %v4441_v39 = vadd.f32 %v4400_v16, %v106_v37  ;;  %v368_v37 = vld [vmem:[%s6964_s3 + $0xa8] sm:$0xff] }
  0xd8   :  { %v208_v40 = vadd.f32 %v4405_v17, %v207_v38  ;;  %460 = vmatpush.xpose.msra.mxu0 %v368_v37 }
  0xd9   :  { %7140 = vst [vmem:[#allocation8_spill] sm:$0xff] %v4441_v39  ;;  %410 = vmatmul.f32.gmra.mxu0 %v4441_v39 }
  0xda   :  { %610 = vmatmul.f32.gmra.mxu1 %v208_v40 }
  0xdb   :  { %675 = vmatmul.f32.gmra.mxu2 %v208_v40 }
  0xdc   :  { %461 = vmatpush.xpose.msra.mxu0 %v367_v42 }
  0xde   :  { %v4451_v43 = vpop.f32.mrf.mxu2  ;;  %v109_v44 = vpop.f32.mrf.mxu0 }
  0xdf   :  { %v210_v45 = vpop.f32.mrf.mxu1  ;;  %v4454_v46 = vadd.f32 %v4400_v16, %v109_v44 }
  0xe0   :  { %v211_v47 = vadd.f32 %v4405_v17, %v210_v45 }
  0xe1   :  { %7141 = vst [vmem:[#allocation9_spill] sm:$0xff] %v4454_v46  ;;  %413 = vmatmul.f32.gmra.mxu0 %v4454_v46 }
  0xe2   :  { %613 = vmatmul.f32.gmra.mxu1 %v211_v47 }
  0xe3   :  { %678 = vmatmul.f32.gmra.mxu2 %v211_v47  ;;  %v366_v47 = vld [vmem:[%s6964_s3 + $0x98] sm:$0xff] }
  0xe4   :  { %462 = vmatpush.xpose.msra.mxu0 %v366_v47 }
  0xe6   :  { %v4467_v51 = vpop.f32.mrf.mxu2  ;;  %v112_v52 = vpop.f32.mrf.mxu0 }
  0xe7   :  { %v213_v53 = vpop.f32.mrf.mxu1  ;;  %v4473_v55 = vadd.f32 %v4400_v16, %v112_v52 }
  0xe8   :  { %v214_v56 = vadd.f32 %v4405_v17, %v213_v53  ;;  %463 = vmatpush.xpose.msra.mxu0 %v365_v54 }
  0xe9   :  { %7142 = vst [vmem:[#allocation10_spill] sm:$0xff] %v4473_v55  ;;  %416 = vmatmul.f32.gmra.mxu0 %v4473_v55 }
  0xea   :  { %616 = vmatmul.f32.gmra.mxu1 %v214_v56 }
  0xeb   :  { %681 = vmatmul.f32.gmra.mxu2 %v214_v56 }
  0xec   :  { %464 = vmatpush.xpose.msra.mxu0 %v364_v58  ;;  %v4692_v58 = vld [vmem:[%s6970_s9 + $0x30] sm:$0xff] }
  0xee   :  { %v4486_v60 = vpop.f32.mrf.mxu2  ;;  %v115_v61 = vpop.f32.mrf.mxu0 }
  0xef   :  { %v216_v62 = vpop.f32.mrf.mxu1  ;;  %v4492_v0 = vadd.f32 %v4400_v16, %v115_v61 }
  0xf0   :  { %v217_v1 = vadd.f32 %v4405_v17, %v216_v62 }
  0xf1   :  { %7143 = vst [vmem:[#allocation11_spill] sm:$0xff] %v4492_v0  ;;  %419 = vmatmul.f32.gmra.mxu0 %v4492_v0 }
  0xf2   :  { %619 = vmatmul.f32.gmra.mxu1 %v217_v1 }
  0xf3   :  { %684 = vmatmul.f32.gmra.mxu2 %v217_v1  ;;  %v363_v1 = vld [vmem:[%s6964_s3 + $0x80] sm:$0xff] }
  0xf4   :  { %465 = vmatpush.xpose.msra.mxu0 %v363_v1 }
  0xf6   :  { %v4505_v5 = vpop.f32.mrf.mxu2  ;;  %v118_v6 = vpop.f32.mrf.mxu0 }
  0xf7   :  { %v219_v7 = vpop.f32.mrf.mxu1  ;;  %v4511_v9 = vadd.f32 %v4400_v16, %v118_v6  ;;  %v3892_v6 = vmov 2  }
  0xf8   :  { %v220_v10 = vadd.f32 %v4405_v17, %v219_v7  ;;  %3556 = vset.pattern.permute.xlu2 %v3892_v6  ;;  %v4615_v7 = vld [vmem:[%s6963_s2 + $0x2] ss:$0 sm:$0xff]  ;;  %3558 = vset.pattern.permute.xlu1 %v3892_v6 }
  0xf9   :  { %7144 = vst [vmem:[#allocation12_spill] sm:$0xff] %v4511_v9  ;;  %422 = vmatmul.f32.gmra.mxu0 %v4511_v9  ;;  %1344 = vperm.xlu1 %3558, %v4609_v4  }
  0xfa   :  { %622 = vmatmul.f32.gmra.mxu1 %v220_v10  ;;  %1332 = vperm.xlu2 %3556, %v4625_v13  }
  0xfb   :  { %687 = vmatmul.f32.gmra.mxu2 %v220_v10 }
  0xfe   :  { %v4524_v14 = vpop.f32.mrf.mxu2  ;;  %v121_v15 = vpop.f32.mrf.mxu0 }
  0xff   :  { %v222_v18 = vpop.f32.mrf.mxu1  ;;  %v4530_v21 = vadd.f32 %v4400_v16, %v121_v15 }
 0x100   :  { %v223_v23 = vadd.f32 %v4405_v17, %v222_v18 }
 0x101   :  { %7145 = vst [vmem:[#allocation13_spill] sm:$0xff] %v4530_v21  ;;  %425 = vmatmul.f32.gmra.mxu0 %v4530_v21  ;;  %1352 = vperm.xlu1 %3558, %v4637_v19  }
 0x102   :  { %625 = vmatmul.f32.gmra.mxu1 %v223_v23 }
 0x103   :  { %690 = vmatmul.f32.gmra.mxu2 %v223_v23 }
 0x106   :  { %v4543_v28 = vpop.f32.mrf.mxu2  ;;  %v124_v30 = vpop.f32.mrf.mxu0 }
 0x107   :  { %v225_v31 = vpop.f32.mrf.mxu1  ;;  %v4549_v34 = vadd.f32 %v4400_v16, %v124_v30  ;;  %v4646_v30 = vld [vmem:[%s6970_s9 + $0x8] sm:$0xff] }
 0x108   :  { %v226_v35 = vadd.f32 %v4405_v17, %v225_v31  ;;  %7158 = vst [vmem:[#allocation26_spill] sm:$0xff] %v4646_v30  ;;  %1336 = vperm.xlu2 %3556, %v4646_v30  }
 0x109   :  { %7146 = vst [vmem:[#allocation14_spill] sm:$0xff] %v4549_v34  ;;  %428 = vmatmul.f32.gmra.mxu0 %v4549_v34 }
 0x10a   :  { %628 = vmatmul.f32.gmra.mxu1 %v226_v35 }
 0x10b   :  { %693 = vmatmul.f32.gmra.mxu2 %v226_v35  ;;  %v4658_v35 = vld [vmem:[%s6970_s9 + $0x40] sm:$0xff] }
 0x10c   :  { %7160 = vst [vmem:[#allocation28_spill] sm:$0xff] %v4658_v35  ;;  %1364 = vperm.xlu1 %3558, %v4658_v35  }
 0x10e   :  { %v4556_v38 = vpop.f32.mrf.mxu2  ;;  %v127_v40 = vpop.f32.mrf.mxu0 }
 0x10f   :  { %v228_v41 = vpop.f32.mrf.mxu1  ;;  %v4562_v44 = vadd.f32 %v4400_v16, %v127_v40 }
 0x110   :  { %v229_v45 = vadd.f32 %v4405_v17, %v228_v41 }
 0x111   :  { %7147 = vst [vmem:[#allocation15_spill] sm:$0xff] %v4562_v44  ;;  %431 = vmatmul.f32.gmra.mxu0 %v4562_v44 }
 0x112   :  { %631 = vmatmul.f32.gmra.mxu1 %v229_v45 }
 0x113   :  { %696 = vmatmul.f32.gmra.mxu2 %v229_v45  ;;  %v4667_v45 = vld [vmem:[%s6970_s9 + $0x20] sm:$0xff] }
 0x114   :  { %7162 = vst [vmem:[#allocation30_spill] sm:$0xff] %v4667_v45  ;;  %1348 = vperm.xlu2 %3556, %v4667_v45  }
 0x116   :  { %v4577_v50 = vpop.f32.mrf.mxu2  ;;  %v130_v52 = vpop.f32.mrf.mxu0 }
 0x117   :  { %v231_v53 = vpop.f32.mrf.mxu1  ;;  %v4583_v56 = vadd.f32 %v4400_v16, %v130_v52 }
 0x118   :  { %v232_v57 = vadd.f32 %v4405_v17, %v231_v53  ;;  %v4679_v53 = vld [vmem:[%s6970_s9 + $0x58] sm:$0xff] }
 0x119   :  { %7149 = vst [vmem:[#allocation17_spill] sm:$0xff] %v4583_v56  ;;  %434 = vmatmul.f32.gmra.mxu0 %v4583_v56  ;;  %1376 = vperm.xlu1 %3558, %v4679_v53  }
 0x11a   :  { %634 = vmatmul.f32.gmra.mxu1 %v232_v57  ;;  %7163 = vst [vmem:[#allocation31_spill] sm:$0xff] %v4679_v53 }
 0x11b   :  { %699 = vmatmul.f32.gmra.mxu2 %v232_v57 }
 0x11c   :  { %1356 = vperm.xlu2 %3556, %v4692_v58  }
 0x11e   :  { %v4596_v61 = vpop.f32.mrf.mxu2  ;;  %v133_v62 = vpop.f32.mrf.mxu0 }
 0x11f   :  { %v234_v63 = vpop.f32.mrf.mxu1  ;;  %v4602_v2 = vadd.f32 %v4400_v16, %v133_v62  ;;  %v4697_v62 = vadd.f32 %v4615_v7, %v4412_v22 }
 0x120   :  { %v235_v3 = vadd.f32 %v4405_v17, %v234_v63  ;;  %v4705_v63 = vld [vmem:[%s6970_s9 + $0x60] sm:$0xff] }
 0x121   :  { %7151 = vst [vmem:[#allocation19_spill] sm:$0xff] %v4602_v2  ;;  %437 = vmatmul.f32.gmra.mxu0 %v4602_v2  ;;  %1203 = vperm.xlu0 %3554, %v4705_v63  }
 0x122   :  { %637 = vmatmul.f32.gmra.mxu1 %v235_v3  ;;  %7165 = vst [vmem:[#allocation33_spill] sm:$0xff] %v4697_v62  ;;  %1388 = vperm.xlu1 %3558, %v4572_v48   ;;  %v7185_v48 = vmov 1  }
 0x123   :  { %702 = vmatmul.f32.gmra.mxu2 %v235_v3  ;;  %7166 = vst [vmem:[#allocation34_spill] sm:$0xff] %v4705_v63 }
 0x126   :  { %v335_v8 = vpop.f32.mrf.mxu2  ;;  %v136_v11 = vpop.f32.mrf.mxu0 }
 0x127   :  { %v4620_v10 = vadd.f32 %v4615_v7, %v335_v8  ;;  %v237_v12 = vpop.f32.mrf.mxu1  ;;  %v4628_v15 = vadd.f32 %v4400_v16, %v136_v11  ;;  %v4718_v8 = vld [vmem:[%s6970_s9 + $0x48] sm:$0xff]  ;;  %v4723_v11 = vadd.f32 %v4615_v7, %v4425_v29 }
 0x128   :  { %v238_v18 = vadd.f32 %v4405_v17, %v237_v12  ;;  %1368 = vperm.xlu2 %3556, %v4718_v8   ;;  %v4730_v12 = vld [vmem:[%s6970_s9 + $0x68] sm:$0xff] }
 0x129   :  { %7153 = vst [vmem:[#allocation21_spill] sm:$0xff] %v4620_v10  ;;  %819 = vmatmul.f32.vlgmr.msra.gmra.mxu3 %v4620_v10  ;;  %440 = vmatmul.f32.gmra.mxu0 %v4628_v15  ;;  %v4739_v29 = vld [vmem:[%s6971_s10 + $0x8] sm:$0xff]  ;;  %v4803_v10 = vadd.f32 %v4615_v7, %v4467_v51 }
 0x12a   :  { %7155 = vst [vmem:[#allocation23_spill] sm:$0xff] %v4628_v15  ;;  %640 = vmatmul.f32.gmra.mxu1 %v238_v18  ;;  %1207 = vperm.xlu0 %3554, %v4730_v12  }
 0x12b   :  { %705 = vmatmul.f32.gmra.mxu2 %v238_v18  ;;  %7168 = vst [vmem:[#allocation36_spill] sm:$0xff] %v4723_v11 }
 0x12c   :  { %7176 = vst [vmem:[#allocation43_spill] sm:$0xff] %v4803_v10 }
 0x12e   :  { %v338_v23 = vpop.f32.mrf.mxu2  ;;  %v139_v26 = vpop.f32.mrf.mxu0 }
 0x12f   :  { %v4641_v24 = vadd.f32 %v4615_v7, %v338_v23  ;;  %v240_v27 = vpop.f32.mrf.mxu1  ;;  %v4649_v31 = vadd.f32 %v4400_v16, %v139_v26  ;;  %v6977_v23 = vmov 0  }
 0x130   :  { %v241_v33 = vadd.f32 %v4405_v17, %v240_v27  ;;  %3560 = vset.pattern.permute.xlu1 %v6977_v23  ;;  %1380 = vperm.xlu2 %3556, %v4705_v63   ;;  %v4790_v23 = vld [vmem:[%s6971_s10 + $0x30] sm:$0xff] }
 0x131   :  { %7157 = vst [vmem:[#allocation25_spill] sm:$0xff] %v4641_v24  ;;  %822 = vmatmul.f32.gmra.mxu3 %v4641_v24  ;;  %443 = vmatmul.f32.gmra.mxu0 %v4649_v31  ;;  %v866_v24 = vld [vmem:[%s6971_s10 + $0x10] sm:$0xff] }
 0x132   :  { %7159 = vst [vmem:[#allocation27_spill] sm:$0xff] %v4649_v31  ;;  %643 = vmatmul.f32.gmra.mxu1 %v241_v33  ;;  %1515 = vperm.xlu1 %3560, %v4739_v29  }
 0x133   :  { %708 = vmatmul.f32.gmra.mxu2 %v241_v33  ;;  %v4749_v33 = vadd.f32 %v4615_v7, %v4438_v36  ;;  %3557 = vset.pattern.permute.xlu0 %v3892_v6  ;;  %v4765_v36 = vld [vmem:[%s6971_s10 + $0x18] sm:$0xff]  ;;  %v4775_v6 = vadd.f32 %v4615_v7, %v4451_v43 }
 0x135   :  { %7170 = vst [vmem:[#allocation38_spill] sm:$0xff] %v4749_v33 }
 0x136   :  { %v341_v37 = vpop.f32.mrf.mxu2  ;;  %v142_v41 = vpop.f32.mrf.mxu0  ;;  %7173 = vst [vmem:[#allocation41_spill] sm:$0xff] %v4775_v6 }
 0x137   :  { %v4662_v40 = vadd.f32 %v4615_v7, %v341_v37  ;;  %v243_v42 = vpop.f32.mrf.mxu1  ;;  %v4670_v47 = vadd.f32 %v4400_v16, %v142_v41  ;;  %v4756_v37 = vld [vmem:[%s6970_s9 + $0x10] sm:$0xff] }
 0x138   :  { %v244_v52 = vadd.f32 %v4405_v17, %v243_v42  ;;  %7171 = vst [vmem:[#allocation39_spill] sm:$0xff] %v4756_v37  ;;  %1340 = vperm.xlu0 %3557, %v4756_v37   ;;  %1392 = vperm.xlu2 %3556, %v4593_v59   ;;  %v4865_v59 = vld [vmem:[%s6971_s10 + $0x78] sm:$0xff] }
 0x139   :  { %7161 = vst [vmem:[#allocation29_spill] sm:$0xff] %v4662_v40  ;;  %825 = vmatmul.f32.gmra.mxu3 %v4662_v40  ;;  %446 = vmatmul.f32.gmra.mxu0 %v4670_v47  ;;  %v7175_v40 = vmov 0  }
 0x13a   :  { %646 = vmatmul.f32.gmra.mxu1 %v244_v52  ;;  %1525 = vperm.xlu1 %3560, %v4765_v36  }
 0x13b   :  { %711 = vmatmul.f32.gmra.mxu2 %v244_v52 }
 0x13e   :  { %v344_v54 = vpop.f32.mrf.mxu2  ;;  %v4685_v17 = vpop.f32.mrf.mxu0 }
 0x13f   :  { %v4683_v16 = vadd.f32 %v4615_v7, %v344_v54  ;;  %v4687_v57 = vpop.f32.mrf.mxu1  ;;  %v4782_v54 = vld [vmem:[%s6970_s9 + $0x38] sm:$0xff] }
 0x140   :  { %1360 = vperm.xlu0 %3557, %v4782_v54   ;;  %3561 = vset.pattern.permute.xlu2 %v7175_v40 }
 0x141   :  { %7164 = vst [vmem:[#allocation32_spill] sm:$0xff] %v4683_v16  ;;  %828 = vmatmul.f32.gmra.mxu3 %v4683_v16  ;;  %466 = vmatmul.f32.vlgmr.msra.gmra.mxu0 %v4408_v20 }
 0x142   :  { %1540 = vperm.xlu1 %3560, %v4790_v23   ;;  %1520 = vperm.xlu2 %3561, %v866_v24  }
 0x143   :  { %783 = vmatmul.f32.vlgmr.msra.gmra.mxu2 %v4697_v62 }
 0x146   :  { %v4708_v1 = vpop.f32.mrf.mxu2  ;;  %v4711_v3 = vpop.f32.mrf.mxu0 }
 0x147   :  { %7167 = vst [vmem:[#allocation35_spill] sm:$0xff] %v4708_v1  ;;  %v4713_v22 = vpop.f32.mrf.mxu1 }
 0x149   :  { %469 = vmatmul.f32.gmra.mxu0 %v4415_v25 }
 0x14b   :  { %786 = vmatmul.f32.gmra.mxu2 %v4723_v11  ;;  %v4818_v11 = vld [vmem:[%s6971_s10 + $0x48] sm:$0xff] }
 0x14c   :  { %1555 = vperm.xlu1 %3560, %v4818_v11  }
 0x14e   :  { %v4733_v18 = vpop.f32.mrf.mxu2  ;;  %v4741_v26 = vpop.f32.mrf.mxu0 }
 0x14f   :  { %7169 = vst [vmem:[#allocation37_spill] sm:$0xff] %v4733_v18  ;;  %v4743_v27 = vpop.f32.mrf.mxu1 }
 0x151   :  { %472 = vmatmul.f32.gmra.mxu0 %v4428_v32  ;;  %v4840_v32 = vld [vmem:[%s6971_s10 + $0x60] sm:$0xff] }
 0x153   :  { %789 = vmatmul.f32.gmra.mxu2 %v4749_v33 }
 0x154   :  { %1570 = vperm.xlu1 %3560, %v4840_v32  }
 0x156   :  { %v4760_v41 = vpop.f32.mrf.mxu2  ;;  %v4767_v42 = vpop.f32.mrf.mxu0 }
 0x157   :  { %7172 = vst [vmem:[#allocation40_spill] sm:$0xff] %v4760_v41  ;;  %v4769_v52 = vpop.f32.mrf.mxu1  ;;  %v869_v41 = vld [vmem:[%s6971_s10 + $0x28] sm:$0xff] }
 0x159   :  { %475 = vmatmul.f32.gmra.mxu0 %v4441_v39 }
 0x15b   :  { %792 = vmatmul.f32.gmra.mxu2 %v4775_v6  ;;  %v4810_v6 = vld [vmem:[%s6970_s9 + $0x50] sm:$0xff] }
 0x15c   :  { %7177 = vst [vmem:[#allocation44_spill] sm:$0xff] %v4810_v6  ;;  %1372 = vperm.xlu0 %3557, %v4810_v6   ;;  %1585 = vperm.xlu1 %3560, %v4865_v59  }
 0x15e   :  { %v4785_v49 = vpop.f32.mrf.mxu2  ;;  %v4792_v43 = vpop.f32.mrf.mxu0 }
 0x15f   :  { %7174 = vst [vmem:[#allocation42_spill] sm:$0xff] %v4785_v49  ;;  %v4794_v16 = vpop.f32.mrf.mxu1 }
 0x161   :  { %478 = vmatmul.f32.gmra.mxu0 %v4454_v46  ;;  %v4830_v46 = vadd.f32 %v4615_v7, %v4486_v60  ;;  %v4850_v60 = vld [vmem:[%s6971_s10 + $0x38] sm:$0xff] }
 0x163   :  { %795 = vmatmul.f32.gmra.mxu2 %v4803_v10  ;;  %v868_v10 = vld [vmem:[%s6971_s10 + $0x20] sm:$0xff]  ;;  %7179 = vst [vmem:[#allocation46_spill] sm:$0xff] %v4830_v46 }
 0x164   :  { %1530 = vperm.xlu2 %3561, %v868_v10   ;;  %1384 = vperm.xlu0 %3557, %v4730_v12  }
 0x165   :  { %3564 = vset.pattern.permute.xlu1 %v7185_v48 }
 0x166   :  { %v4813_v33 = vpop.f32.mrf.mxu2  ;;  %v4820_v51 = vpop.f32.mrf.mxu0  ;;  %1710 = vperm.xlu1 %3564, %v866_v24   ;;  %v872_v24 = vld [vmem:[%s6971_s10 + $0x40] sm:$0xff] }
 0x167   :  { %7178 = vst [vmem:[#allocation45_spill] sm:$0xff] %v4813_v33  ;;  %v4822_v62 = vpop.f32.mrf.mxu1 }
 0x169   :  { %481 = vmatmul.f32.gmra.mxu0 %v4473_v55 }
 0x16b   :  { %798 = vmatmul.f32.gmra.mxu2 %v4830_v46  ;;  %v4854_v46 = vadd.f32 %v4615_v7, %v4505_v5  ;;  %v864_v5 = vld [vmem:[%s6971_s10] sm:$0xff] }
 0x16c   :  { %1545 = vperm.xlu2 %3561, %v4850_v60   ;;  %3559 = vset.pattern.permute.xlu0 %v7175_v40 }
 0x16d   :  { %7181 = vst [vmem:[#allocation48_spill] sm:$0xff] %v4854_v46  ;;  %1510 = vperm.xlu0 %3559, %v864_v5  }
 0x16e   :  { %v4835_v39 = vpop.f32.mrf.mxu2  ;;  %v4842_v25 = vpop.f32.mrf.mxu0  ;;  %1718 = vperm.xlu1 %3564, %v868_v10  }
 0x16f   :  { %7180 = vst [vmem:[#allocation47_spill] sm:$0xff] %v4835_v39  ;;  %v4844_v20 = vpop.f32.mrf.mxu1 }
 0x171   :  { %484 = vmatmul.f32.gmra.mxu0 %v4492_v0  ;;  %v4882_v0 = vadd.f32 %v4615_v7, %v4524_v14  ;;  %v4900_v14 = vld [vmem:[%s6971_s10 + $0x68] sm:$0xff] }
 0x173   :  { %801 = vmatmul.f32.gmra.mxu2 %v4854_v46  ;;  %v4878_v46 = vld [vmem:[%s6971_s10 + $0x50] sm:$0xff]  ;;  %7183 = vst [vmem:[#allocation50_spill] sm:$0xff] %v4882_v0 }
 0x174   :  { %1560 = vperm.xlu2 %3561, %v4878_v46  }
 0x175   :  { %1535 = vperm.xlu0 %3559, %v869_v41  }
 0x176   :  { %v4860_v55 = vpop.f32.mrf.mxu2  ;;  %v4870_v63 = vpop.f32.mrf.mxu0  ;;  %3565 = vset.pattern.permute.xlu1 %v7175_v40 }
 0x177   :  { %7182 = vst [vmem:[#allocation49_spill] sm:$0xff] %v4860_v55  ;;  %v4872_v1 = vpop.f32.mrf.mxu1  ;;  %963 = vperm.xlu1 %3565, %v4625_v13  }
 0x179   :  { %487 = vmatmul.f32.gmra.mxu0 %v4511_v9 }
 0x17b   :  { %804 = vmatmul.f32.gmra.mxu2 %v4882_v0  ;;  %v4904_v0 = vadd.f32 %v4615_v7, %v4543_v28  ;;  %v4920_v28 = vadd.f32 %v4615_v7, %v4556_v38  ;;  %v4940_v38 = vadd.f32 %v4615_v7, %v4577_v50  ;;  %v4958_v50 = vadd.f32 %v4615_v7, %v4596_v61 }
 0x17c   :  { %1575 = vperm.xlu2 %3561, %v4900_v14  }
 0x17d   :  { %7186 = vst [vmem:[#allocation52_spill] sm:$0xff] %v4904_v0  ;;  %1550 = vperm.xlu0 %3559, %v872_v24  }
 0x17e   :  { %v4887_v18 = vpop.f32.mrf.mxu2  ;;  %v4892_v49 = vpop.f32.mrf.mxu0  ;;  %7188 = vst [vmem:[#allocation54_spill] sm:$0xff] %v4920_v28 }
 0x17f   :  { %7184 = vst [vmem:[#allocation51_spill] sm:$0xff] %v4887_v18  ;;  %v4894_v6 = vpop.f32.mrf.mxu1  ;;  %3567 = vset.pattern.permute.xlu1 %v7185_v48 }
 0x180   :  { %7190 = vst [vmem:[#allocation56_spill] sm:$0xff] %v4940_v38  ;;  %1734 = vperm.xlu1 %3567, %v872_v24  }
 0x181   :  { %490 = vmatmul.f32.gmra.mxu0 %v4530_v21  ;;  %v4930_v21 = vld [vmem:[%s6971_s10 + $0x58] sm:$0xff]  ;;  %7191 = vst [vmem:[#allocation57_spill] sm:$0xff] %v4958_v50 }
 0x183   :  { %807 = vmatmul.f32.gmra.mxu2 %v4904_v0 }
 0x184   :  { %3562 = vset.pattern.permute.xlu2 %v7185_v48 }
 0x185   :  { %1702 = vperm.xlu2 %3562, %v864_v5   ;;  %1565 = vperm.xlu0 %3559, %v4930_v21  }
 0x186   :  { %v4909_v9 = vpop.f32.mrf.mxu2  ;;  %v4914_v33 = vpop.f32.mrf.mxu0 }
 0x187   :  { %7187 = vst [vmem:[#allocation53_spill] sm:$0xff] %v4909_v9  ;;  %v4916_v39 = vpop.f32.mrf.mxu1 }
 0x188   :  { %1738 = vperm.xlu1 %3567, %v4818_v11  }
 0x189   :  { %493 = vmatmul.f32.gmra.mxu0 %v4549_v34 }
 0x18b   :  { %810 = vmatmul.f32.gmra.mxu2 %v4920_v28  ;;  %v4951_v28 = vld [vmem:[%s6971_s10 + $0x70] sm:$0xff] }
 0x18d   :  { %1714 = vperm.xlu2 %3562, %v4765_v36   ;;  %1580 = vperm.xlu0 %3559, %v4951_v28  }
 0x18e   :  { %v4925_v0 = vpop.f32.mrf.mxu2  ;;  %v4932_v55 = vpop.f32.mrf.mxu0 }
 0x18f   :  { %7189 = vst [vmem:[#allocation55_spill] sm:$0xff] %v4925_v0  ;;  %v4934_v10 = vpop.f32.mrf.mxu1 }
 0x190   :  { %3570 = vset.pattern.permute.xlu1 %v7175_v40 }
 0x191   :  { %496 = vmatmul.f32.gmra.mxu0 %v4562_v44  ;;  %983 = vperm.xlu1 %3570, %v4667_v45  }
 0x193   :  { %813 = vmatmul.f32.gmra.mxu2 %v4940_v38 }
 0x195   :  { %1722 = vperm.xlu2 %3562, %v869_v41   ;;  %3563 = vset.pattern.permute.xlu0 %v7185_v48 }
 0x196   :  { %v4946_v5 = vpop.f32.mrf.mxu2  ;;  %v435_v34 = vpop.f32.mrf.mxu0  ;;  %1706 = vperm.xlu0 %3563, %v4739_v29  }
 0x197   :  { %v4953_v18 = vpop.f32.mrf.mxu1 }
 0x199   :  { %499 = vmatmul.f32.gmra.mxu0 %v4583_v56  ;;  %988 = vperm.xlu1 %3570, %v4637_v19  }
 0x19b   :  { %816 = vmatmul.f32.gmra.mxu2 %v4958_v50  ;;  %v4993_v50 = vld [vmem:[%s6965_s4 + $0x2] sm:$0x3] }
 0x19c   :  { %v5003_v56 = vperm.slane %v4993_v50, 0 }
 0x19d   :  { %1730 = vperm.xlu2 %3562, %v4850_v60  }
 0x19e   :  { %v4963_v36 = vpop.f32.mrf.mxu2  ;;  %v438_v38 = vpop.f32.mrf.mxu0  ;;  %1726 = vperm.xlu0 %3563, %v4790_v23   ;;  %v4986_v23 = vld [vmem:[%s6965_s4] sm:$0x3] }
 0x19f   :  { %v638_v44 = vpop.f32.mrf.mxu1  ;;  %7192 = vst [vmem:[#allocation58_spill] sm:$0xff] %v4986_v23 }
 0x1a1   :  { %502 = vmatmul.f32.gmra.mxu0 %v4602_v2  ;;  %3573 = vset.pattern.permute.xlu1 %v7185_v48 }
 0x1a2   :  { %1754 = vperm.xlu1 %3573, %v4900_v14  }
 0x1a5   :  { %3568 = vset.pattern.permute.xlu2 %v7175_v40 }
 0x1a6   :  { %v4970_v61 = vpop.f32.mrf.mxu2  ;;  %v441_v7 = vpop.f32.mrf.mxu0  ;;  %973 = vperm.xlu2 %3568, %v4756_v37   ;;  %3566 = vset.pattern.permute.xlu0 %v7175_v40 }
 0x1a7   :  { %v641_v24 = vpop.f32.mrf.mxu1  ;;  %968 = vperm.xlu0 %3566, %v4646_v30  }
 0x1a9   :  { %505 = vmatmul.f32.gmra.mxu0 %v4628_v15  ;;  %v4997_v15 = vperm.slane %v4986_v23, 0 }
 0x1aa   :  { %1758 = vperm.xlu1 %3573, %v4951_v28  }
 0x1ab   :  { %v442_v37 = vadd.f32 %v441_v7, %v4997_v15  ;;  %v427_v14 = vadd.f32 %v4892_v49, %v4997_v15  ;;  %v624_v49 = vadd.f32 %v4872_v1, %v5003_v56 }
 0x1ac   :  { %v4977_v29 = vpop.f32.mrf.mxu3 }
 0x1ae   :  { %v4980_v11 = vpop.f32.mrf.mxu2  ;;  %v444_v41 = vpop.f32.mrf.mxu0  ;;  %978 = vperm.xlu2 %3568, %v4609_v4   ;;  %v439_v4 = vadd.f32 %v438_v38, %v4997_v15 }
 0x1af   :  { %v644_v60 = vpop.f32.mrf.mxu1  ;;  %v445_v45 = vadd.f32 %v444_v41, %v4997_v15  ;;  %3569 = vset.pattern.permute.xlu0 %v7185_v48  ;;  %v642_v41 = vadd.f32 %v641_v24, %v5003_v56  ;;  %v627_v24 = vadd.f32 %v4894_v6, %v5003_v56 }
 0x1b0   :  { %v645_v35 = vadd.f32 %v644_v60, %v5003_v56  ;;  %1742 = vperm.xlu0 %3569, %v4878_v46   ;;  %v639_v60 = vadd.f32 %v638_v44, %v5003_v56  ;;  %v539_v46 = vmax.f32 %v439_v4, 0.0 }
 0x1b1   :  { %508 = vmatmul.f32.gmra.mxu0 %v4649_v31  ;;  %v543_v53 = vmax.f32 %v445_v45, 0.0  ;;  %v731_v1 = vmax.f32 %v627_v24, 0.0 }
 0x1b2   :  { %v743_v38 = vmax.f32 %v645_v35, 0.0  ;;  %v739_v4 = vmax.f32 %v639_v60, 0.0  ;;  %3576 = vset.pattern.permute.xlu1 %v7175_v40 }
 0x1b3   :  { %1008 = vperm.xlu1 %3576, %v4718_v8  }
 0x1b4   :  { %v4999_v2 = vpop.f32.mrf.mxu3 }
 0x1b6   :  { %v5006_v31 = vpop.f32.mrf.mxu2  ;;  %v447_v30 = vpop.f32.mrf.mxu0  ;;  %3571 = vset.pattern.permute.xlu2 %v7185_v48 }
 0x1b7   :  { %v647_v13 = vpop.f32.mrf.mxu1  ;;  %v448_v19 = vadd.f32 %v447_v30, %v4997_v15  ;;  %v436_v30 = vadd.f32 %v435_v34, %v4997_v15  ;;  %v636_v34 = vadd.f32 %v4953_v18, %v5003_v56  ;;  %1746 = vperm.xlu2 %3571, %v4930_v21  }
 0x1b8   :  { %v648_v23 = vadd.f32 %v647_v13, %v5003_v56  ;;  %v541_v13 = vmax.f32 %v442_v37, 0.0  ;;  %v741_v37 = vmax.f32 %v642_v41, 0.0  ;;  %3572 = vset.pattern.permute.xlu0 %v7175_v40 }
 0x1b9   :  { %v545_v9 = vmax.f32 %v448_v19, 0.0  ;;  %511 = vmatmul.f32.gmra.mxu0 %v4670_v47  ;;  %v433_v19 = vadd.f32 %v4932_v55, %v4997_v15  ;;  %v537_v44 = vmax.f32 %v436_v30, 0.0  ;;  %v633_v55 = vadd.f32 %v4934_v10, %v5003_v56  ;;  %993 = vperm.xlu0 %3572, %v4692_v58  }
 0x1ba   :  { %v745_v0 = vmax.f32 %v648_v23, 0.0  ;;  %v737_v18 = vmax.f32 %v636_v34, 0.0  ;;  %v424_v30 = vadd.f32 %v4870_v63, %v4997_v15  ;;  %v421_v63 = vadd.f32 %v4842_v25, %v4997_v15 }
 0x1bb   :  { %896 = vmatpush.msrb.mxu0 %v545_v9  ;;  %3516 = vmatpush.msrb.mxu3 %v545_v9  ;;  %v535_v35 = vmax.f32 %v433_v19, 0.0  ;;  %v531_v19 = vmax.f32 %v427_v14, 0.0  ;;  %v618_v25 = vadd.f32 %v4822_v62, %v5003_v56  ;;  %v412_v62 = vadd.f32 %v4767_v42, %v4997_v15 }
 0x1bc   :  { %v826_v7 = vpop.f32.mrf.mxu3  ;;  %1266 = vmatpush.msrb.mxu2 %v745_v0  ;;  %v430_v0 = vadd.f32 %v4914_v33, %v4997_v15  ;;  %v5040_v33 = vld [vmem:[%s6965_s4 + $0x4] ss:$0 sm:$0xff]  ;;  %v529_v28 = vmax.f32 %v424_v30, 0.0  ;;  %v609_v42 = vadd.f32 %v4743_v27, %v5003_v56  ;;  %v403_v27 = vadd.f32 %v4685_v17, %v4997_v15 }
 0x1bd   :  { %897 = vmatpush.msrb.mxu0 %v543_v53  ;;  %3517 = vmatpush.msrb.mxu3 %v543_v53  ;;  %v630_v53 = vadd.f32 %v4916_v39, %v5003_v56  ;;  %v735_v39 = vmax.f32 %v633_v55, 0.0  ;;  %v827_v23 = vadd.f32 %v5040_v33, %v826_v7  ;;  %v824_v6 = vadd.f32 %v5040_v33, %v4999_v2 }
 0x1be   :  { %v5023_v45 = vpop.f32.mrf.mxu2  ;;  %1267 = vmatpush.msrb.mxu2 %v743_v38  ;;  %v5027_v9 = vpop.f32.mrf.mxu0  ;;  %v533_v10 = vmax.f32 %v430_v0, 0.0  ;;  %v821_v34 = vadd.f32 %v5040_v33, %v4977_v29  ;;  %v729_v0 = vmax.f32 %v624_v49, 0.0  ;;  %v527_v29 = vmax.f32 %v421_v63, 0.0 }
 0x1bf   :  { %898 = vmatpush.msrb.mxu0 %v541_v13  ;;  %3518 = vmatpush.msrb.mxu3 %v541_v13  ;;  %v733_v60 = vmax.f32 %v630_v53, 0.0  ;;  %v846_v2 = vmax.f32 %v827_v23, 0.0  ;;  %v615_v55 = vadd.f32 %v4794_v16, %v5003_v56  ;;  %v409_v16 = vadd.f32 %v4741_v26, %v4997_v15 }
 0x1c0   :  { %1268 = vmatpush.msrb.mxu2 %v741_v37  ;;  %v418_v37 = vadd.f32 %v4820_v51, %v4997_v15  ;;  %1750 = vperm.xlu2 %3571, %v4840_v32   ;;  %v521_v24 = vmax.f32 %v412_v62, 0.0  ;;  %v603_v32 = vadd.f32 %v4687_v57, %v5003_v56 }
 0x1c1   :  { %899 = vmatpush.msrb.mxu0 %v539_v46  ;;  %3519 = vmatpush.msrb.mxu3 %v539_v46  ;;  %v621_v46 = vadd.f32 %v4844_v20, %v5003_v56  ;;  %v415_v20 = vadd.f32 %v4792_v43, %v4997_v15  ;;  %v612_v43 = vadd.f32 %v4769_v52, %v5003_v56  ;;  %v519_v23 = vmax.f32 %v409_v16, 0.0 }
 0x1c2   :  { %1269 = vmatpush.msrb.mxu2 %v739_v4  ;;  %v844_v4 = vmax.f32 %v821_v34, 0.0  ;;  %v406_v52 = vadd.f32 %v4711_v3, %v4997_v15  ;;  %3575 = vset.pattern.permute.xlu0 %v7185_v48  ;;  %v5098_v3 = vperm.slane %v4993_v50, 1  ;;  %v715_v57 = vmax.f32 %v603_v32, 0.0 }
 0x1c3   :  { %900 = vmatpush.msrb.mxu0 %v537_v44  ;;  %3520 = vmatpush.msrb.mxu3 %v537_v44  ;;  %v845_v44 = vmax.f32 %v824_v6, 0.0  ;;  %v727_v51 = vmax.f32 %v621_v46, 0.0  ;;  %v721_v26 = vmax.f32 %v612_v43, 0.0  ;;  %v7199_v43 = vld [vmem:[#allocation49_spill] sm:$0xff] }
 0x1c4   :  { %v829_v21 = vpop.f32.mrf.mxu3  ;;  %1270 = vmatpush.msrb.mxu2 %v737_v18  ;;  %v725_v18 = vmax.f32 %v618_v25, 0.0  ;;  %1762 = vperm.xlu0 %3575, %v4865_v59   ;;  %v713_v15 = vadd.f32 %v5023_v45, %v5098_v3  ;;  %v880_v59 = vld [vmem:[%s6968_s7] sm:$0xff]  ;;  %v710_v50 = vadd.f32 %v5006_v31, %v5098_v3  ;;  %v707_v6 = vadd.f32 %v4980_v11, %v5098_v3 }
 0x1c5   :  { %v830_v41 = vadd.f32 %v5040_v33, %v829_v21  ;;  %901 = vmatpush.msrb.mxu0 %v535_v35  ;;  %3521 = vmatpush.msrb.mxu3 %v535_v35  ;;  %v525_v35 = vmax.f32 %v418_v37, 0.0  ;;  %v723_v21 = vmax.f32 %v615_v55, 0.0  ;;  %v892_v45 = vld [vmem:[%s6968_s7 + $0x120] sm:$0xff]  ;;  %v704_v31 = vadd.f32 %v4970_v61, %v5098_v3  ;;  %v7193_v37 = vld [vmem:[#allocation55_spill] sm:$0xff] }
 0x1c6   :  { %v5052_v13 = vpop.f32.mrf.mxu2  ;;  %1271 = vmatpush.msrb.mxu2 %v735_v39  ;;  %v5058_v38 = vpop.f32.mrf.mxu0  ;;  %v606_v39 = vadd.f32 %v4713_v22, %v5003_v56  ;;  %v517_v22 = vmax.f32 %v406_v52, 0.0  ;;  %v515_v56 = vmax.f32 %v403_v27, 0.0  ;;  %v744_v63 = vmax.f32 %v710_v50, 0.0  ;;  %v7197_v55 = vld [vmem:[#allocation51_spill] sm:$0xff] }
 0x1c7   :  { %v847_v7 = vmax.f32 %v830_v41, 0.0  ;;  %902 = vmatpush.msrb.mxu0 %v533_v10  ;;  %3522 = vmatpush.msrb.mxu3 %v533_v10  ;;  %v523_v10 = vmax.f32 %v415_v20, 0.0  ;;  %v719_v41 = vmax.f32 %v609_v42, 0.0  ;;  %v701_v11 = vadd.f32 %v4963_v36, %v5098_v3  ;;  %v1251_v36 = vld [vmem:[%s6968_s7 + $0x28] sm:$0xff]  ;;  %v7195_v20 = vld [vmem:[#allocation31_spill] sm:$0xff] }
 0x1c8   :  { %1272 = vmatpush.msrb.mxu2 %v733_v60  ;;  %v717_v49 = vmax.f32 %v606_v39, 0.0  ;;  %v1250_v60 = vld [vmem:[%s6968_s7 + $0x10] sm:$0xff]  ;;  %3574 = vset.pattern.permute.xlu2 %v7175_v40  ;;  %v742_v46 = vmax.f32 %v707_v6, 0.0  ;;  %v698_v61 = vadd.f32 %v4946_v5, %v5098_v3  ;;  %v740_v34 = vmax.f32 %v704_v31, 0.0  ;;  %v7194_v5 = vld [vmem:[#allocation53_spill] sm:$0xff]  ;;  %v895_v6 = vld [vmem:[%s6968_s7 + $0x168] sm:$0xff] }
 0x1c9   :  { %1089 = vmatpush.msra.mxu1 %v847_v7  ;;  %903 = vmatpush.msrb.mxu0 %v531_v19  ;;  %v746_v7 = vmax.f32 %v713_v15, 0.0  ;;  %v692_v25 = vadd.f32 %v7194_v5, %v5098_v3  ;;  %v894_v42 = vld [vmem:[%s6968_s7 + $0x150] sm:$0xff]  ;;  %v7206_v31 = vld [vmem:[#allocation37_spill] sm:$0xff] }
 0x1ca   :  { %3523 = vmatpush.msrb.mxu3 %v531_v19  ;;  %1273 = vmatpush.msrb.mxu2 %v731_v1  ;;  %v7200_v52 = vld [vmem:[#allocation47_spill] sm:$0xff] }
 0x1cb   :  { %1090 = vmatpush.msra.mxu1 %v846_v2  ;;  %904 = vmatpush.msrb.mxu0 %v529_v28  ;;  %v881_v2 = vld [vmem:[%s6968_s7 + $0x18] sm:$0xff]  ;;  %v732_v16 = vmax.f32 %v692_v25, 0.0  ;;  %v7210_v25 = vld [vmem:[#allocation18_spill] sm:$0xff] }
 0x1cc   :  { %3524 = vmatpush.msrb.mxu3 %v529_v28  ;;  %1274 = vmatpush.msrb.mxu2 %v729_v0  ;;  %v738_v28 = vmax.f32 %v701_v11, 0.0  ;;  %v736_v0 = vmax.f32 %v698_v61, 0.0  ;;  %v7207_v11 = vld [vmem:[#allocation35_spill] sm:$0xff] }
 0x1cd   :  { %1091 = vmatpush.msra.mxu1 %v845_v44  ;;  %905 = vmatpush.msrb.mxu0 %v527_v29 }
 0x1ce   :  { %v5077_v53 = vpop.f32.mrf.mxu2  ;;  %3525 = vmatpush.msrb.mxu3 %v527_v29  ;;  %1275 = vmatpush.msrb.mxu2 %v727_v51  ;;  %v5081_v14 = vpop.f32.mrf.mxu0  ;;  %v7196_v29 = vld [vmem:[#allocation28_spill] sm:$0xff]  ;;  %v689_v51 = vadd.f32 %v7197_v55, %v5098_v3 }
 0x1cf   :  { %1092 = vmatpush.msra.mxu1 %v844_v4  ;;  %906 = vmatpush.msrb.mxu0 %v525_v35  ;;  %v7211_v55 = vld [vmem:[#allocation20_spill] sm:$0xff] }
 0x1d0   :  { %3526 = vmatpush.msrb.mxu3 %v525_v35  ;;  %1276 = vmatpush.msrb.mxu2 %v725_v18  ;;  %v7198_v35 = vld [vmem:[#allocation39_spill] sm:$0xff]  ;;  %v686_v18 = vadd.f32 %v7199_v43, %v5098_v3  ;;  %v730_v39 = vmax.f32 %v689_v51, 0.0  ;;  %v885_v51 = vld [vmem:[%s6968_s7 + $0x78] sm:$0xff] }
 0x1d1   :  { %907 = vmatpush.msrb.mxu0 %v523_v10  ;;  %998 = vperm.xlu2 %3574, %v4782_v54  }
 0x1d2   :  { %3527 = vmatpush.msrb.mxu3 %v523_v10  ;;  %1277 = vmatpush.msrb.mxu2 %v723_v21  ;;  %v882_v10 = vld [vmem:[%s6968_s7 + $0x30] sm:$0xff]  ;;  %v1252_v21 = vld [vmem:[%s6968_s7 + $0x40] sm:$0xff] }
 0x1d3   :  { %908 = vmatpush.msrb.mxu0 %v521_v24  ;;  %3577 = vset.pattern.permute.xlu0 %v7175_v40  ;;  %v893_v40 = vld [vmem:[%s6968_s7 + $0x138] sm:$0xff] }
 0x1d4   :  { %3528 = vmatpush.msrb.mxu3 %v521_v24  ;;  %1278 = vmatpush.msrb.mxu2 %v721_v26  ;;  %v683_v24 = vadd.f32 %v7200_v52, %v5098_v3  ;;  %v7201_v26 = vld [vmem:[#allocation45_spill] sm:$0xff] }
 0x1d5   :  { %909 = vmatpush.msrb.mxu0 %v519_v23  ;;  %1028 = vperm.xlu0 %3577, %v4730_v12   ;;  %v695_v12 = vadd.f32 %v7193_v37, %v5098_v3  ;;  %v680_v27 = vadd.f32 %v7201_v26, %v5098_v3  ;;  %v7209_v37 = vld [vmem:[#allocation22_spill] sm:$0xff] }
 0x1d6   :  { %v5101_v30 = vpop.f32.mrf.mxu2  ;;  %3529 = vmatpush.msrb.mxu3 %v519_v23  ;;  %1279 = vmatpush.msrb.mxu2 %v719_v41  ;;  %v5105_v17 = vpop.f32.mrf.mxu0  ;;  %v728_v23 = vmax.f32 %v686_v18, 0.0  ;;  %v7202_v41 = vld [vmem:[#allocation16_spill] sm:$0xff]  ;;  %v7212_v18 = vld [vmem:[#allocation26_spill] sm:$0xff] }
 0x1d7   :  { %910 = vmatpush.msrb.mxu0 %v517_v22  ;;  %1018 = vperm.xlu1 %3576, %v7195_v20   ;;  %v734_v4 = vmax.f32 %v695_v12, 0.0 }
 0x1d8   :  { %3530 = vmatpush.msrb.mxu3 %v517_v22  ;;  %1280 = vmatpush.msrb.mxu2 %v717_v49  ;;  %v7203_v22 = vld [vmem:[#allocation44_spill] sm:$0xff]  ;;  %v7204_v49 = vld [vmem:[#allocation42_spill] sm:$0xff] }
 0x1d9   :  { %911 = vmatpush.msrb.mxu0 %v515_v56  ;;  %1003 = vperm.xlu2 %3574, %v7196_v29   ;;  %v677_v15 = vadd.f32 %v7204_v49, %v5098_v3 }
 0x1da   :  { %3531 = vmatpush.msrb.mxu3 %v515_v56  ;;  %1281 = vmatpush.msrb.mxu2 %v715_v57  ;;  %v726_v56 = vmax.f32 %v683_v24, 0.0  ;;  %v7205_v57 = vld [vmem:[#allocation40_spill] sm:$0xff]  ;;  %v887_v24 = vld [vmem:[%s6968_s7 + $0xa8] sm:$0xff] }
 0x1db   :  { %912 = vmatmul.f32.vlgmr.msrb.gmra.mxu0 %v880_v59  ;;  %948 = vmatmul.f32.vlgmr.msrb.gmra.mxu3 %v892_v45  ;;  %v674_v50 = vadd.f32 %v7205_v57, %v5098_v3  ;;  %v724_v45 = vmax.f32 %v680_v27, 0.0 }
 0x1dc   :  { %1282 = vmatmul.f32.vlgmr.msrb.gmra.mxu2 %v1250_v60  ;;  %1636 = vmatpush.msra.mxu0 %v746_v7  ;;  %v883_v60 = vld [vmem:[%s6968_s7 + $0x48] sm:$0xff]  ;;  %v1253_v7 = vld [vmem:[%s6968_s7 + $0x58] sm:$0xff] }
 0x1dd   :  { %3580 = vset.pattern.permute.xlu0 %v7185_v48  ;;  %v720_v61 = vmax.f32 %v674_v50, 0.0  ;;  %v889_v50 = vld [vmem:[%s6968_s7 + $0xd8] sm:$0xff] }
 0x1de   :  { %v5125_v19 = vpop.f32.mrf.mxu2  ;;  %1637 = vmatpush.msra.mxu0 %v744_v63  ;;  %v5131_v1 = vpop.f32.mrf.mxu0  ;;  %1163 = vperm.xlu0 %3580, %v7198_v35   ;;  %v722_v63 = vmax.f32 %v677_v15, 0.0 }
 0x1df   :  { %1033 = vperm.xlu1 %3576, %v7202_v41   ;;  %v5253_v41 = vpop.permute.xlu1 %1211 }
 0x1e0   :  { %1638 = vmatpush.msra.mxu0 %v742_v46  ;;  %v668_v46 = vadd.f32 %v7207_v11, %v5098_v3 }
 0x1e1   :  { %1013 = vperm.xlu2 %3574, %v7203_v22  }
 0x1e2   :  { %1639 = vmatpush.msra.mxu0 %v740_v34  ;;  %v716_v12 = vmax.f32 %v668_v46, 0.0 }
 0x1e3   :  { %915 = vmatmul.f32.gmra.mxu0 %v881_v2  ;;  %951 = vmatmul.f32.gmra.mxu3 %v893_v40  ;;  %v7208_v2 = vld [vmem:[#allocation34_spill] sm:$0xff] }
 0x1e4   :  { %1285 = vmatmul.f32.gmra.mxu2 %v1251_v36  ;;  %1640 = vmatpush.msra.mxu0 %v738_v28  ;;  %v1254_v28 = vld [vmem:[%s6968_s7 + $0x70] sm:$0xff] }
 0x1e6   :  { %v5149_v44 = vpop.f32.mrf.mxu2  ;;  %1641 = vmatpush.msra.mxu0 %v736_v0  ;;  %v5155_v62 = vpop.f32.mrf.mxu0  ;;  %1183 = vperm.xlu0 %3580, %v4782_v54   ;;  %v671_v54 = vadd.f32 %v7206_v31, %v5098_v3  ;;  %v884_v3 = vld [vmem:[%s6968_s7 + $0x60] sm:$0xff] }
 0x1e7   :  { %3578 = vset.pattern.permute.xlu1 %v7185_v48  ;;  %v5271_v31 = vpop.permute.xlu1 %1215 }
 0x1e8   :  { %1642 = vmatpush.msra.mxu0 %v734_v4  ;;  %v718_v40 = vmax.f32 %v671_v54, 0.0  ;;  %1155 = vperm.xlu1 %3578, %v7209_v37   ;;  %v1255_v4 = vld [vmem:[%s6968_s7 + $0x88] sm:$0xff] }
 0x1e9   :  { %1023 = vperm.xlu2 %3574, %v7208_v2   ;;  %v890_v2 = vld [vmem:[%s6968_s7 + $0xf0] sm:$0xff] }
 0x1ea   :  { %1643 = vmatpush.msra.mxu0 %v732_v16  ;;  %v7213_v16 = vld [vmem:[#allocation24_spill] sm:$0xff] }
 0x1eb   :  { %918 = vmatmul.f32.gmra.mxu0 %v882_v10  ;;  %954 = vmatmul.f32.gmra.mxu3 %v894_v42  ;;  %v886_v10 = vld [vmem:[%s6968_s7 + $0x90] sm:$0xff]  ;;  %v1256_v42 = vld [vmem:[%s6968_s7 + $0xa0] sm:$0xff] }
 0x1ec   :  { %1288 = vmatmul.f32.gmra.mxu2 %v1252_v21  ;;  %1644 = vmatpush.msra.mxu0 %v730_v39  ;;  %v1257_v39 = vld [vmem:[%s6968_s7 + $0xb8] sm:$0xff] }
 0x1ee   :  { %v5174_v32 = vpop.f32.mrf.mxu2  ;;  %1645 = vmatpush.msra.mxu0 %v728_v23  ;;  %v5180_v59 = vpop.f32.mrf.mxu0  ;;  %1195 = vperm.xlu0 %3580, %v7203_v22   ;;  %v1258_v23 = vld [vmem:[%s6968_s7 + $0xd0] sm:$0xff] }
 0x1ef   :  { %v800_v46 = vadd.f32 %v5040_v33, %v5174_v32  ;;  %v794_v32 = vadd.f32 %v5040_v33, %v5125_v19  ;;  %v891_v19 = vld [vmem:[%s6968_s7 + $0x108] sm:$0xff] }
 0x1f0   :  { %1646 = vmatpush.msra.mxu0 %v726_v56  ;;  %1167 = vperm.xlu1 %3578, %v7211_v55   ;;  %v5291_v55 = vpop.permute.xlu1 %1344 }
 0x1f1   :  { %1038 = vperm.xlu2 %3574, %v7210_v25  }
 0x1f2   :  { %1647 = vmatpush.msra.mxu0 %v724_v45  ;;  %v1259_v45 = vld [vmem:[%s6968_s7 + $0xe8] sm:$0xff] }
 0x1f3   :  { %921 = vmatmul.f32.gmra.mxu0 %v883_v60  ;;  %957 = vmatmul.f32.gmra.mxu3 %v895_v6 }
 0x1f4   :  { %1291 = vmatmul.f32.gmra.mxu2 %v1253_v7  ;;  %1648 = vmatpush.msra.mxu0 %v722_v63 }
 0x1f6   :  { %v5198_v34 = vpop.f32.mrf.mxu2  ;;  %1649 = vmatpush.msra.mxu0 %v720_v61  ;;  %v5202_v36 = vpop.f32.mrf.mxu0 }
 0x1f7   :  { %v803_v54 = vadd.f32 %v5040_v33, %v5198_v34  ;;  %v797_v34 = vadd.f32 %v5040_v33, %v5149_v44  ;;  %v788_v44 = vadd.f32 %v5040_v33, %v5077_v53  ;;  %v7215_v53 = vld [vmem:[#allocation58_spill] sm:$0xff] }
 0x1f8   :  { %1650 = vmatpush.msra.mxu0 %v718_v40  ;;  %1175 = vperm.xlu1 %3578, %v7213_v16   ;;  %v1260_v40 = vld [vmem:[%s6968_s7 + $0x100] sm:$0xff] }
 0x1f9   :  { %3579 = vset.pattern.permute.xlu2 %v7185_v48  ;;  %v7214_v48 = vld [vmem:[#allocation30_spill] sm:$0xff]  ;;  %v833_v16 = vmax.f32 %v788_v44, 0.0  ;;  %v1076_v44 = vld [vmem:[%s6968_s7 + $0x50] sm:$0xff] }
 0x1fa   :  { %1651 = vmatpush.msra.mxu0 %v716_v12  ;;  %1159 = vperm.xlu2 %3579, %v7212_v18   ;;  %v838_v12 = vmax.f32 %v803_v54, 0.0 }
 0x1fb   :  { %924 = vmatmul.f32.gmra.mxu0 %v884_v3  ;;  %v837_v3 = vmax.f32 %v800_v46, 0.0 }
 0x1fc   :  { %1294 = vmatmul.f32.gmra.mxu2 %v1254_v28  ;;  %v791_v28 = vadd.f32 %v5040_v33, %v5101_v30  ;;  %v785_v30 = vadd.f32 %v5040_v33, %v5052_v13 }
 0x1fe   :  { %v805_v5 = vpop.f32.mrf.mxu2  ;;  %v5213_v0 = vpop.f32.mrf.mxu0 }
 0x200   :  { %1187 = vperm.xlu1 %3578, %v7196_v29   ;;  %v888_v29 = vld [vmem:[%s6968_s7 + $0xc0] sm:$0xff] }
 0x202   :  { %1171 = vperm.xlu2 %3579, %v7214_v48   ;;  %v1073_v48 = vld [vmem:[%s6968_s7 + $0x8] sm:$0xff] }
 0x203   :  { %927 = vmatmul.f32.gmra.mxu0 %v885_v51  ;;  %v835_v51 = vmax.f32 %v794_v32, 0.0  ;;  %v1264_v32 = vld [vmem:[%s6968_s7 + $0x160] sm:$0xff] }
 0x204   :  { %1297 = vmatmul.f32.gmra.mxu2 %v1255_v4  ;;  %v1261_v4 = vld [vmem:[%s6968_s7 + $0x118] sm:$0xff] }
 0x206   :  { %v808_v35 = vpop.f32.mrf.mxu2  ;;  %v5223_v43 = vpop.f32.mrf.mxu0 }
 0x207   :  { %v809_v60 = vadd.f32 %v5040_v33, %v808_v35  ;;  %v834_v35 = vmax.f32 %v791_v28, 0.0 }
 0x208   :  { %1199 = vperm.xlu1 %3578, %v7195_v20   ;;  %v5260_v20 = vpop.permute.xlu2 %1332 }
 0x209   :  { %v840_v63 = vmax.f32 %v809_v60, 0.0 }
 0x20a   :  { %1179 = vperm.xlu2 %3579, %v4692_v58  }
 0x20b   :  { %930 = vmatmul.f32.gmra.mxu0 %v886_v10  ;;  %v5306_v10 = vperm.slane %v7215_v53, 1 }
 0x20c   :  { %1300 = vmatmul.f32.gmra.mxu2 %v1256_v42  ;;  %v832_v42 = vmax.f32 %v785_v30, 0.0  ;;  %v1265_v30 = vld [vmem:[%s6968_s7 + $0x178] sm:$0xff] }
 0x20e   :  { %v811_v21 = vpop.f32.mrf.mxu2  ;;  %v5233_v52 = vpop.f32.mrf.mxu0 }
 0x20f   :  { %v812_v56 = vadd.f32 %v5040_v33, %v811_v21  ;;  %v498_v60 = vadd.f32 %v5233_v52, %v5306_v10  ;;  %v492_v52 = vadd.f32 %v5213_v0, %v5306_v10 }
 0x210   :  { %v5283_v37 = vpop.permute.xlu2 %1336 }
 0x211   :  { %v841_v7 = vmax.f32 %v812_v56, 0.0 }
 0x212   :  { %1191 = vperm.xlu2 %3579, %v4718_v8   ;;  %v806_v8 = vadd.f32 %v5040_v33, %v805_v5  ;;  %v836_v5 = vmax.f32 %v797_v34, 0.0  ;;  %v1622_v34 = vld [vmem:[%s6969_s8 + $0x28] sm:$0xff] }
 0x213   :  { %933 = vmatmul.f32.gmra.mxu0 %v887_v24  ;;  %v5313_v24 = vpop.permute.xlu0 %1203 }
 0x214   :  { %1303 = vmatmul.f32.gmra.mxu2 %v1257_v39  ;;  %v839_v61 = vmax.f32 %v806_v8, 0.0  ;;  %v1620_v39 = vld [vmem:[%s6969_s8 + $0x8] sm:$0xff] }
 0x216   :  { %v814_v26 = vpop.f32.mrf.mxu2  ;;  %v5243_v27 = vpop.f32.mrf.mxu0 }
 0x217   :  { %v815_v49 = vadd.f32 %v5040_v33, %v814_v26  ;;  %v501_v56 = vadd.f32 %v5243_v27, %v5306_v10  ;;  %v495_v27 = vadd.f32 %v5223_v43, %v5306_v10  ;;  %v489_v43 = vadd.f32 %v5202_v36, %v5306_v10 }
 0x218   :  { %v5303_v18 = vpop.permute.xlu2 %1348  ;;  %v483_v36 = vadd.f32 %v5155_v62, %v5306_v10 }
 0x219   :  { %v842_v6 = vmax.f32 %v815_v49, 0.0  ;;  %v538_v8 = vmax.f32 %v501_v56, 0.0  ;;  %v534_v46 = vmax.f32 %v495_v27, 0.0  ;;  %v1810_v56 = vld [vmem:[%s6966_s5 + $0x68] sm:$0xff] }
 0x21a   :  { %v526_v62 = vmax.f32 %v483_v36, 0.0  ;;  %v1081_v36 = vld [vmem:[%s6968_s7 + $0xc8] sm:$0xff] }
 0x21b   :  { %936 = vmatmul.f32.gmra.mxu0 %v888_v29  ;;  %v5343_v54 = vpop.permute.xlu0 %1207 }
 0x21c   :  { %1306 = vmatmul.f32.gmra.mxu2 %v1258_v23  ;;  %v1262_v23 = vld [vmem:[%s6968_s7 + $0x130] sm:$0xff] }
 0x21e   :  { %v817_v22 = vpop.f32.mrf.mxu2  ;;  %v5257_v58 = vpop.f32.mrf.mxu0 }
 0x21f   :  { %v818_v15 = vadd.f32 %v5040_v33, %v817_v22  ;;  %v5322_v22 = vpop.permute.xlu1 %1352  ;;  %v504_v49 = vadd.f32 %v5257_v58, %v5306_v10  ;;  %v1621_v58 = vld [vmem:[%s6969_s8 + $0x18] sm:$0xff] }
 0x221   :  { %v843_v57 = vmax.f32 %v818_v15, 0.0 }
 0x223   :  { %1093 = vmatpush.msra.mxu1 %v843_v57  ;;  %939 = vmatmul.f32.gmra.mxu0 %v889_v50  ;;  %v5328_v50 = vpop.permute.xlu2 %1356  ;;  %v5368_v28 = vpop.permute.xlu0 %1340 }
 0x224   :  { %1309 = vmatmul.f32.gmra.mxu2 %v1259_v45  ;;  %v1074_v45 = vld [vmem:[%s6968_s7 + $0x20] sm:$0xff] }
 0x225   :  { %1094 = vmatpush.msra.mxu1 %v842_v6  ;;  %v540_v6 = vmax.f32 %v504_v49, 0.0  ;;  %v1625_v49 = vld [vmem:[%s6969_s8 + $0x58] sm:$0xff] }
 0x226   :  { %v506_v11 = vpop.f32.mrf.mxu0 }
 0x227   :  { %1095 = vmatpush.msra.mxu1 %v841_v7  ;;  %v507_v26 = vadd.f32 %v506_v11, %v5306_v10  ;;  %v1263_v7 = vld [vmem:[%s6968_s7 + $0x148] sm:$0xff]  ;;  %v5347_v11 = vpop.permute.xlu1 %1364 }
 0x229   :  { %1096 = vmatpush.msra.mxu1 %v840_v63  ;;  %v542_v57 = vmax.f32 %v507_v26, 0.0  ;;  %v536_v63 = vmax.f32 %v498_v60, 0.0  ;;  %v1811_v26 = vld [vmem:[%s6966_s5 + $0x70] sm:$0xff]  ;;  %v1809_v60 = vld [vmem:[%s6966_s5 + $0x60] sm:$0xff] }
 0x22b   :  { %1097 = vmatpush.msra.mxu1 %v839_v61  ;;  %942 = vmatmul.f32.gmra.mxu0 %v890_v2  ;;  %v1075_v61 = vld [vmem:[%s6968_s7 + $0x38] sm:$0xff]  ;;  %v486_v2 = vadd.f32 %v5180_v59, %v5306_v10  ;;  %v5356_v0 = vpop.permute.xlu2 %1368  ;;  %v480_v59 = vadd.f32 %v5131_v1, %v5306_v10  ;;  %v474_v1 = vadd.f32 %v5081_v14, %v5306_v10 }
 0x22c   :  { %1312 = vmatmul.f32.gmra.mxu2 %v1260_v40  ;;  %v532_v40 = vmax.f32 %v492_v52, 0.0  ;;  %v468_v14 = vadd.f32 %v5027_v9, %v5306_v10  ;;  %v1624_v9 = vld [vmem:[%s6969_s8 + $0x48] sm:$0xff]  ;;  %v1080_v52 = vld [vmem:[%s6968_s7 + $0xb0] sm:$0xff] }
 0x22d   :  { %1098 = vmatpush.msra.mxu1 %v838_v12  ;;  %v530_v12 = vmax.f32 %v489_v43, 0.0  ;;  %v1430_v43 = vld [vmem:[%s6969_s8 + $0x30] sm:$0xff] }
 0x22e   :  { %v509_v25 = vpop.f32.mrf.mxu0 }
 0x22f   :  { %1099 = vmatpush.msra.mxu1 %v837_v3  ;;  %v510_v33 = vadd.f32 %v509_v25, %v5306_v10  ;;  %v528_v3 = vmax.f32 %v486_v2, 0.0  ;;  %v5372_v25 = vpop.permute.xlu1 %1376  ;;  %v1806_v2 = vld [vmem:[%s6966_s5 + $0x48] sm:$0xff] }
 0x231   :  { %1100 = vmatpush.msra.mxu1 %v836_v5  ;;  %v544_v15 = vmax.f32 %v510_v33, 0.0  ;;  %v477_v5 = vadd.f32 %v5105_v17, %v5306_v10  ;;  %v471_v17 = vadd.f32 %v5058_v38, %v5306_v10  ;;  %v1077_v38 = vld [vmem:[%s6968_s7 + $0x68] sm:$0xff] }
 0x233   :  { %1101 = vmatpush.msra.mxu1 %v835_v51  ;;  %945 = vmatmul.f32.gmra.mxu0 %v891_v19  ;;  %v524_v51 = vmax.f32 %v480_v59, 0.0  ;;  %v1623_v19 = vld [vmem:[%s6969_s8 + $0x38] sm:$0xff]  ;;  %v518_v53 = vmax.f32 %v471_v17, 0.0  ;;  %v1628_v59 = vld [vmem:[%s6969_s8 + $0x88] sm:$0xff] }
 0x234   :  { %1315 = vmatmul.f32.gmra.mxu2 %v1261_v4  ;;  %v522_v4 = vmax.f32 %v477_v5, 0.0  ;;  %v1804_v5 = vld [vmem:[%s6966_s5 + $0x38] sm:$0xff] }
 0x235   :  { %1102 = vmatpush.msra.mxu1 %v834_v35  ;;  %v5387_v35 = vpop.permute.xlu2 %1380  ;;  %v1629_v17 = vld [vmem:[%s6969_s8 + $0x98] sm:$0xff] }
 0x236   :  { %v512_v21 = vpop.f32.mrf.mxu0 }
 0x237   :  { %1103 = vmatpush.msra.mxu1 %v833_v16  ;;  %v513_v13 = vadd.f32 %v512_v21, %v5306_v10  ;;  %v520_v16 = vmax.f32 %v474_v1, 0.0  ;;  %v516_v21 = vmax.f32 %v468_v14, 0.0  ;;  %v5399_v33 = vpop.permute.xlu1 %1388  ;;  %v1812_v10 = vld [vmem:[%s6966_s5 + $0x78] sm:$0xff]  ;;  %v1803_v1 = vld [vmem:[%s6966_s5 + $0x30] sm:$0xff] }
 0x238   :  { %v1083_v14 = vld [vmem:[%s6968_s7 + $0xf8] sm:$0xff] }
 0x239   :  { %1104 = vmatpush.msra.mxu1 %v832_v42  ;;  %v546_v29 = vmax.f32 %v513_v13, 0.0  ;;  %v5391_v42 = vpop.permute.xlu0 %1360 }
 0x23a   :  { %1105 = vmatmul.f32.vlgmr.msra.gmra.mxu1 %v1073_v48  ;;  %v1427_v48 = vld [vmem:[%s6969_s8] sm:$0xff] }
 0x23b   :  { %1652 = vmatmul.f32.vlgmr.msra.gmra.mxu0 %v1620_v39  ;;  %1443 = vmatpush.msra.mxu3 %v546_v29  ;;  %v1078_v39 = vld [vmem:[%s6968_s7 + $0x80] sm:$0xff]  ;;  %v1428_v29 = vld [vmem:[%s6969_s8 + $0x10] sm:$0xff] }
 0x23c   :  { %1318 = vmatmul.f32.gmra.mxu2 %v1262_v23  ;;  %1817 = vmatpush.xpose.msrb.mxu1 %v1812_v10 }
 0x23d   :  { %1444 = vmatpush.msra.mxu3 %v544_v15  ;;  %v5407_v13 = vpop.permute.xlu2 %1392 }
 0x23f   :  { %1445 = vmatpush.msra.mxu3 %v542_v57  ;;  %v5423_v15 = vpop.permute.xlu1 %1515 }
 0x240   :  { %1818 = vmatpush.xpose.msrb.mxu1 %v1811_v26  ;;  %7216 = vst [vmem:[#allocation55_spill] sm:$0xff] %v5423_v15 }
 0x241   :  { %1446 = vmatpush.msra.mxu3 %v540_v6  ;;  %v5418_v23 = vpop.permute.xlu0 %1372  ;;  %v1429_v6 = vld [vmem:[%s6969_s8 + $0x20] sm:$0xff] }
 0x242   :  { %1108 = vmatmul.f32.gmra.mxu1 %v1074_v45  ;;  %v1079_v45 = vld [vmem:[%s6968_s7 + $0x98] sm:$0xff] }
 0x243   :  { %1655 = vmatmul.f32.gmra.mxu0 %v1621_v58  ;;  %1447 = vmatpush.msra.mxu3 %v538_v8  ;;  %v1626_v58 = vld [vmem:[%s6969_s8 + $0x68] sm:$0xff]  ;;  %v1808_v8 = vld [vmem:[%s6966_s5 + $0x58] sm:$0xff] }
 0x244   :  { %1321 = vmatmul.f32.gmra.mxu2 %v1263_v7  ;;  %1819 = vmatpush.xpose.msrb.mxu1 %v1810_v56 }
 0x245   :  { %1448 = vmatpush.msra.mxu3 %v536_v63  ;;  %v5428_v57 = vpop.permute.xlu2 %1520  ;;  %v1807_v63 = vld [vmem:[%s6966_s5 + $0x50] sm:$0xff] }
 0x246   :  { %7217 = vst [vmem:[#allocation53_spill] sm:$0xff] %v5428_v57 }
 0x247   :  { %1449 = vmatpush.msra.mxu3 %v534_v46  ;;  %v5447_v7 = vpop.permute.xlu1 %1525 }
 0x248   :  { %1820 = vmatpush.xpose.msrb.mxu1 %v1809_v60  ;;  %7218 = vst [vmem:[#allocation31_spill] sm:$0xff] %v5447_v7 }
 0x249   :  { %1450 = vmatpush.msra.mxu3 %v532_v40  ;;  %v5442_v27 = vpop.permute.xlu0 %1384 }
 0x24a   :  { %1111 = vmatmul.f32.gmra.mxu1 %v1075_v61  ;;  %v1627_v61 = vld [vmem:[%s6969_s8 + $0x78] sm:$0xff] }
 0x24b   :  { %1658 = vmatmul.f32.gmra.mxu0 %v1622_v34  ;;  %1451 = vmatpush.msra.mxu3 %v530_v12  ;;  %v1805_v12 = vld [vmem:[%s6966_s5 + $0x40] sm:$0xff] }
 0x24c   :  { %1324 = vmatmul.f32.gmra.mxu2 %v1264_v32  ;;  %1821 = vmatpush.xpose.msrb.mxu1 %v1808_v8  ;;  %v1431_v32 = vld [vmem:[%s6969_s8 + $0x40] sm:$0xff] }
 0x24d   :  { %1452 = vmatpush.msra.mxu3 %v528_v3  ;;  %v5458_v46 = vpop.permute.xlu2 %1530 }
 0x24e   :  { %7219 = vst [vmem:[#allocation28_spill] sm:$0xff] %v5458_v46  ;;  %v7271_v46 = vld [vmem:[#allocation17_spill] sm:$0xff] }
 0x24f   :  { %1453 = vmatpush.msra.mxu3 %v526_v62  ;;  %v5468_v34 = vpop.permute.xlu1 %1540 }
 0x250   :  { %1822 = vmatpush.xpose.msrb.mxu1 %v1807_v63  ;;  %7221 = vst [vmem:[#allocation39_spill] sm:$0xff] %v5468_v34 }
 0x251   :  { %1454 = vmatpush.msra.mxu3 %v524_v51  ;;  %v5466_v40 = vpop.permute.xlu0 %1510  ;;  %v1432_v51 = vld [vmem:[%s6969_s8 + $0x50] sm:$0xff] }
 0x252   :  { %1114 = vmatmul.f32.gmra.mxu1 %v1076_v44  ;;  %7220 = vst [vmem:[#allocation51_spill] sm:$0xff] %v5466_v40  ;;  %v1082_v44 = vld [vmem:[%s6968_s7 + $0xe0] sm:$0xff] }
 0x253   :  { %1661 = vmatmul.f32.gmra.mxu0 %v1623_v19  ;;  %1455 = vmatpush.msra.mxu3 %v522_v4  ;;  %v1802_v4 = vld [vmem:[%s6966_s5 + $0x28] sm:$0xff] }
 0x254   :  { %1327 = vmatmul.f32.gmra.mxu2 %v1265_v30  ;;  %1823 = vmatpush.xpose.msrb.mxu1 %v1806_v2 }
 0x255   :  { %1456 = vmatpush.msra.mxu3 %v520_v16  ;;  %v5482_v3 = vpop.permute.xlu2 %1545  ;;  %v1801_v16 = vld [vmem:[%s6966_s5 + $0x20] sm:$0xff] }
 0x256   :  { %7222 = vst [vmem:[#allocation49_spill] sm:$0xff] %v5482_v3 }
 0x257   :  { %1457 = vmatpush.msra.mxu3 %v518_v53  ;;  %v5498_v19 = vpop.permute.xlu1 %1555  ;;  %v1433_v53 = vld [vmem:[%s6969_s8 + $0x60] sm:$0xff] }
 0x258   :  { %1824 = vmatpush.xpose.msrb.mxu1 %v1805_v12  ;;  %7224 = vst [vmem:[#allocation45_spill] sm:$0xff] %v5498_v19  ;;  %v7265_v19 = vld [vmem:[#allocation14_spill] sm:$0xff] }
 0x259   :  { %1458 = vmatpush.msra.mxu3 %v516_v21  ;;  %v5487_v62 = vpop.permute.xlu0 %1535  ;;  %v1630_v21 = vld [vmem:[%s6969_s8 + $0xa8] sm:$0xff] }
 0x25a   :  { %1117 = vmatmul.f32.gmra.mxu1 %v1077_v38  ;;  %1459 = vmatmul.f32.vlgmr.msra.gmra.mxu3 %v1427_v48  ;;  %7223 = vst [vmem:[#allocation47_spill] sm:$0xff] %v5487_v62 }
 0x25b   :  { %1664 = vmatmul.f32.gmra.mxu0 %v1624_v9  ;;  %3532 = vmatpush.xpose.msrb.mxu3 %v1812_v10  ;;  %v1800_v9 = vld [vmem:[%s6966_s5 + $0x18] sm:$0xff] }
 0x25c   :  { %1825 = vmatpush.xpose.msrb.mxu1 %v1804_v5 }
 0x25d   :  { %v5506_v30 = vpop.permute.xlu2 %1560 }
 0x25e   :  { %7225 = vst [vmem:[#allocation16_spill] sm:$0xff] %v5506_v30 }
 0x25f   :  { %3533 = vmatpush.xpose.msrb.mxu3 %v1811_v26  ;;  %v5522_v48 = vpop.permute.xlu1 %1570  ;;  %v1799_v26 = vld [vmem:[%s6966_s5 + $0x10] sm:$0xff] }
 0x260   :  { %1826 = vmatpush.xpose.msrb.mxu1 %v1803_v1  ;;  %7227 = vst [vmem:[#allocation42_spill] sm:$0xff] %v5522_v48  ;;  %v7263_v48 = vld [vmem:[#allocation13_spill] sm:$0xff] }
 0x261   :  { %v5517_v38 = vpop.permute.xlu0 %1550 }
 0x262   :  { %1120 = vmatmul.f32.gmra.mxu1 %v1078_v39  ;;  %1462 = vmatmul.f32.gmra.mxu3 %v1428_v29  ;;  %7226 = vst [vmem:[#allocation44_spill] sm:$0xff] %v5517_v38  ;;  %v1084_v39 = vld [vmem:[%s6968_s7 + $0x110] sm:$0xff] }
 0x263   :  { %1667 = vmatmul.f32.gmra.mxu0 %v1625_v49  ;;  %3534 = vmatpush.xpose.msrb.mxu3 %v1810_v56  ;;  %v1434_v29 = vld [vmem:[%s6969_s8 + $0x70] sm:$0xff]  ;;  %v1631_v49 = vld [vmem:[%s6969_s8 + $0xb8] sm:$0xff] }
 0x264   :  { %1827 = vmatpush.xpose.msrb.mxu1 %v1802_v4 }
 0x265   :  { %v5527_v10 = vpop.permute.xlu2 %1575 }
 0x266   :  { %7228 = vst [vmem:[#allocation40_spill] sm:$0xff] %v5527_v10 }
 0x267   :  { %3535 = vmatpush.xpose.msrb.mxu3 %v1809_v60  ;;  %v5546_v60 = vpop.permute.xlu1 %1585 }
 0x268   :  { %1828 = vmatpush.xpose.msrb.mxu1 %v1801_v16  ;;  %7230 = vst [vmem:[#allocation35_spill] sm:$0xff] %v5546_v60 }
 0x269   :  { %v5541_v56 = vpop.permute.xlu0 %1565 }
 0x26a   :  { %1123 = vmatmul.f32.gmra.mxu1 %v1079_v45  ;;  %1465 = vmatmul.f32.gmra.mxu3 %v1429_v6  ;;  %7229 = vst [vmem:[#allocation37_spill] sm:$0xff] %v5541_v56  ;;  %v1798_v45 = vld [vmem:[%s6966_s5 + $0x8] sm:$0xff]  ;;  %v913_v6 = vpop.f32.mrf.mxu0 }
 0x26b   :  { %1670 = vmatmul.f32.gmra.mxu0 %v1626_v58  ;;  %3536 = vmatpush.xpose.msrb.mxu3 %v1808_v8  ;;  %v1085_v58 = vld [vmem:[%s6968_s7 + $0x128] sm:$0xff]  ;;  %v1797_v8 = vld [vmem:[%s6966_s5] sm:$0xff] }
 0x26c   :  { %1829 = vmatpush.xpose.msrb.mxu1 %v1800_v9 }
 0x26f   :  { %3537 = vmatpush.xpose.msrb.mxu3 %v1807_v63  ;;  %v5557_v63 = vpop.permute.xlu2 %1702 }
 0x270   :  { %1830 = vmatpush.xpose.msrb.mxu1 %v1799_v26  ;;  %7231 = vst [vmem:[#allocation34_spill] sm:$0xff] %v5557_v63 }
 0x272   :  { %1126 = vmatmul.f32.gmra.mxu1 %v1080_v52  ;;  %1468 = vmatmul.f32.gmra.mxu3 %v1430_v43  ;;  %v1435_v52 = vld [vmem:[%s6969_s8 + $0x80] sm:$0xff]  ;;  %v1632_v43 = vld [vmem:[%s6969_s8 + $0xc8] sm:$0xff] }
 0x273   :  { %1673 = vmatmul.f32.gmra.mxu0 %v1627_v61  ;;  %3538 = vmatpush.xpose.msrb.mxu3 %v1806_v2  ;;  %v5562_v61 = vpop.permute.xlu0 %1580  ;;  %v5564_v2 = vpop.permute.xlu1 %1710 }
 0x274   :  { %1831 = vmatpush.xpose.msrb.mxu1 %v1798_v45  ;;  %7232 = vst [vmem:[#allocation22_spill] sm:$0xff] %v5562_v61  ;;  %v7260_v61 = vld [vmem:[#allocation12_spill] sm:$0xff] }
 0x275   :  { %7233 = vst [vmem:[#allocation18_spill] sm:$0xff] %v5564_v2 }
 0x277   :  { %3539 = vmatpush.xpose.msrb.mxu3 %v1805_v12  ;;  %v916_v12 = vpop.f32.mrf.mxu0 }
 0x278   :  { %1832 = vmatpush.xpose.msrb.mxu1 %v1797_v8 }
 0x27a   :  { %1129 = vmatmul.f32.gmra.mxu1 %v1081_v36  ;;  %1471 = vmatmul.f32.gmra.mxu3 %v1431_v32  ;;  %v1086_v36 = vld [vmem:[%s6968_s7 + $0x140] sm:$0xff]  ;;  %v1436_v32 = vld [vmem:[%s6969_s8 + $0x90] sm:$0xff] }
 0x27b   :  { %1676 = vmatmul.f32.gmra.mxu0 %v1628_v59  ;;  %3540 = vmatpush.xpose.msrb.mxu3 %v1804_v5  ;;  %v1633_v59 = vld [vmem:[%s6969_s8 + $0xd8] sm:$0xff]  ;;  %v5575_v5 = vpop.permute.xlu2 %1714 }
 0x27c   :  { %7234 = vst [vmem:[#allocation20_spill] sm:$0xff] %v5575_v5 }
 0x27f   :  { %3541 = vmatpush.xpose.msrb.mxu3 %v1803_v1  ;;  %v1087_v1 = vld [vmem:[%s6968_s7 + $0x158] sm:$0xff] }
 0x282   :  { %1132 = vmatmul.f32.gmra.mxu1 %v1082_v44  ;;  %1474 = vmatmul.f32.gmra.mxu3 %v1432_v51  ;;  %v5577_v44 = vpop.permute.xlu0 %1706  ;;  %v1437_v51 = vld [vmem:[%s6969_s8 + $0xa0] sm:$0xff] }
 0x283   :  { %1679 = vmatmul.f32.gmra.mxu0 %v1629_v17  ;;  %3542 = vmatpush.xpose.msrb.mxu3 %v1802_v4  ;;  %7235 = vst [vmem:[#allocation26_spill] sm:$0xff] %v5577_v44  ;;  %v5585_v17 = vpop.permute.xlu1 %1718  ;;  %v1634_v4 = vld [vmem:[%s6969_s8 + $0xe8] sm:$0xff] }
 0x284   :  { %7236 = vst [vmem:[#allocation24_spill] sm:$0xff] %v5585_v17 }
 0x287   :  { %3543 = vmatpush.xpose.msrb.mxu3 %v1801_v16  ;;  %v5590_v16 = vpop.permute.xlu2 %1722 }
 0x288   :  { %7237 = vst [vmem:[#allocation30_spill] sm:$0xff] %v5590_v16  ;;  %v949_v16 = vpop.f32.mrf.mxu3 }
 0x28a   :  { %1135 = vmatmul.f32.gmra.mxu1 %v1083_v14  ;;  %1477 = vmatmul.f32.gmra.mxu3 %v1433_v53  ;;  %v919_v14 = vpop.f32.mrf.mxu0  ;;  %v1088_v53 = vld [vmem:[%s6968_s7 + $0x170] sm:$0xff] }
 0x28b   :  { %1682 = vmatmul.f32.gmra.mxu0 %v1630_v21  ;;  %3544 = vmatpush.xpose.msrb.mxu3 %v1800_v9  ;;  %v1438_v21 = vld [vmem:[%s6969_s8 + $0xb0] sm:$0xff]  ;;  %v5598_v9 = vpop.permute.xlu0 %1726 }
 0x28c   :  { %7238 = vst [vmem:[#allocation58_spill] sm:$0xff] %v5598_v9 }
 0x28f   :  { %3545 = vmatpush.xpose.msrb.mxu3 %v1799_v26  ;;  %v964_v26 = vpop.permute.xlu1 %963 }
 0x290   :  { %v952_v2 = vpop.f32.mrf.mxu3 }
 0x292   :  { %1138 = vmatmul.f32.gmra.mxu1 %v1084_v39  ;;  %1480 = vmatmul.f32.gmra.mxu3 %v1434_v29  ;;  %v1635_v39 = vld [vmem:[%s6969_s8 + $0xf8] sm:$0xff]  ;;  %v1041_v29 = vmul.f32 %v964_v26, %v913_v6 }
 0x293   :  { %1685 = vmatmul.f32.gmra.mxu0 %v1631_v49  ;;  %3546 = vmatpush.xpose.msrb.mxu3 %v1798_v45  ;;  %v922_v49 = vpop.f32.mrf.mxu0  ;;  %v5603_v45 = vpop.permute.xlu2 %1730 }
 0x294   :  { %7239 = vst [vmem:[#allocation59_spill] sm:$0xff] %v5603_v45 }
 0x297   :  { %3547 = vmatpush.xpose.msrb.mxu3 %v1797_v8  ;;  %v7240_v8 = vld [vmem:[#allocation5_spill] sm:$0xff] }
 0x29a   :  { %1141 = vmatmul.f32.gmra.mxu1 %v1085_v58  ;;  %1483 = vmatmul.f32.gmra.mxu3 %v1435_v52  ;;  %v5608_v52 = vadd.f32 %v1041_v29, %v7240_v8  ;;  %v7246_v29 = vld [vmem:[#allocation7_spill] sm:$0xff] }
 0x29b   :  { %1688 = vmatmul.f32.gmra.mxu0 %v1632_v43  ;;  %v1439_v43 = vld [vmem:[%s6969_s8 + $0xc0] sm:$0xff] }
 0x29c   :  { %7241 = vst [vmem:[#allocation5_spill] sm:$0xff] %v5608_v52 }
 0x2a2   :  { %1144 = vmatmul.f32.gmra.mxu1 %v1086_v36  ;;  %1486 = vmatmul.f32.gmra.mxu3 %v1436_v32  ;;  %v969_v36 = vpop.permute.xlu0 %968 }
 0x2a3   :  { %1691 = vmatmul.f32.gmra.mxu0 %v1633_v59  ;;  %v1042_v32 = vmul.f32 %v969_v36, %v916_v12  ;;  %v5614_v59 = vpop.permute.xlu1 %1734  ;;  %v1441_v36 = vld [vmem:[%s6969_s8 + $0xe0] sm:$0xff] }
 0x2a4   :  { %7242 = vst [vmem:[#allocation60_spill] sm:$0xff] %v5614_v59 }
 0x2aa   :  { %1147 = vmatmul.f32.gmra.mxu1 %v1087_v1  ;;  %1489 = vmatmul.f32.gmra.mxu3 %v1437_v51  ;;  %v7243_v1 = vld [vmem:[#allocation6_spill] sm:$0xff]  ;;  %v5652_v9 = vpop.permute.xlu0 %1742 }
 0x2ab   :  { %1694 = vmatmul.f32.gmra.mxu0 %v1634_v4  ;;  %v5619_v51 = vadd.f32 %v1042_v32, %v7243_v1  ;;  %v1440_v4 = vld [vmem:[%s6969_s8 + $0xd0] sm:$0xff]  ;;  %v5625_v26 = vpop.permute.xlu1 %1738  ;;  %7253 = vst [vmem:[#allocation63_spill] sm:$0xff] %v5652_v9 }
 0x2ac   :  { %7245 = vst [vmem:[#allocation61_spill] sm:$0xff] %v5625_v26 }
 0x2ad   :  { %7244 = vst [vmem:[#allocation6_spill] sm:$0xff] %v5619_v51 }
 0x2b2   :  { %1150 = vmatmul.f32.gmra.mxu1 %v1088_v53  ;;  %1492 = vmatmul.f32.gmra.mxu3 %v1438_v21  ;;  %v974_v53 = vpop.permute.xlu2 %973  ;;  %v925_v21 = vpop.f32.mrf.mxu0 }
 0x2b3   :  { %1697 = vmatmul.f32.gmra.mxu0 %v1635_v39  ;;  %v1043_v39 = vmul.f32 %v974_v53, %v919_v14  ;;  %v7248_v14 = vld [vmem:[#allocation8_spill] sm:$0xff]  ;;  %v1442_v53 = vld [vmem:[%s6969_s8 + $0xf0] sm:$0xff] }
 0x2b7   :  { %v5605_v58 = vpop.f32.mrf.mxu1 }
 0x2ba   :  { %1833 = vmatmul.f32.vlgmr.msrb.gmra.mxu1 %v5608_v52  ;;  %1495 = vmatmul.f32.gmra.mxu3 %v1439_v43  ;;  %v5630_v43 = vadd.f32 %v1043_v39, %v7246_v29  ;;  %v979_v32 = vpop.permute.xlu2 %978  ;;  %v984_v39 = vpop.permute.xlu1 %983 }
 0x2bb   :  { %v1044_v52 = vmul.f32 %v979_v32, %v922_v49  ;;  %v1045_v26 = vmul.f32 %v984_v39, %v925_v21  ;;  %v7251_v49 = vld [vmem:[#allocation9_spill] sm:$0xff]  ;;  %v7255_v21 = vld [vmem:[#allocation10_spill] sm:$0xff] }
 0x2bc   :  { %7247 = vst [vmem:[#allocation7_spill] sm:$0xff] %v5630_v43 }
 0x2bd   :  { %v5650_v32 = vadd.f32 %v1045_v26, %v7251_v49 }
 0x2bf   :  { %v5616_v6 = vpop.f32.mrf.mxu1  ;;  %7252 = vst [vmem:[#allocation9_spill] sm:$0xff] %v5650_v32 }
 0x2c2   :  { %1836 = vmatmul.f32.gmra.mxu1 %v5619_v51  ;;  %1498 = vmatmul.f32.gmra.mxu3 %v1440_v4  ;;  %v928_v51 = vpop.f32.mrf.mxu0  ;;  %v5639_v4 = vadd.f32 %v1044_v52, %v7248_v14  ;;  %v5645_v45 = vpop.permute.xlu2 %1746 }
 0x2c3   :  { %7250 = vst [vmem:[#allocation62_spill] sm:$0xff] %v5645_v45  ;;  %v989_v52 = vpop.permute.xlu1 %988  ;;  %v994_v45 = vpop.permute.xlu0 %993 }
 0x2c4   :  { %7249 = vst [vmem:[#allocation8_spill] sm:$0xff] %v5639_v4  ;;  %v1046_v17 = vmul.f32 %v989_v52, %v928_v51 }
 0x2c7   :  { %v5627_v12 = vpop.f32.mrf.mxu1 }
 0x2ca   :  { %1839 = vmatmul.f32.gmra.mxu1 %v5630_v43  ;;  %1501 = vmatmul.f32.gmra.mxu3 %v1441_v36  ;;  %v931_v43 = vpop.f32.mrf.mxu0  ;;  %v5655_v5 = vpop.permute.xlu2 %1750 }
 0x2cb   :  { %7254 = vst [vmem:[#allocation64_spill] sm:$0xff] %v5655_v5  ;;  %v1047_v26 = vmul.f32 %v994_v45, %v931_v43  ;;  %v5663_v44 = vpop.permute.xlu1 %1754 }
 0x2cc   :  { %7257 = vst [vmem:[#allocation65_spill] sm:$0xff] %v5663_v44 }
 0x2cf   :  { %v5636_v59 = vpop.f32.mrf.mxu1 }
 0x2d2   :  { %1842 = vmatmul.f32.gmra.mxu1 %v5639_v4  ;;  %1504 = vmatmul.f32.gmra.mxu3 %v1442_v53  ;;  %v5660_v53 = vadd.f32 %v1046_v17, %v7255_v21  ;;  %v934_v39 = vpop.f32.mrf.mxu0  ;;  %v999_v51 = vpop.permute.xlu2 %998 }
 0x2d3   :  { %v1048_v5 = vmul.f32 %v999_v51, %v934_v39  ;;  %v955_v17 = vpop.f32.mrf.mxu3  ;;  %v5676_v45 = vpop.permute.xlu1 %1758 }
 0x2d4   :  { %7256 = vst [vmem:[#allocation10_spill] sm:$0xff] %v5660_v53 }
 0x2d5   :  { %7262 = vst [vmem:[#allocation66_spill] sm:$0xff] %v5676_v45 }
 0x2d7   :  { %v5647_v36 = vpop.f32.mrf.mxu1 }
 0x2da   :  { %1845 = vmatmul.f32.gmra.mxu1 %v5650_v32  ;;  %v7258_v32 = vld [vmem:[#allocation11_spill] sm:$0xff]  ;;  %v937_v52 = vpop.f32.mrf.mxu0  ;;  %v1004_v43 = vpop.permute.xlu2 %1003 }
 0x2db   :  { %v5668_v63 = vadd.f32 %v1047_v26, %v7258_v32  ;;  %v1049_v44 = vmul.f32 %v1004_v43, %v937_v52  ;;  %v1009_v39 = vpop.permute.xlu1 %1008 }
 0x2dd   :  { %7259 = vst [vmem:[#allocation11_spill] sm:$0xff] %v5668_v63  ;;  %v5682_v56 = vadd.f32 %v1049_v44, %v7263_v48  ;;  %v7267_v44 = vld [vmem:[#allocation15_spill] sm:$0xff] }
 0x2df   :  { %v5657_v4 = vpop.f32.mrf.mxu1  ;;  %7264 = vst [vmem:[#allocation13_spill] sm:$0xff] %v5682_v56 }
 0x2e2   :  { %1848 = vmatmul.f32.gmra.mxu1 %v5660_v53  ;;  %v5674_v53 = vadd.f32 %v1048_v5, %v7260_v61  ;;  %v940_v10 = vpop.f32.mrf.mxu0  ;;  %v1014_v52 = vpop.permute.xlu2 %1013 }
 0x2e3   :  { %v1050_v51 = vmul.f32 %v1009_v39, %v940_v10  ;;  %v1019_v10 = vpop.permute.xlu1 %1018 }
 0x2e4   :  { %7261 = vst [vmem:[#allocation12_spill] sm:$0xff] %v5674_v53 }
 0x2e5   :  { %v5688_v45 = vadd.f32 %v1050_v51, %v7265_v19  ;;  %v5701_v51 = vpop.permute.xlu0 %1762 }
 0x2e6   :  { %7270 = vst [vmem:[#allocation68_spill] sm:$0xff] %v5701_v51 }
 0x2e7   :  { %v5665_v9 = vpop.f32.mrf.mxu1  ;;  %7266 = vst [vmem:[#allocation14_spill] sm:$0xff] %v5688_v45 }
 0x2ea   :  { %1851 = vmatmul.f32.gmra.mxu1 %v5668_v63  ;;  %v958_v63 = vpop.f32.mrf.mxu3  ;;  %v943_v30 = vpop.f32.mrf.mxu0 }
 0x2eb   :  { %v1051_v43 = vmul.f32 %v1014_v52, %v943_v30  ;;  %v1024_v30 = vpop.permute.xlu2 %1023  ;;  %v1034_v40 = vpop.permute.xlu1 %1033 }
 0x2ec   :  { %v1053_v52 = vmul.f32 %v1024_v30, %v949_v16 }
 0x2ed   :  { %v5696_v3 = vadd.f32 %v1051_v43, %v7267_v44  ;;  %v1283_v43 = vpop.f32.mrf.mxu2 }
 0x2ef   :  { %v5671_v60 = vpop.f32.mrf.mxu1  ;;  %7268 = vst [vmem:[#allocation15_spill] sm:$0xff] %v5696_v3 }
 0x2f2   :  { %1854 = vmatmul.f32.gmra.mxu1 %v5674_v53  ;;  %v5690_v53 = vpop.f32.mrf.mxu3 }
 0x2f7   :  { %v5679_v26 = vpop.f32.mrf.mxu1 }
 0x2fa   :  { %1857 = vmatmul.f32.gmra.mxu1 %v5682_v56  ;;  %v946_v56 = vpop.f32.mrf.mxu0  ;;  %v5699_v39 = vpop.f32.mrf.mxu3 }
 0x2fb   :  { %7269 = vst [vmem:[#allocation67_spill] sm:$0xff] %v5699_v39  ;;  %v1052_v34 = vmul.f32 %v1019_v10, %v946_v56  ;;  %v1029_v10 = vpop.permute.xlu0 %1028 }
 0x2ff   :  { %v5685_v5 = vpop.f32.mrf.mxu1 }
 0x302   :  { %1860 = vmatmul.f32.gmra.mxu1 %v5688_v45  ;;  %v5706_v45 = vadd.f32 %v1052_v34, %v7271_v46  ;;  %v5709_v7 = vpop.f32.mrf.mxu3  ;;  %v1054_v34 = vmul.f32 %v1029_v10, %v952_v2 }
 0x303   :  { %7273 = vst [vmem:[#allocation69_spill] sm:$0xff] %v5709_v7  ;;  %v7278_v7 = vld [vmem:[#allocation23_spill] sm:$0xff] }
 0x304   :  { %7272 = vst [vmem:[#allocation17_spill] sm:$0xff] %v5706_v45  ;;  %v5723_v39 = vadd.f32 %v1054_v34, %v7278_v7  ;;  %v1039_v34 = vpop.permute.xlu2 %1038 }
 0x306   :  { %7279 = vst [vmem:[#allocation23_spill] sm:$0xff] %v5723_v39 }
 0x307   :  { %v5693_v38 = vpop.f32.mrf.mxu1 }
 0x30a   :  { %1863 = vmatmul.f32.gmra.mxu1 %v5696_v3  ;;  %v7274_v3 = vld [vmem:[#allocation19_spill] sm:$0xff]  ;;  %v5720_v16 = vpop.f32.mrf.mxu3 }
 0x30b   :  { %v5712_v15 = vadd.f32 %v1053_v52, %v7274_v3  ;;  %7277 = vst [vmem:[#allocation71_spill] sm:$0xff] %v5720_v16 }
 0x30d   :  { %7275 = vst [vmem:[#allocation19_spill] sm:$0xff] %v5712_v15 }
 0x30f   :  { %v5703_v62 = vpop.f32.mrf.mxu1 }
 0x312   :  { %1866 = vmatmul.f32.gmra.mxu1 %v5706_v45  ;;  %v1286_v45 = vpop.f32.mrf.mxu2  ;;  %v5735_v16 = vpop.f32.mrf.mxu3 }
 0x317   :  { %v1142_v57 = vpop.f32.mrf.mxu1 }
 0x318   :  { %v1230_v56 = vmul.f32 %v5313_v24, %v1142_v57  ;;  %v1055_v57 = vmul.f32 %v1034_v40, %v955_v17 }
 0x31a   :  { %v5716_v51 = vadd.f32 %v1230_v56, %v7274_v3  ;;  %1869 = vmatmul.f32.gmra.mxu1 %v5712_v15  ;;  %v7281_v56 = vld [vmem:[#allocation27_spill] sm:$0xff] }
 0x31b   :  { %v5732_v10 = vadd.f32 %v1055_v57, %v7281_v56  ;;  %v1156_v57 = vpop.permute.xlu1 %1155 }
 0x31c   :  { %7276 = vst [vmem:[#allocation70_spill] sm:$0xff] %v5716_v51  ;;  %1917 = vmatmul.f32.vlgmr.msrb.gmra.mxu3 %v5716_v51  ;;  %v1289_v51 = vpop.f32.mrf.mxu2 }
 0x31d   :  { %7282 = vst [vmem:[#allocation27_spill] sm:$0xff] %v5732_v10 }
 0x31f   :  { %v1145_v30 = vpop.f32.mrf.mxu1 }
 0x320   :  { %v1231_v52 = vmul.f32 %v5343_v54, %v1145_v30  ;;  %v1056_v30 = vmul.f32 %v1039_v34, %v958_v63  ;;  %v1395_v63 = vmul.f32 %v5260_v20, %v1283_v43  ;;  %v1164_v43 = vpop.permute.xlu0 %1163 }
 0x322   :  { %v5727_v24 = vadd.f32 %v1231_v52, %v7278_v7  ;;  %1872 = vmatmul.f32.gmra.mxu1 %v5723_v39  ;;  %v5743_v17 = vadd.f32 %v1056_v30, %v4670_v47  ;;  %v1160_v30 = vpop.permute.xlu2 %1159  ;;  %v7330_v39 = vld [vmem:[#allocation43_spill] sm:$0xff] }
 0x324   :  { %7280 = vst [vmem:[#allocation72_spill] sm:$0xff] %v5727_v24  ;;  %1920 = vmatmul.f32.gmra.mxu3 %v5727_v24  ;;  %v1292_v24 = vpop.f32.mrf.mxu2 }
 0x325   :  { %7284 = vst [vmem:[#allocation74_spill] sm:$0xff] %v5743_v17 }
 0x327   :  { %v1148_v2 = vpop.f32.mrf.mxu1 }
 0x328   :  { %v1232_v15 = vmul.f32 %v5253_v41, %v1148_v2  ;;  %v1218_v2 = vmul.f32 %v1156_v57, %v5605_v58  ;;  %v1396_v58 = vmul.f32 %v5283_v37, %v1286_v45  ;;  %v1168_v45 = vpop.permute.xlu1 %1167 }
 0x32a   :  { %v5738_v54 = vadd.f32 %v1232_v15, %v7281_v56  ;;  %1875 = vmatmul.f32.gmra.mxu1 %v5732_v10  ;;  %v5750_v15 = vpop.f32.mrf.mxu3  ;;  %v5756_v34 = vadd.f32 %v1218_v2, %v7240_v8  ;;  %v5771_v57 = vadd.f32 %v1396_v58, %v7243_v1  ;;  %v7327_v10 = vld [vmem:[#allocation41_spill] sm:$0xff] }
 0x32c   :  { %7283 = vst [vmem:[#allocation73_spill] sm:$0xff] %v5738_v54  ;;  %1923 = vmatmul.f32.gmra.mxu3 %v5738_v54  ;;  %v7326_v54 = vld [vmem:[#allocation31_spill] sm:$0xff] }
 0x32d   :  { %7286 = vst [vmem:[#allocation76_spill] sm:$0xff] %v5756_v34 }
 0x32e   :  { %7289 = vst [vmem:[#allocation79_spill] sm:$0xff] %v5771_v57 }
 0x32f   :  { %v1151_v40 = vpop.f32.mrf.mxu1 }
 0x330   :  { %v1233_v52 = vmul.f32 %v5271_v31, %v1151_v40  ;;  %v5759_v31 = vadd.f32 %v1395_v63, %v7240_v8  ;;  %v1295_v40 = vpop.f32.mrf.mxu2  ;;  %v1220_v8 = vmul.f32 %v1164_v43, %v5627_v12  ;;  %v1398_v12 = vmul.f32 %v5291_v55, %v1292_v24  ;;  %v1176_v24 = vpop.permute.xlu1 %1175 }
 0x332   :  { %v5747_v41 = vadd.f32 %v1233_v52, %v4670_v47  ;;  %1878 = vmatmul.f32.gmra.mxu1 %v5743_v17  ;;  %7287 = vst [vmem:[#allocation77_spill] sm:$0xff] %v5759_v31  ;;  %v1219_v52 = vmul.f32 %v1160_v30, %v5616_v6  ;;  %v5764_v17 = vpop.f32.mrf.mxu3  ;;  %v1397_v6 = vmul.f32 %v5368_v28, %v1289_v51  ;;  %v1172_v51 = vpop.permute.xlu2 %1171 }
 0x333   :  { %v5780_v37 = vadd.f32 %v1220_v8, %v7246_v29  ;;  %v5795_v43 = vadd.f32 %v1398_v12, %v7248_v14 }
 0x334   :  { %7285 = vst [vmem:[#allocation75_spill] sm:$0xff] %v5747_v41  ;;  %1926 = vmatmul.f32.gmra.mxu3 %v5747_v41  ;;  %v5768_v20 = vadd.f32 %v1219_v52, %v7243_v1  ;;  %v5783_v30 = vadd.f32 %v1397_v6, %v7246_v29  ;;  %v1221_v1 = vmul.f32 %v1168_v45, %v5636_v59  ;;  %v7323_v41 = vld [vmem:[#allocation38_spill] sm:$0xff] }
 0x335   :  { %7290 = vst [vmem:[#allocation80_spill] sm:$0xff] %v5780_v37  ;;  %v1222_v29 = vmul.f32 %v1172_v51, %v5647_v36  ;;  %v1399_v59 = vmul.f32 %v5303_v18, %v1295_v40  ;;  %v1223_v45 = vmul.f32 %v1176_v24, %v5657_v4 }
 0x336   :  { %7288 = vst [vmem:[#allocation78_spill] sm:$0xff] %v5768_v20  ;;  %v5790_v28 = vadd.f32 %v1221_v1, %v7248_v14 }
 0x337   :  { %7291 = vst [vmem:[#allocation81_spill] sm:$0xff] %v5783_v30  ;;  %v5802_v55 = vadd.f32 %v1222_v29, %v7251_v49  ;;  %v5805_v8 = vadd.f32 %v1399_v59, %v7251_v49  ;;  %v5814_v18 = vadd.f32 %v1223_v45, %v7255_v21 }
 0x338   :  { %v1298_v2 = vpop.f32.mrf.mxu2  ;;  %7292 = vst [vmem:[#allocation82_spill] sm:$0xff] %v5790_v28 }
 0x339   :  { %7293 = vst [vmem:[#allocation83_spill] sm:$0xff] %v5795_v43  ;;  %v1400_v36 = vmul.f32 %v5322_v22, %v1298_v2  ;;  %v1184_v2 = vpop.permute.xlu0 %1183 }
 0x33a   :  { %1881 = vmatmul.f32.gmra.mxu1 %v5756_v34  ;;  %v5777_v63 = vpop.f32.mrf.mxu3  ;;  %7294 = vst [vmem:[#allocation84_spill] sm:$0xff] %v5802_v55  ;;  %v1180_v40 = vpop.permute.xlu2 %1179 }
 0x33b   :  { %7295 = vst [vmem:[#allocation85_spill] sm:$0xff] %v5805_v8  ;;  %v5817_v1 = vadd.f32 %v1400_v36, %v7255_v21  ;;  %v1224_v12 = vmul.f32 %v1180_v40, %v5665_v9  ;;  %v1225_v21 = vmul.f32 %v1184_v2, %v5671_v60  ;;  %v5845_v36 = vpop.f32.mrf.mxu1 }
 0x33c   :  { %1929 = vmatmul.f32.gmra.mxu3 %v5759_v31  ;;  %7296 = vst [vmem:[#allocation86_spill] sm:$0xff] %v5814_v18 }
 0x33d   :  { %7297 = vst [vmem:[#allocation87_spill] sm:$0xff] %v5817_v1  ;;  %v5826_v22 = vadd.f32 %v1224_v12, %v7258_v32 }
 0x33f   :  { %7298 = vst [vmem:[#allocation88_spill] sm:$0xff] %v5826_v22 }
 0x340   :  { %v1301_v52 = vpop.f32.mrf.mxu2 }
 0x341   :  { %v1401_v4 = vmul.f32 %v5328_v50, %v1301_v52  ;;  %v5838_v50 = vadd.f32 %v1225_v21, %v7260_v61  ;;  %v1188_v52 = vpop.permute.xlu1 %1187 }
 0x342   :  { %1884 = vmatmul.f32.gmra.mxu1 %v5768_v20  ;;  %v5792_v58 = vpop.f32.mrf.mxu3  ;;  %v1192_v40 = vpop.permute.xlu2 %1191 }
 0x343   :  { %v5829_v29 = vadd.f32 %v1401_v4, %v7258_v32  ;;  %7300 = vst [vmem:[#allocation90_spill] sm:$0xff] %v5838_v50  ;;  %v1226_v32 = vmul.f32 %v1188_v52, %v5679_v26  ;;  %v1227_v26 = vmul.f32 %v1192_v40, %v5685_v5  ;;  %v5861_v2 = vpop.f32.mrf.mxu1 }
 0x344   :  { %1932 = vmatmul.f32.gmra.mxu3 %v5771_v57  ;;  %v7362_v57 = vld [vmem:[#allocation29_spill] sm:$0xff] }
 0x345   :  { %7299 = vst [vmem:[#allocation89_spill] sm:$0xff] %v5829_v29 }
 0x348   :  { %v1304_v6 = vpop.f32.mrf.mxu2 }
 0x349   :  { %v1402_v9 = vmul.f32 %v5391_v42, %v1304_v6  ;;  %v5850_v6 = vadd.f32 %v1226_v32, %v7263_v48  ;;  %v1200_v32 = vpop.permute.xlu1 %1199 }
 0x34a   :  { %1887 = vmatmul.f32.gmra.mxu1 %v5780_v37  ;;  %v5808_v14 = vpop.f32.mrf.mxu3 }
 0x34b   :  { %v5841_v45 = vadd.f32 %v1402_v9, %v7260_v61  ;;  %7302 = vst [vmem:[#allocation92_spill] sm:$0xff] %v5850_v6  ;;  %v5878_v52 = vpop.f32.mrf.mxu1 }
 0x34c   :  { %1935 = vmatmul.f32.gmra.mxu3 %v5783_v30 }
 0x34d   :  { %7301 = vst [vmem:[#allocation91_spill] sm:$0xff] %v5841_v45 }
 0x350   :  { %v1307_v49 = vpop.f32.mrf.mxu2 }
 0x351   :  { %v1403_v42 = vmul.f32 %v5347_v11, %v1307_v49  ;;  %v5864_v11 = vadd.f32 %v1227_v26, %v7265_v19  ;;  %v1196_v49 = vpop.permute.xlu0 %1195 }
 0x352   :  { %1890 = vmatmul.f32.gmra.mxu1 %v5790_v28  ;;  %v5822_v51 = vpop.f32.mrf.mxu3  ;;  %v1228_v5 = vmul.f32 %v1196_v49, %v5693_v38 }
 0x353   :  { %v5855_v61 = vadd.f32 %v1403_v42, %v7263_v48  ;;  %7304 = vst [vmem:[#allocation94_spill] sm:$0xff] %v5864_v11  ;;  %v1229_v42 = vmul.f32 %v1200_v32, %v5703_v62 }
 0x354   :  { %1938 = vmatmul.f32.gmra.mxu3 %v5795_v43 }
 0x355   :  { %7303 = vst [vmem:[#allocation93_spill] sm:$0xff] %v5855_v61 }
 0x358   :  { %v1310_v59 = vpop.f32.mrf.mxu2 }
 0x359   :  { %v1404_v4 = vmul.f32 %v5356_v0, %v1310_v59  ;;  %v5876_v59 = vadd.f32 %v1228_v5, %v7267_v44 }
 0x35a   :  { %1893 = vmatmul.f32.gmra.mxu1 %v5802_v55  ;;  %v5835_v24 = vpop.f32.mrf.mxu3 }
 0x35b   :  { %v5867_v21 = vadd.f32 %v1404_v4, %v7265_v19  ;;  %7306 = vst [vmem:[#allocation96_spill] sm:$0xff] %v5876_v59  ;;  %v5895_v4 = vpop.f32.mrf.mxu1 }
 0x35c   :  { %1941 = vmatmul.f32.gmra.mxu3 %v5805_v8 }
 0x35d   :  { %7305 = vst [vmem:[#allocation95_spill] sm:$0xff] %v5867_v21 }
 0x360   :  { %v1313_v60 = vpop.f32.mrf.mxu2 }
 0x361   :  { %v1405_v0 = vmul.f32 %v5418_v23, %v1313_v60  ;;  %v5890_v60 = vadd.f32 %v1229_v42, %v7271_v46 }
 0x362   :  { %1896 = vmatmul.f32.gmra.mxu1 %v5814_v18  ;;  %v5852_v12 = vpop.f32.mrf.mxu3  ;;  %v1653_v18 = vpop.f32.mrf.mxu0 }
 0x363   :  { %v5881_v19 = vadd.f32 %v1405_v0, %v7267_v44  ;;  %7308 = vst [vmem:[#allocation98_spill] sm:$0xff] %v5890_v60 }
 0x364   :  { %1944 = vmatmul.f32.gmra.mxu3 %v5817_v1  ;;  %v7351_v1 = vld [vmem:[#allocation57_spill] sm:$0xff] }
 0x365   :  { %7307 = vst [vmem:[#allocation97_spill] sm:$0xff] %v5881_v19 }
 0x368   :  { %v1316_v48 = vpop.f32.mrf.mxu2 }
 0x369   :  { %v1406_v23 = vmul.f32 %v5372_v25, %v1316_v48 }
 0x36a   :  { %1899 = vmatmul.f32.gmra.mxu1 %v5826_v22  ;;  %v5870_v9 = vpop.f32.mrf.mxu3  ;;  %v7350_v22 = vld [vmem:[#allocation37_spill] sm:$0xff]  ;;  %v1656_v43 = vpop.f32.mrf.mxu0 }
 0x36b   :  { %v5893_v26 = vadd.f32 %v1406_v23, %v7271_v46 }
 0x36c   :  { %1947 = vmatmul.f32.gmra.mxu3 %v5829_v29  ;;  %v7348_v29 = vld [vmem:[#allocation56_spill] sm:$0xff] }
 0x36d   :  { %7309 = vst [vmem:[#allocation99_spill] sm:$0xff] %v5893_v26 }
 0x370   :  { %v1319_v38 = vpop.f32.mrf.mxu2 }
 0x371   :  { %v1407_v62 = vmul.f32 %v5387_v35, %v1319_v38 }
 0x372   :  { %1902 = vmatmul.f32.gmra.mxu1 %v5838_v50  ;;  %v5886_v40 = vpop.f32.mrf.mxu3  ;;  %v7347_v50 = vld [vmem:[#allocation16_spill] sm:$0xff] }
 0x373   :  { %v5903_v5 = vadd.f32 %v1407_v62, %v7274_v3 }
 0x374   :  { %1950 = vmatmul.f32.gmra.mxu3 %v5841_v45  ;;  %v7345_v45 = vld [vmem:[#allocation54_spill] sm:$0xff] }
 0x375   :  { %7310 = vst [vmem:[#allocation100_spill] sm:$0xff] %v5903_v5 }
 0x378   :  { %v1322_v44 = vpop.f32.mrf.mxu2 }
 0x379   :  { %v1408_v25 = vmul.f32 %v5442_v27, %v1322_v44  ;;  %v7315_v44 = vld [vmem:[#allocation33_spill] sm:$0xff] }
 0x37a   :  { %1905 = vmatmul.f32.gmra.mxu1 %v5850_v6  ;;  %v5900_v49 = vpop.f32.mrf.mxu3  ;;  %v7344_v6 = vld [vmem:[#allocation45_spill] sm:$0xff] }
 0x37b   :  { %v5910_v0 = vadd.f32 %v1408_v25, %v7278_v7  ;;  %v7314_v7 = vld [vmem:[#allocation51_spill] sm:$0xff] }
 0x37c   :  { %1953 = vmatmul.f32.gmra.mxu3 %v5855_v61  ;;  %v7317_v25 = vld [vmem:[#allocation67_spill] sm:$0xff]  ;;  %v7342_v61 = vld [vmem:[#allocation52_spill] sm:$0xff] }
 0x37d   :  { %7311 = vst [vmem:[#allocation101_spill] sm:$0xff] %v5910_v0 }
 0x380   :  { %v1325_v48 = vpop.f32.mrf.mxu2 }
 0x381   :  { %v1409_v35 = vmul.f32 %v5399_v33, %v1325_v48  ;;  %v1588_v33 = vmul.f32 %v7314_v7, %v5690_v53  ;;  %v7318_v48 = vld [vmem:[#allocation55_spill] sm:$0xff] }
 0x382   :  { %1908 = vmatmul.f32.gmra.mxu1 %v5864_v11  ;;  %v7341_v11 = vld [vmem:[#allocation44_spill] sm:$0xff] }
 0x383   :  { %v5917_v42 = vadd.f32 %v1409_v35, %v7281_v56  ;;  %v5932_v56 = vadd.f32 %v1588_v33, %v7315_v44 }
 0x384   :  { %1956 = vmatmul.f32.gmra.mxu3 %v5867_v21  ;;  %v7339_v21 = vld [vmem:[#allocation50_spill] sm:$0xff] }
 0x385   :  { %7312 = vst [vmem:[#allocation102_spill] sm:$0xff] %v5917_v42 }
 0x386   :  { %7316 = vst [vmem:[#allocation51_spill] sm:$0xff] %v5932_v56 }
 0x388   :  { %v1328_v3 = vpop.f32.mrf.mxu2 }
 0x389   :  { %v1410_v27 = vmul.f32 %v5407_v13, %v1328_v3  ;;  %v1589_v13 = vmul.f32 %v7318_v48, %v7317_v25  ;;  %v7319_v3 = vld [vmem:[#allocation36_spill] sm:$0xff] }
 0x38a   :  { %1911 = vmatmul.f32.gmra.mxu1 %v5876_v59  ;;  %v7338_v59 = vld [vmem:[#allocation49_spill] sm:$0xff] }
 0x38b   :  { %v5924_v23 = vadd.f32 %v1410_v27, %v4670_v47  ;;  %v5940_v47 = vadd.f32 %v1589_v13, %v7319_v3  ;;  %v7321_v27 = vld [vmem:[#allocation69_spill] sm:$0xff] }
 0x38c   :  { %1959 = vmatmul.f32.gmra.mxu3 %v5881_v19  ;;  %v7336_v19 = vld [vmem:[#allocation48_spill] sm:$0xff] }
 0x38d   :  { %7313 = vst [vmem:[#allocation103_spill] sm:$0xff] %v5924_v23 }
 0x38e   :  { %7320 = vst [vmem:[#allocation33_spill] sm:$0xff] %v5940_v47 }
 0x392   :  { %1914 = vmatmul.f32.gmra.mxu1 %v5890_v60  ;;  %v7335_v60 = vld [vmem:[#allocation39_spill] sm:$0xff] }
 0x394   :  { %1962 = vmatmul.f32.gmra.mxu3 %v5893_v26  ;;  %v7333_v26 = vld [vmem:[#allocation46_spill] sm:$0xff] }
 0x39c   :  { %1965 = vmatmul.f32.gmra.mxu3 %v5903_v5  ;;  %v7332_v5 = vld [vmem:[#allocation47_spill] sm:$0xff] }
 0x39f   :  { %v5907_v46 = vpop.f32.mrf.mxu3 }
 0x3a4   :  { %1968 = vmatmul.f32.gmra.mxu3 %v5910_v0  ;;  %v7329_v0 = vld [vmem:[#allocation28_spill] sm:$0xff] }
 0x3a7   :  { %v5914_v32 = vpop.f32.mrf.mxu3 }
 0x3ac   :  { %1971 = vmatmul.f32.gmra.mxu3 %v5917_v42  ;;  %v7325_v42 = vld [vmem:[#allocation71_spill] sm:$0xff] }
 0x3ad   :  { %v1591_v25 = vmul.f32 %v7326_v54, %v7325_v42  ;;  %v1593_v54 = vmul.f32 %v7332_v5, %v5750_v15  ;;  %v1595_v15 = vmul.f32 %v7338_v59, %v5777_v63  ;;  %v1597_v63 = vmul.f32 %v7344_v6, %v5808_v14 }
 0x3ae   :  { %v1599_v14 = vmul.f32 %v7350_v22, %v5835_v24  ;;  %v7356_v22 = vld [vmem:[#allocation40_spill] sm:$0xff] }
 0x3af   :  { %v5921_v38 = vpop.f32.mrf.mxu3  ;;  %v5956_v13 = vadd.f32 %v1591_v25, %v7327_v10  ;;  %v5972_v25 = vadd.f32 %v1593_v54, %v7333_v26  ;;  %v5988_v54 = vadd.f32 %v1595_v15, %v7339_v21  ;;  %v6004_v15 = vadd.f32 %v1597_v63, %v7345_v45 }
 0x3b0   :  { %v6020_v63 = vadd.f32 %v1599_v14, %v7351_v1  ;;  %v1601_v24 = vmul.f32 %v7356_v22, %v5870_v9  ;;  %v7358_v14 = vld [vmem:[#allocation25_spill] sm:$0xff]  ;;  %v7364_v9 = vld [vmem:[#allocation35_spill] sm:$0xff] }
 0x3b1   :  { %7328 = vst [vmem:[#allocation55_spill] sm:$0xff] %v5956_v13  ;;  %v1603_v22 = vmul.f32 %v7364_v9, %v5900_v49 }
 0x3b2   :  { %7334 = vst [vmem:[#allocation69_spill] sm:$0xff] %v5972_v25  ;;  %v6036_v30 = vadd.f32 %v1601_v24, %v7358_v14  ;;  %v7366_v24 = vld [vmem:[#allocation32_spill] sm:$0xff] }
 0x3b3   :  { %7340 = vst [vmem:[#allocation38_spill] sm:$0xff] %v5988_v54  ;;  %v6052_v34 = vadd.f32 %v1603_v22, %v7366_v24 }
 0x3b4   :  { %1974 = vmatmul.f32.gmra.mxu3 %v5924_v23  ;;  %v7322_v23 = vld [vmem:[#allocation53_spill] sm:$0xff]  ;;  %7346 = vst [vmem:[#allocation31_spill] sm:$0xff] %v6004_v15 }
 0x3b5   :  { %v1590_v53 = vmul.f32 %v7322_v23, %v7321_v27  ;;  %v1592_v23 = vmul.f32 %v7329_v0, %v5735_v16  ;;  %v1594_v16 = vmul.f32 %v7335_v60, %v5764_v17  ;;  %v1596_v17 = vmul.f32 %v7341_v11, %v5792_v58  ;;  %7352 = vst [vmem:[#allocation28_spill] sm:$0xff] %v6020_v63 }
 0x3b6   :  { %v1598_v58 = vmul.f32 %v7347_v50, %v5822_v51  ;;  %v7353_v51 = vld [vmem:[#allocation42_spill] sm:$0xff]  ;;  %7359 = vst [vmem:[#allocation46_spill] sm:$0xff] %v6036_v30 }
 0x3b7   :  { %v5929_v62 = vpop.f32.mrf.mxu3  ;;  %v5948_v33 = vadd.f32 %v1590_v53, %v7323_v41  ;;  %v5964_v53 = vadd.f32 %v1592_v23, %v7330_v39  ;;  %v5980_v23 = vadd.f32 %v1594_v16, %v7336_v19  ;;  %v5996_v16 = vadd.f32 %v1596_v17, %v7342_v61  ;;  %7367 = vst [vmem:[#allocation50_spill] sm:$0xff] %v6052_v34 }
 0x3b8   :  { %v6012_v17 = vadd.f32 %v1598_v58, %v7348_v29  ;;  %v1600_v50 = vmul.f32 %v7353_v51, %v5852_v12  ;;  %v7354_v58 = vld [vmem:[#allocation21_spill] sm:$0xff]  ;;  %v7360_v12 = vld [vmem:[#allocation22_spill] sm:$0xff] }
 0x3b9   :  { %7324 = vst [vmem:[#allocation67_spill] sm:$0xff] %v5948_v33  ;;  %v1602_v51 = vmul.f32 %v7360_v12, %v5886_v40  ;;  %v7368_v40 = vld [vmem:[#allocation34_spill] sm:$0xff] }
 0x3ba   :  { %7331 = vst [vmem:[#allocation36_spill] sm:$0xff] %v5964_v53  ;;  %v6028_v55 = vadd.f32 %v1600_v50, %v7354_v58  ;;  %v1659_v50 = vpop.f32.mrf.mxu0  ;;  %v1765_v12 = vmul.f32 %v7368_v40, %v1653_v18 }
 0x3bb   :  { %7337 = vst [vmem:[#allocation53_spill] sm:$0xff] %v5980_v23  ;;  %v6044_v20 = vadd.f32 %v1602_v51, %v7362_v57 }
 0x3bc   :  { %1977 = vmatmul.f32.gmra.mxu3 %v5932_v56  ;;  %7343 = vst [vmem:[#allocation71_spill] sm:$0xff] %v5996_v16  ;;  %v6059_v51 = vadd.f32 %v1765_v12, %v7315_v44  ;;  %v7375_v12 = vld [vmem:[#allocation20_spill] sm:$0xff] }
 0x3bd   :  { %7349 = vst [vmem:[#allocation41_spill] sm:$0xff] %v6012_v17 }
 0x3be   :  { %7355 = vst [vmem:[#allocation43_spill] sm:$0xff] %v6028_v55 }
 0x3bf   :  { %v5937_v35 = vpop.f32.mrf.mxu3  ;;  %7363 = vst [vmem:[#allocation48_spill] sm:$0xff] %v6044_v20 }
 0x3c0   :  { %7370 = vst [vmem:[#allocation52_spill] sm:$0xff] %v6059_v51 }
 0x3c2   :  { %v1662_v56 = vpop.f32.mrf.mxu0 }
 0x3c4   :  { %1980 = vmatmul.f32.gmra.mxu3 %v5940_v47 }
 0x3c7   :  { %v5945_v7 = vpop.f32.mrf.mxu3 }
 0x3cc   :  { %1983 = vmatmul.f32.gmra.mxu3 %v5948_v33  ;;  %v1665_v33 = vpop.f32.mrf.mxu0 }
 0x3cf   :  { %v5953_v48 = vpop.f32.mrf.mxu3 }
 0x3d4   :  { %1986 = vmatmul.f32.gmra.mxu3 %v5956_v13  ;;  %v7371_v13 = vld [vmem:[#allocation26_spill] sm:$0xff]  ;;  %v1668_v18 = vpop.f32.mrf.mxu0 }
 0x3d5   :  { %v1766_v49 = vmul.f32 %v7371_v13, %v1656_v43 }
 0x3d7   :  { %v5961_v27 = vpop.f32.mrf.mxu3  ;;  %v6066_v22 = vadd.f32 %v1766_v49, %v7319_v3  ;;  %v7377_v49 = vld [vmem:[#allocation24_spill] sm:$0xff] }
 0x3d9   :  { %7372 = vst [vmem:[#allocation45_spill] sm:$0xff] %v6066_v22 }
 0x3dc   :  { %1989 = vmatmul.f32.gmra.mxu3 %v5964_v53  ;;  %v7373_v53 = vld [vmem:[#allocation18_spill] sm:$0xff]  ;;  %v1671_v13 = vpop.f32.mrf.mxu0 }
 0x3df   :  { %v5969_v42 = vpop.f32.mrf.mxu3 }
 0x3e4   :  { %1992 = vmatmul.f32.gmra.mxu3 %v5972_v25  ;;  %v1767_v25 = vmul.f32 %v7373_v53, %v1659_v50  ;;  %v1769_v53 = vmul.f32 %v7377_v49, %v1665_v33 }
 0x3e6   :  { %v6073_v44 = vadd.f32 %v1767_v25, %v7323_v41  ;;  %v1674_v41 = vpop.f32.mrf.mxu0  ;;  %v7379_v25 = vld [vmem:[#allocation30_spill] sm:$0xff] }
 0x3e7   :  { %v5977_v0 = vpop.f32.mrf.mxu3 }
 0x3e8   :  { %7374 = vst [vmem:[#allocation54_spill] sm:$0xff] %v6073_v44 }
 0x3ec   :  { %1995 = vmatmul.f32.gmra.mxu3 %v5980_v23 }
 0x3ef   :  { %v5985_v5 = vpop.f32.mrf.mxu3 }
 0x3f4   :  { %1998 = vmatmul.f32.gmra.mxu3 %v5988_v54 }
 0x3f7   :  { %v5993_v60 = vpop.f32.mrf.mxu3 }
 0x3fc   :  { %2001 = vmatmul.f32.gmra.mxu3 %v5996_v16 }
 0x3ff   :  { %v6001_v59 = vpop.f32.mrf.mxu3 }
 0x404   :  { %2004 = vmatmul.f32.gmra.mxu3 %v6004_v15 }
 0x407   :  { %v6009_v11 = vpop.f32.mrf.mxu3 }
 0x40c   :  { %2007 = vmatmul.f32.gmra.mxu3 %v6012_v17 }
 0x40f   :  { %v6017_v6 = vpop.f32.mrf.mxu3 }
 0x414   :  { %2010 = vmatmul.f32.gmra.mxu3 %v6020_v63 }
 0x417   :  { %v6025_v8 = vpop.f32.mrf.mxu3 }
 0x41c   :  { %2013 = vmatmul.f32.gmra.mxu3 %v6028_v55 }
 0x41f   :  { %v6033_v28 = vpop.f32.mrf.mxu3 }
 0x420   :  { %7357 = vst [vmem:[#allocation47_spill] sm:$0xff] %v6033_v28 }
 0x424   :  { %2016 = vmatmul.f32.gmra.mxu3 %v6036_v30 }
 0x427   :  { %v6041_v37 = vpop.f32.mrf.mxu3 }
 0x428   :  { %7361 = vst [vmem:[#allocation39_spill] sm:$0xff] %v6041_v37 }
 0x42c   :  { %2019 = vmatmul.f32.gmra.mxu3 %v6044_v20 }
 0x42f   :  { %v6049_v31 = vpop.f32.mrf.mxu3 }
 0x430   :  { %7365 = vst [vmem:[#allocation49_spill] sm:$0xff] %v6049_v31 }
 0x434   :  { %2022 = vmatmul.f32.gmra.mxu3 %v6052_v34 }
 0x437   :  { %v6056_v47 = vpop.f32.mrf.mxu3 }
 0x438   :  { %7369 = vst [vmem:[#allocation44_spill] sm:$0xff] %v6056_v47 }
 0x43c   :  { %2025 = vmatmul.f32.gmra.mxu3 %v6059_v51  ;;  %v1768_v51 = vmul.f32 %v7375_v12, %v1662_v56  ;;  %v1770_v56 = vmul.f32 %v7379_v25, %v1668_v18 }
 0x43e   :  { %v6080_v3 = vadd.f32 %v1768_v51, %v7327_v10  ;;  %v1677_v10 = vpop.f32.mrf.mxu0  ;;  %v7381_v51 = vld [vmem:[#allocation58_spill] sm:$0xff] }
 0x43f   :  { %v6063_v9 = vpop.f32.mrf.mxu3  ;;  %v1771_v33 = vmul.f32 %v7381_v51, %v1671_v13 }
 0x440   :  { %7376 = vst [vmem:[#allocation16_spill] sm:$0xff] %v6080_v3 }
 0x444   :  { %2028 = vmatmul.f32.gmra.mxu3 %v6066_v22  ;;  %v6087_v22 = vadd.f32 %v1769_v53, %v7330_v39  ;;  %v6101_v39 = vadd.f32 %v1771_v33, %v7336_v19  ;;  %v7383_v53 = vld [vmem:[#allocation59_spill] sm:$0xff]  ;;  %v7387_v33 = vld [vmem:[#allocation61_spill] sm:$0xff] }
 0x446   :  { %7378 = vst [vmem:[#allocation56_spill] sm:$0xff] %v6087_v22  ;;  %v1680_v18 = vpop.f32.mrf.mxu0 }
 0x447   :  { %v6070_v40 = vpop.f32.mrf.mxu3  ;;  %7382 = vst [vmem:[#allocation57_spill] sm:$0xff] %v6101_v39 }
 0x44c   :  { %2031 = vmatmul.f32.gmra.mxu3 %v6073_v44  ;;  %v6094_v44 = vadd.f32 %v1770_v56, %v7333_v26  ;;  %v7385_v56 = vld [vmem:[#allocation60_spill] sm:$0xff] }
 0x44e   :  { %7380 = vst [vmem:[#allocation37_spill] sm:$0xff] %v6094_v44  ;;  %v1683_v51 = vpop.f32.mrf.mxu0 }
 0x44f   :  { %v6077_v43 = vpop.f32.mrf.mxu3 }
 0x454   :  { %2034 = vmatmul.f32.gmra.mxu3 %v6080_v3  ;;  %v1772_v3 = vmul.f32 %v7383_v53, %v1674_v41  ;;  %v1774_v41 = vmul.f32 %v7387_v33, %v1680_v18 }
 0x456   :  { %v6108_v26 = vadd.f32 %v1772_v3, %v7339_v21  ;;  %v1686_v21 = vpop.f32.mrf.mxu0  ;;  %v7389_v3 = vld [vmem:[#allocation63_spill] sm:$0xff] }
 0x457   :  { %v6084_v50 = vpop.f32.mrf.mxu3 }
 0x458   :  { %7384 = vst [vmem:[#allocation42_spill] sm:$0xff] %v6108_v26 }
 0x45c   :  { %2037 = vmatmul.f32.gmra.mxu3 %v6087_v22  ;;  %v1773_v22 = vmul.f32 %v7385_v56, %v1677_v10  ;;  %v1775_v10 = vmul.f32 %v7389_v3, %v1683_v51 }
 0x45e   :  { %v6115_v19 = vadd.f32 %v1773_v22, %v7342_v61  ;;  %v1689_v61 = vpop.f32.mrf.mxu0  ;;  %v7391_v22 = vld [vmem:[#allocation62_spill] sm:$0xff] }
 0x45f   :  { %v6091_v12 = vpop.f32.mrf.mxu3  ;;  %v1776_v18 = vmul.f32 %v7391_v22, %v1686_v21 }
 0x460   :  { %7386 = vst [vmem:[#allocation21_spill] sm:$0xff] %v6115_v19 }
 0x461   :  { %v6140_v51 = vadd.f32 %v1776_v18, %v7351_v1 }
 0x463   :  { %7392 = vst [vmem:[#allocation22_spill] sm:$0xff] %v6140_v51 }
 0x464   :  { %2040 = vmatmul.f32.gmra.mxu3 %v6094_v44  ;;  %v6122_v44 = vadd.f32 %v1774_v41, %v7345_v45  ;;  %v6136_v45 = vld [vmem:[%s6967_s6] ss:$0 sm:$0xff] }
 0x466   :  { %7388 = vst [vmem:[#allocation40_spill] sm:$0xff] %v6122_v44  ;;  %v1692_v23 = vpop.f32.mrf.mxu0 }
 0x467   :  { %v6098_v49 = vpop.f32.mrf.mxu3 }
 0x46c   :  { %2043 = vmatmul.f32.gmra.mxu3 %v6101_v39  ;;  %v6129_v39 = vadd.f32 %v1775_v10, %v7348_v29  ;;  %v6145_v29 = vld [vmem:[%s6967_s6 + $0x1] ss:$0 sm:$0xff]  ;;  %v7393_v10 = vld [vmem:[#allocation64_spill] sm:$0xff] }
 0x46d   :  { %v1777_v22 = vmul.f32 %v7393_v10, %v1689_v61 }
 0x46e   :  { %7390 = vst [vmem:[#allocation25_spill] sm:$0xff] %v6129_v39  ;;  %v1695_v61 = vpop.f32.mrf.mxu0 }
 0x46f   :  { %v6105_v25 = vpop.f32.mrf.mxu3  ;;  %v6152_v1 = vadd.f32 %v1777_v22, %v7354_v58 }
 0x471   :  { %7394 = vst [vmem:[#allocation29_spill] sm:$0xff] %v6152_v1 }
 0x474   :  { %2046 = vmatmul.f32.gmra.mxu3 %v6108_v26 }
 0x477   :  { %v6112_v13 = vpop.f32.mrf.mxu3 }
 0x47c   :  { %2049 = vmatmul.f32.gmra.mxu3 %v6115_v19 }
 0x47f   :  { %v6119_v53 = vpop.f32.mrf.mxu3 }
 0x484   :  { %2052 = vmatmul.f32.gmra.mxu3 %v6122_v44 }
 0x487   :  { %v6126_v56 = vpop.f32.mrf.mxu3 }
 0x48c   :  { %2055 = vmatmul.f32.gmra.mxu3 %v6129_v39 }
 0x48f   :  { %v2008_v33 = vpop.f32.mrf.mxu3 }
 0x490   :  { %v2009_v41 = vadd.f32 %v6136_v45, %v2008_v33 }
 0x492   :  { %v2132_v3 = vmax.f32 %v2009_v41, 0.0  ;;  %v7395_v41 = vld [vmem:[#allocation65_spill] sm:$0xff] }
 0x493   :  { %v1778_v19 = vmul.f32 %v7395_v41, %v1692_v23 }
 0x494   :  { %2058 = vmatmul.f32.gmra.mxu3 %v6140_v51  ;;  %v2216_v21 = vmul.f32 %v6145_v29, %v2132_v3 }
 0x496   :  { %2354 = vadd.xlane.f32.xlu2 %v2216_v21  ;;  %v6159_v21 = vadd.f32 %v1778_v19, %v7358_v14  ;;  %v7399_v19 = vld [vmem:[#allocation68_spill] sm:$0xff] }
 0x497   :  { %v2011_v26 = vpop.f32.mrf.mxu3 }
 0x498   :  { %v2012_v33 = vadd.f32 %v6136_v45, %v2011_v26  ;;  %7396 = vst [vmem:[#allocation35_spill] sm:$0xff] %v6159_v21  ;;  %v7397_v26 = vld [vmem:[#allocation66_spill] sm:$0xff] }
 0x499   :  { %v1779_v22 = vmul.f32 %v7397_v26, %v1695_v61 }
 0x49a   :  { %v2133_v18 = vmax.f32 %v2012_v33, 0.0 }
 0x49b   :  { %v6166_v23 = vadd.f32 %v1779_v22, %v7362_v57 }
 0x49c   :  { %2061 = vmatmul.f32.gmra.mxu3 %v6152_v1  ;;  %v2217_v54 = vmul.f32 %v6145_v29, %v2133_v18 }
 0x49d   :  { %7398 = vst [vmem:[#allocation32_spill] sm:$0xff] %v6166_v23 }
 0x49e   :  { %2356 = vadd.xlane.f32.xlu0 %v2217_v54 }
 0x49f   :  { %v2014_v16 = vpop.f32.mrf.mxu3 }
 0x4a0   :  { %v2015_v3 = vadd.f32 %v6136_v45, %v2014_v16  ;;  %v1698_v16 = vpop.f32.mrf.mxu0 }
 0x4a1   :  { %v1780_v41 = vmul.f32 %v7399_v19, %v1698_v16  ;;  %v6181_v16 = vpop.f32.mrf.mxu1 }
 0x4a2   :  { %v2134_v10 = vmax.f32 %v2015_v3, 0.0 }
 0x4a3   :  { %v6173_v61 = vadd.f32 %v1780_v41, %v7366_v24 }
 0x4a4   :  { %2064 = vmatmul.f32.gmra.mxu3 %v6159_v21  ;;  %v2218_v58 = vmul.f32 %v6145_v29, %v2134_v10  ;;  %v2006_v21 = vadd.f32 %v6136_v45, %v6126_v56 }
 0x4a5   :  { %7400 = vst [vmem:[#allocation34_spill] sm:$0xff] %v6173_v61 }
 0x4a6   :  { %2358 = vadd.xlane.f32.xlu1 %v2218_v58 }
 0x4a7   :  { %v2017_v33 = vpop.f32.mrf.mxu3 }
 0x4a8   :  { %v2018_v18 = vadd.f32 %v6136_v45, %v2017_v33 }
 0x4a9   :  { %v6185_v24 = vpop.f32.mrf.mxu1 }
 0x4aa   :  { %v2135_v54 = vmax.f32 %v2018_v18, 0.0 }
 0x4ac   :  { %2067 = vmatmul.f32.gmra.mxu3 %v6166_v23  ;;  %v2219_v14 = vmul.f32 %v6145_v29, %v2135_v54  ;;  %v2131_v23 = vmax.f32 %v2006_v21, 0.0  ;;  %v1997_v21 = vadd.f32 %v6136_v45, %v6105_v25 }
 0x4ae   :  { %2360 = vadd.xlane.f32.xlu2 %v2219_v14  ;;  %v2215_v28 = vmul.f32 %v6145_v29, %v2131_v23 }
 0x4af   :  { %v2020_v3 = vpop.f32.mrf.mxu3 }
 0x4b0   :  { %v2021_v10 = vadd.f32 %v6136_v45, %v2020_v3 }
 0x4b1   :  { %v6189_v41 = vpop.f32.mrf.mxu1 }
 0x4b2   :  { %v2136_v58 = vmax.f32 %v2021_v10, 0.0 }
 0x4b4   :  { %2070 = vmatmul.f32.gmra.mxu3 %v6173_v61  ;;  %v2220_v57 = vmul.f32 %v6145_v29, %v2136_v58 }
 0x4b6   :  { %2362 = vadd.xlane.f32.xlu1 %v2220_v57 }
 0x4b7   :  { %v2023_v26 = vpop.f32.mrf.mxu3 }
 0x4b8   :  { %v2024_v22 = vadd.f32 %v6136_v45, %v2023_v26 }
 0x4b9   :  { %v6195_v58 = vpop.f32.mrf.mxu1 }
 0x4ba   :  { %v2137_v33 = vmax.f32 %v2024_v22, 0.0 }
 0x4bc   :  { %v2221_v18 = vmul.f32 %v6145_v29, %v2137_v33 }
 0x4be   :  { %2364 = vadd.xlane.f32.xlu2 %v2221_v18 }
 0x4bf   :  { %v6179_v54 = vpop.f32.mrf.mxu3 }
 0x4c1   :  { %v6197_v26 = vpop.f32.mrf.mxu1 }
 0x4c7   :  { %v6183_v14 = vpop.f32.mrf.mxu3 }
 0x4c9   :  { %v6201_v33 = vpop.f32.mrf.mxu1 }
 0x4cf   :  { %v6187_v19 = vpop.f32.mrf.mxu3 }
 0x4d1   :  { %v6205_v47 = vpop.f32.mrf.mxu1 }
 0x4d7   :  { %v6191_v3 = vpop.f32.mrf.mxu3 }
 0x4d9   :  { %v6207_v39 = vpop.f32.mrf.mxu1 }
 0x4df   :  { %v6193_v10 = vpop.f32.mrf.mxu3 }
 0x4e1   :  { %v6209_v31 = vpop.f32.mrf.mxu1 }
 0x4e7   :  { %v2041_v57 = vpop.f32.mrf.mxu3 }
 0x4e9   :  { %v6212_v55 = vpop.f32.mrf.mxu1 }
 0x4ea   :  { %7401 = vst [vmem:[#allocation26_spill] sm:$0xff] %v6212_v55 }
 0x4ef   :  { %v6199_v22 = vpop.f32.mrf.mxu3 }
 0x4f7   :  { %v6203_v18 = vpop.f32.mrf.mxu3 }
 0x4ff   :  { %v2050_v44 = vpop.f32.mrf.mxu3 }
 0x500   :  { %v2051_v34 = vadd.f32 %v6136_v45, %v2050_v44 }
 0x502   :  { %v2146_v56 = vmax.f32 %v2051_v34, 0.0  ;;  %v2042_v34 = vadd.f32 %v6136_v45, %v2041_v57 }
 0x507   :  { %v2053_v15 = vpop.f32.mrf.mxu3 }
 0x50f   :  { %v2056_v17 = vpop.f32.mrf.mxu3 }
 0x517   :  { %v2059_v51 = vpop.f32.mrf.mxu3 }
 0x518   :  { %v2060_v63 = vadd.f32 %v6136_v45, %v2059_v51 }
 0x51a   :  { %v2149_v1 = vmax.f32 %v2060_v63, 0.0  ;;  %v6221_v63 = vpop.f32.mrf.mxu1 }
 0x51c   :  { %v2233_v30 = vmul.f32 %v6145_v29, %v2149_v1 }
 0x51e   :  { %2388 = vadd.xlane.f32.xlu1 %v2233_v30 }
 0x51f   :  { %v2062_v37 = vpop.f32.mrf.mxu3 }
 0x520   :  { %v2063_v20 = vadd.f32 %v6136_v45, %v2062_v37 }
 0x522   :  { %v2150_v61 = vmax.f32 %v2063_v20, 0.0  ;;  %v2230_v20 = vmul.f32 %v6145_v29, %v2146_v56  ;;  %v6228_v23 = vpop.f32.mrf.mxu1 }
 0x523   :  { %7402 = vst [vmem:[#allocation18_spill] sm:$0xff] %v6228_v23 }
 0x524   :  { %v2234_v51 = vmul.f32 %v6145_v29, %v2150_v61  ;;  %v2128_v61 = vmax.f32 %v1997_v21, 0.0 }
 0x526   :  { %2352 = vadd.xlane.f32.xlu1 %v2215_v28  ;;  %2390 = vadd.xlane.f32.xlu2 %v2234_v51 }
 0x527   :  { %v2065_v55 = vpop.f32.mrf.mxu3 }
 0x528   :  { %v2066_v1 = vadd.f32 %v6136_v45, %v2065_v55  ;;  %v2054_v55 = vadd.f32 %v6136_v45, %v2053_v15  ;;  %v2000_v15 = vadd.f32 %v6136_v45, %v6112_v13  ;;  %v2045_v13 = vadd.f32 %v6136_v45, %v6199_v22 }
 0x529   :  { %v1991_v22 = vadd.f32 %v6136_v45, %v6091_v12  ;;  %v2036_v12 = vadd.f32 %v6136_v45, %v6191_v3  ;;  %v1982_v3 = vadd.f32 %v6136_v45, %v6070_v40 }
 0x52a   :  { %v2151_v30 = vmax.f32 %v2066_v1, 0.0  ;;  %v2212_v1 = vmul.f32 %v6145_v29, %v2128_v61  ;;  %v6236_v23 = vpop.f32.mrf.mxu1 }
 0x52c   :  { %v2235_v37 = vmul.f32 %v6145_v29, %v2151_v30  ;;  %v2143_v30 = vmax.f32 %v2042_v34, 0.0 }
 0x52e   :  { %2382 = vadd.xlane.f32.xlu1 %v2230_v20  ;;  %2392 = vadd.xlane.f32.xlu0 %v2235_v37  ;;  %v2147_v20 = vmax.f32 %v2054_v55, 0.0  ;;  %v2227_v57 = vmul.f32 %v6145_v29, %v2143_v30  ;;  %v2129_v55 = vmax.f32 %v2000_v15, 0.0 }
 0x52f   :  { %v2068_v44 = vpop.f32.mrf.mxu3 }
 0x530   :  { %v2069_v28 = vadd.f32 %v6136_v45, %v2068_v44  ;;  %v1988_v44 = vadd.f32 %v6136_v45, %v6084_v50  ;;  %v2231_v61 = vmul.f32 %v6145_v29, %v2147_v20  ;;  %v2033_v50 = vadd.f32 %v6136_v45, %v6187_v19 }
 0x531   :  { %v2213_v30 = vmul.f32 %v6145_v29, %v2129_v55  ;;  %v1835_v19 = vadd.f32 %v6136_v45, %v5845_v36  ;;  %v1979_v36 = vadd.f32 %v6136_v45, %v6063_v9 }
 0x532   :  { %v2152_v51 = vmax.f32 %v2069_v28, 0.0  ;;  %v2125_v34 = vmax.f32 %v1988_v44, 0.0 }
 0x534   :  { %v2236_v25 = vmul.f32 %v6145_v29, %v2152_v51  ;;  %v2057_v51 = vadd.f32 %v6136_v45, %v2056_v17  ;;  %v2003_v17 = vadd.f32 %v6136_v45, %v6119_v53  ;;  %v2048_v53 = vadd.f32 %v6136_v45, %v6203_v18 }
 0x535   :  { %v1994_v18 = vadd.f32 %v6136_v45, %v6098_v49  ;;  %v2039_v49 = vadd.f32 %v6136_v45, %v6193_v10  ;;  %v1985_v10 = vadd.f32 %v6136_v45, %v6077_v43  ;;  %v2030_v43 = vadd.f32 %v6136_v45, %v6183_v14 }
 0x536   :  { %2346 = vadd.xlane.f32.xlu1 %v2212_v1  ;;  %2394 = vadd.xlane.f32.xlu2 %v2236_v25  ;;  %v2148_v1 = vmax.f32 %v2057_v51, 0.0  ;;  %v1885_v25 = vpop.f32.mrf.mxu1  ;;  %v2130_v44 = vmax.f32 %v2003_v17, 0.0  ;;  %v2074_v51 = vmax.f32 %v1835_v19, 0.0  ;;  %v2145_v55 = vmax.f32 %v2048_v53, 0.0 }
 0x537   :  { %v2071_v56 = vpop.f32.mrf.mxu3  ;;  %v2141_v17 = vmax.f32 %v2036_v12, 0.0  ;;  %v1886_v9 = vadd.f32 %v6136_v45, %v1885_v25  ;;  %v1883_v25 = vadd.f32 %v6136_v45, %v6236_v23  ;;  %v1931_v14 = vadd.f32 %v6136_v45, %v5937_v35 }
 0x538   :  { %v2072_v37 = vadd.f32 %v6136_v45, %v2071_v56  ;;  %v2209_v56 = vmul.f32 %v6145_v29, %v2125_v34  ;;  %v2232_v20 = vmul.f32 %v6145_v29, %v2148_v1  ;;  %v2126_v34 = vmax.f32 %v1991_v22, 0.0 }
 0x539   :  { %v2158_v1 = vmul.f32 %v6145_v29, %v2074_v51  ;;  %v2091_v19 = vmax.f32 %v1886_v9, 0.0  ;;  %v2123_v22 = vmax.f32 %v1982_v3, 0.0  ;;  %v1838_v35 = vadd.f32 %v6136_v45, %v5861_v2 }
 0x53a   :  { %v2153_v21 = vmax.f32 %v2072_v37, 0.0  ;;  %v2140_v37 = vmax.f32 %v2033_v50, 0.0  ;;  %v2210_v50 = vmul.f32 %v6145_v29, %v2126_v34  ;;  %v2090_v34 = vmax.f32 %v1883_v25, 0.0 }
 0x53b   :  { %v2207_v53 = vmul.f32 %v6145_v29, %v2123_v22 }
 0x53c   :  { %v2237_v28 = vmul.f32 %v6145_v29, %v2153_v21  ;;  %v2144_v21 = vmax.f32 %v2045_v13, 0.0  ;;  %v2224_v15 = vmul.f32 %v6145_v29, %v2140_v37  ;;  %v2229_v13 = vmul.f32 %v6145_v29, %v2145_v55 }
 0x53e   :  { %2376 = vadd.xlane.f32.xlu1 %v2227_v57  ;;  %2384 = vadd.xlane.f32.xlu2 %v2231_v61  ;;  %v2228_v57 = vmul.f32 %v6145_v29, %v2144_v21  ;;  %v2214_v61 = vmul.f32 %v6145_v29, %v2130_v44  ;;  %v2225_v21 = vmul.f32 %v6145_v29, %v2141_v17  ;;  %v2139_v17 = vmax.f32 %v2030_v43, 0.0 }
 0x53f   :  { %2396 = vadd.xlane.f32.xlu0 %v2237_v28  ;;  %v1888_v28 = vpop.f32.mrf.mxu1  ;;  %v1943_v43 = vadd.f32 %v6136_v45, %v5969_v42 }
 0x540   :  { %v1889_v40 = vadd.f32 %v6136_v45, %v1888_v28  ;;  %v2027_v28 = vadd.f32 %v6136_v45, %v6179_v54  ;;  %v2223_v3 = vmul.f32 %v6145_v29, %v2139_v17 }
 0x542   :  { %v2092_v55 = vmax.f32 %v1889_v40, 0.0 }
 0x546   :  { %2340 = vadd.xlane.f32.xlu1 %v2209_v56  ;;  %2348 = vadd.xlane.f32.xlu2 %v2213_v30  ;;  %v2122_v30 = vmax.f32 %v1979_v36, 0.0  ;;  %v2124_v36 = vmax.f32 %v1985_v10, 0.0  ;;  %v6313_v10 = vpop.xlane.xlu1 %2358 }
 0x547   :  { %2386 = vadd.xlane.f32.xlu0 %v2232_v20  ;;  %v1891_v56 = vpop.f32.mrf.mxu1  ;;  %v2127_v20 = vmax.f32 %v1994_v18, 0.0 }
 0x548   :  { %v2206_v37 = vmul.f32 %v6145_v29, %v2122_v30  ;;  %v1892_v12 = vadd.f32 %v6136_v45, %v1891_v56  ;;  %v2208_v18 = vmul.f32 %v6145_v29, %v2124_v36  ;;  %v2138_v30 = vmax.f32 %v2027_v28, 0.0 }
 0x549   :  { %v2211_v44 = vmul.f32 %v6145_v29, %v2127_v20  ;;  %v1934_v56 = vadd.f32 %v6136_v45, %v5945_v7  ;;  %v1937_v7 = vadd.f32 %v6136_v45, %v5953_v48  ;;  %v1940_v48 = vadd.f32 %v6136_v45, %v5961_v27 }
 0x54a   :  { %v2222_v9 = vmul.f32 %v6145_v29, %v2138_v30  ;;  %v1844_v30 = vadd.f32 %v6136_v45, %v5895_v4 }
 0x54b   :  { %v2108_v25 = vmax.f32 %v1937_v7, 0.0 }
 0x54d   :  { %v2192_v2 = vmul.f32 %v6145_v29, %v2108_v25 }
 0x54e   :  { %2370 = vadd.xlane.f32.xlu1 %v2224_v15  ;;  %2378 = vadd.xlane.f32.xlu2 %v2228_v57  ;;  %v2142_v15 = vmax.f32 %v2039_v49, 0.0  ;;  %v6325_v27 = vpop.xlane.xlu1 %2362 }
 0x54f   :  { %2350 = vadd.xlane.f32.xlu0 %v2214_v61  ;;  %v1894_v57 = vpop.f32.mrf.mxu1  ;;  %v2175_v61 = vmul.f32 %v6145_v29, %v2091_v19 }
 0x550   :  { %v2226_v51 = vmul.f32 %v6145_v29, %v2142_v15  ;;  %v1895_v54 = vadd.f32 %v6136_v45, %v1894_v57 }
 0x552   :  { %v2094_v49 = vmax.f32 %v1895_v54, 0.0 }
 0x554   :  { %v2178_v22 = vmul.f32 %v6145_v29, %v2094_v49  ;;  %v1847_v49 = vadd.f32 %v6136_v45, %v6181_v16 }
 0x556   :  { %2238 = vadd.xlane.f32.xlu1 %v2158_v1  ;;  %2342 = vadd.xlane.f32.xlu2 %v2210_v50  ;;  %v2176_v1 = vmul.f32 %v6145_v29, %v2092_v55  ;;  %v2174_v50 = vmul.f32 %v6145_v29, %v2090_v34  ;;  %v1841_v55 = vadd.f32 %v6136_v45, %v5878_v52 }
 0x557   :  { %2380 = vadd.xlane.f32.xlu0 %v2229_v13  ;;  %v1897_v23 = vpop.f32.mrf.mxu1  ;;  %v2093_v13 = vmax.f32 %v1892_v12, 0.0  ;;  %v2109_v12 = vmax.f32 %v1940_v48, 0.0 }
 0x558   :  { %v1898_v19 = vadd.f32 %v6136_v45, %v1897_v23  ;;  %v2076_v28 = vmax.f32 %v1841_v55, 0.0 }
 0x559   :  { %v2177_v20 = vmul.f32 %v6145_v29, %v2093_v13  ;;  %v2193_v13 = vmul.f32 %v6145_v29, %v2109_v12 }
 0x55a   :  { %v2095_v40 = vmax.f32 %v1898_v19, 0.0  ;;  %v2160_v17 = vmul.f32 %v6145_v29, %v2076_v28 }
 0x55c   :  { %v2179_v34 = vmul.f32 %v6145_v29, %v2095_v40 }
 0x55e   :  { %2334 = vadd.xlane.f32.xlu1 %v2206_v37  ;;  %2372 = vadd.xlane.f32.xlu2 %v2225_v21  ;;  %v2107_v21 = vmax.f32 %v1934_v56, 0.0  ;;  %v2110_v56 = vmax.f32 %v1943_v43, 0.0 }
 0x55f   :  { %2344 = vadd.xlane.f32.xlu0 %v2211_v44  ;;  %v1900_v37 = vpop.f32.mrf.mxu1  ;;  %v2106_v44 = vmax.f32 %v1931_v14, 0.0  ;;  %v1946_v14 = vadd.f32 %v6136_v45, %v5977_v0 }
 0x560   :  { %v2191_v15 = vmul.f32 %v6145_v29, %v2107_v21  ;;  %v2194_v21 = vmul.f32 %v6145_v29, %v2110_v56 }
 0x561   :  { %v2190_v57 = vmul.f32 %v6145_v29, %v2106_v44  ;;  %v2111_v7 = vmax.f32 %v1946_v14, 0.0  ;;  %v1955_v14 = vadd.f32 %v6136_v45, %v6001_v59 }
 0x563   :  { %v2195_v40 = vmul.f32 %v6145_v29, %v2111_v7 }
 0x566   :  { %2336 = vadd.xlane.f32.xlu2 %v2207_v53  ;;  %2272 = vadd.xlane.f32.xlu1 %v2175_v61  ;;  %v2075_v61 = vmax.f32 %v1838_v35, 0.0  ;;  %v6351_v35 = vpop.xlane.xlu0 %2356 }
 0x567   :  { %2374 = vadd.xlane.f32.xlu0 %v2226_v51  ;;  %v1903_v53 = vpop.f32.mrf.mxu1  ;;  %v1901_v51 = vadd.f32 %v6136_v45, %v1900_v37 }
 0x568   :  { %v2159_v36 = vmul.f32 %v6145_v29, %v2075_v61 }
 0x569   :  { %v2096_v23 = vmax.f32 %v1901_v51, 0.0 }
 0x56b   :  { %v2180_v52 = vmul.f32 %v6145_v29, %v2096_v23 }
 0x56e   :  { %2274 = vadd.xlane.f32.xlu1 %v2176_v1  ;;  %2270 = vadd.xlane.f32.xlu2 %v2174_v50  ;;  %v6323_v1 = vpop.xlane.xlu2 %2354 }
 0x56f   :  { %2338 = vadd.xlane.f32.xlu0 %v2208_v18  ;;  %v1906_v50 = vpop.f32.mrf.mxu1  ;;  %v1904_v18 = vadd.f32 %v6136_v45, %v1903_v53  ;;  %v1850_v53 = vadd.f32 %v6136_v45, %v6185_v24 }
 0x571   :  { %v2097_v54 = vmax.f32 %v1904_v18, 0.0 }
 0x573   :  { %v2181_v4 = vmul.f32 %v6145_v29, %v2097_v54 }
 0x576   :  { %2276 = vadd.xlane.f32.xlu1 %v2177_v20  ;;  %2366 = vadd.xlane.f32.xlu2 %v2222_v9  ;;  %v2077_v20 = vmax.f32 %v1844_v30, 0.0  ;;  %v6335_v9 = vpop.xlane.xlu2 %2360 }
 0x577   :  { %2368 = vadd.xlane.f32.xlu0 %v2223_v3  ;;  %v1907_v3 = vadd.f32 %v6136_v45, %v1906_v50  ;;  %v1909_v37 = vpop.f32.mrf.mxu1  ;;  %v1853_v50 = vadd.f32 %v6136_v45, %v6189_v41 }
 0x578   :  { %v2161_v44 = vmul.f32 %v6145_v29, %v2077_v20  ;;  %v1910_v25 = vadd.f32 %v6136_v45, %v1909_v37 }
 0x579   :  { %v2098_v19 = vmax.f32 %v1907_v3, 0.0  ;;  %v2080_v30 = vmax.f32 %v1853_v50, 0.0 }
 0x57b   :  { %v2182_v16 = vmul.f32 %v6145_v29, %v2098_v19  ;;  %v2164_v7 = vmul.f32 %v6145_v29, %v2080_v30 }
 0x57e   :  { %2278 = vadd.xlane.f32.xlu1 %v2178_v22  ;;  %2304 = vadd.xlane.f32.xlu2 %v2191_v15  ;;  %v2078_v22 = vmax.f32 %v1847_v49, 0.0  ;;  %v6347_v15 = vpop.xlane.xlu2 %2364 }
 0x57f   :  { %2302 = vadd.xlane.f32.xlu0 %v2190_v57  ;;  %v1949_v57 = vadd.f32 %v6136_v45, %v5985_v5  ;;  %v1912_v48 = vpop.f32.mrf.mxu1 }
 0x580   :  { %v2162_v61 = vmul.f32 %v6145_v29, %v2078_v22  ;;  %v1913_v24 = vadd.f32 %v6136_v45, %v1912_v48 }
 0x581   :  { %v2112_v51 = vmax.f32 %v1949_v57, 0.0  ;;  %v2114_v57 = vmax.f32 %v1955_v14, 0.0 }
 0x583   :  { %v2196_v28 = vmul.f32 %v6145_v29, %v2112_v51 }
 0x586   :  { %2280 = vadd.xlane.f32.xlu1 %v2179_v34  ;;  %2306 = vadd.xlane.f32.xlu2 %v2192_v2  ;;  %v2099_v34 = vmax.f32 %v1910_v25, 0.0  ;;  %v2079_v2 = vmax.f32 %v1850_v53, 0.0 }
 0x587   :  { %2240 = vadd.xlane.f32.xlu0 %v2159_v36  ;;  %v1952_v36 = vadd.f32 %v6136_v45, %v5993_v60  ;;  %v1915_v60 = vpop.f32.mrf.mxu1 }
 0x588   :  { %v2183_v23 = vmul.f32 %v6145_v29, %v2099_v34  ;;  %v2163_v43 = vmul.f32 %v6145_v29, %v2079_v2  ;;  %v1958_v2 = vadd.f32 %v6136_v45, %v6009_v11 }
 0x58e   :  { %2282 = vadd.xlane.f32.xlu1 %v2180_v52  ;;  %2308 = vadd.xlane.f32.xlu2 %v2193_v13  ;;  %v2113_v52 = vmax.f32 %v1952_v36, 0.0  ;;  %v2100_v13 = vmax.f32 %v1913_v24, 0.0 }
 0x58f   :  { %2242 = vadd.xlane.f32.xlu0 %v2160_v17  ;;  %v1856_v17 = vadd.f32 %v6136_v45, %v6195_v58 }
 0x590   :  { %v2197_v3 = vmul.f32 %v6145_v29, %v2113_v52  ;;  %v2184_v37 = vmul.f32 %v6145_v29, %v2100_v13 }
 0x591   :  { %v6337_v42 = vpop.xlane.xlu1 %2388  ;;  %v2081_v58 = vmax.f32 %v1856_v17, 0.0 }
 0x592   :  { %v2761_v36 = vmax.f32 %v6351_v35, %v6337_v42 }
 0x594   :  { %v2777_v52 = vsub.f32 %v6351_v35, %v2761_v36  ;;  %v6428_v35 = vadd.f32 %v6136_v45, %v6205_v47 }
 0x596   :  { %2284 = vadd.xlane.f32.xlu1 %v2181_v4  ;;  %2310 = vadd.xlane.f32.xlu2 %v2194_v21  ;;  %v1916_v4 = vadd.f32 %v6136_v45, %v1915_v60  ;;  %v2825_v60 = vsub.f32 %v6337_v42, %v2761_v36  ;;  %v1922_v42 = vadd.f32 %v6136_v45, %v5914_v32 }
 0x597   :  { %2244 = vadd.xlane.f32.xlu0 %v2161_v44  ;;  %v6460_v36 = vadd.f32 %v6136_v45, %v6207_v39 }
 0x598   :  { %v2101_v25 = vmax.f32 %v1916_v4, 0.0  ;;  %v2852_v47 = vmul.f32 1.442695, %v2825_v60 }
 0x599   :  { %v6349_v0 = vpop.xlane.xlu1 %2352  ;;  %v6361_v55 = vpop.xlane.xlu2 %2390 }
 0x59a   :  { %v2762_v19 = vmax.f32 %v6313_v10, %v6361_v55  ;;  %v2185_v24 = vmul.f32 %v6145_v29, %v2101_v25 }
 0x59c   :  { %v2778_v51 = vsub.f32 %v6313_v10, %v2762_v19  ;;  %v2826_v10 = vsub.f32 %v6361_v55, %v2762_v19 }
 0x59e   :  { %2286 = vadd.xlane.f32.xlu1 %v2182_v16  ;;  %2312 = vadd.xlane.f32.xlu2 %v2195_v40 }
 0x59f   :  { %2246 = vadd.xlane.f32.xlu0 %v2162_v61  ;;  %v2165_v61 = vmul.f32 %v6145_v29, %v2081_v58 }
 0x5a1   :  { %v6363_v5 = vpop.xlane.xlu1 %2382  ;;  %v2393_v12 = vpop.xlane.xlu0 %2392 }
 0x5a2   :  { %v2763_v18 = vmax.f32 %v6335_v9, %v2393_v12 }
 0x5a4   :  { %v2779_v20 = vsub.f32 %v6335_v9, %v2763_v18  ;;  %v2827_v44 = vsub.f32 %v2393_v12, %v2763_v18  ;;  %v1859_v9 = vadd.f32 %v6136_v45, %v6197_v26  ;;  %v1919_v26 = vadd.f32 %v6136_v45, %v5907_v46 }
 0x5a5   :  { %v2198_v46 = vmul.f32 %v6145_v29, %v2114_v57  ;;  %v2115_v18 = vmax.f32 %v1958_v2, 0.0 }
 0x5a6   :  { %2288 = vadd.xlane.f32.xlu1 %v2183_v23  ;;  %2314 = vadd.xlane.f32.xlu2 %v2196_v28  ;;  %v2808_v59 = vmul.f32 1.442695, %v2779_v20  ;;  %v2082_v48 = vmax.f32 %v1859_v9, 0.0  ;;  %v6406_v23 = vadd.f32 %v6136_v45, %v6201_v33  ;;  %v2102_v50 = vmax.f32 %v1919_v26, 0.0 }
 0x5a7   :  { %2248 = vadd.xlane.f32.xlu0 %v2163_v43  ;;  %v2806_v43 = vmul.f32 1.442695, %v2778_v51  ;;  %v2199_v58 = vmul.f32 %v6145_v29, %v2115_v18 }
 0x5a8   :  { %3587 = vpow2.f32 %v2808_v59  ;;  %v2083_v55 = vmax.f32 %v6406_v23, 0.0  ;;  %v2103_v59 = vmax.f32 %v1922_v42, 0.0 }
 0x5a9   :  { %v6376_v56 = vpop.xlane.xlu1 %2346  ;;  %v2395_v54 = vpop.xlane.xlu2 %2394 }
 0x5aa   :  { %v2764_v41 = vmax.f32 %v6325_v27, %v2395_v54  ;;  %v2187_v23 = vmul.f32 %v6145_v29, %v2103_v59 }
 0x5ac   :  { %v2780_v21 = vsub.f32 %v6325_v27, %v2764_v41  ;;  %v2828_v49 = vsub.f32 %v2395_v54, %v2764_v41  ;;  %v2856_v27 = vmul.f32 1.442695, %v2827_v44  ;;  %v2166_v41 = vmul.f32 %v6145_v29, %v2082_v48 }
 0x5ad   :  { %v1961_v44 = vadd.f32 %v6136_v45, %v6017_v6  ;;  %v1925_v6 = vadd.f32 %v6136_v45, %v5921_v38  ;;  %v2084_v48 = vmax.f32 %v6428_v35, 0.0 }
 0x5ae   :  { %2290 = vadd.xlane.f32.xlu1 %v2184_v37  ;;  %2316 = vadd.xlane.f32.xlu2 %v2197_v3  ;;  %v2810_v22 = vmul.f32 1.442695, %v2780_v21  ;;  %v2858_v16 = vmul.f32 1.442695, %v2828_v49  ;;  %v6413_v13 = vpop.eup %3587  ;;  %v2186_v37 = vmul.f32 %v6145_v29, %v2102_v50  ;;  %v2804_v21 = vmul.f32 1.442695, %v2777_v52 }
 0x5af   :  { %2250 = vadd.xlane.f32.xlu0 %v2164_v7  ;;  %v2168_v35 = vmul.f32 %v6145_v29, %v2084_v48 }
 0x5b0   :  { %3589 = vpow2.f32 %v2810_v22 }
 0x5b1   :  { %v6391_v40 = vpop.xlane.xlu1 %2376  ;;  %v6393_v53 = vpop.xlane.xlu2 %2384  ;;  %3591 = vpow2.f32 %v2858_v16  ;;  %v2116_v16 = vmax.f32 %v1961_v44, 0.0 }
 0x5b2   :  { %v2397_v34 = vpop.xlane.xlu0 %2396  ;;  %3593 = vpow2.f32 %v2856_v27  ;;  %v2759_v7 = vmax.f32 %v6349_v0, %v6393_v53 }
 0x5b3   :  { %v2765_v12 = vmax.f32 %v6347_v15, %v2397_v34  ;;  %3595 = vpow2.f32 %v2806_v43  ;;  %v2200_v39 = vmul.f32 %v6145_v29, %v2116_v16 }
 0x5b4   :  { %v2775_v27 = vsub.f32 %v6349_v0, %v2759_v7  ;;  %v2823_v26 = vsub.f32 %v6393_v53, %v2759_v7  ;;  %v1964_v0 = vadd.f32 %v6136_v45, %v6025_v8 }
 0x5b5   :  { %v2781_v11 = vsub.f32 %v6347_v15, %v2765_v12  ;;  %v2829_v28 = vsub.f32 %v2397_v34, %v2765_v12  ;;  %v2854_v15 = vmul.f32 1.442695, %v2826_v10  ;;  %v2167_v34 = vmul.f32 %v6145_v29, %v2083_v55 }
 0x5b6   :  { %2292 = vadd.xlane.f32.xlu1 %v2185_v24  ;;  %2318 = vadd.xlane.f32.xlu2 %v2198_v46  ;;  %v6416_v17 = vpop.eup %3589  ;;  %v2848_v8 = vmul.f32 1.442695, %v2823_v26  ;;  %v2085_v55 = vmax.f32 %v6460_v36, 0.0 }
 0x5b7   :  { %v2812_v33 = vmul.f32 1.442695, %v2781_v11  ;;  %2252 = vadd.xlane.f32.xlu0 %v2165_v61  ;;  %v2860_v30 = vmul.f32 1.442695, %v2829_v28  ;;  %v6424_v14 = vpop.eup %3591  ;;  %v2104_v11 = vmax.f32 %v1925_v6, 0.0 }
 0x5b8   :  { %v6433_v4 = vpop.eup %3593  ;;  %v2876_v32 = vadd.f32 %v6424_v14, %v6416_v17  ;;  %v2800_v28 = vmul.f32 1.442695, %v2775_v27 }
 0x5b9   :  { %v6419_v54 = vpop.xlane.xlu1 %2340  ;;  %v6421_v20 = vpop.xlane.xlu2 %2348  ;;  %3597 = vpow2.f32 %v2812_v33  ;;  %v2875_v22 = vadd.f32 %v6433_v4, %v6413_v13  ;;  %v2117_v33 = vmax.f32 %v1964_v0, 0.0  ;;  %v2188_v44 = vmul.f32 %v6145_v29, %v2104_v11  ;;  %v7404_v0 = vld [vmem:[#allocation50_spill] sm:$0xff] }
 0x5ba   :  { %v2387_v3 = vpop.xlane.xlu0 %2386  ;;  %3599 = vpow2.f32 %v2860_v30  ;;  %v6448_v25 = vpop.eup %3595 }
 0x5bb   :  { %v2760_v49 = vmax.f32 %v6323_v1, %v2387_v3  ;;  %3601 = vpow2.f32 %v2854_v15 }
 0x5bc   :  { %3603 = vpow2.f32 %v2804_v21 }
 0x5bd   :  { %v2776_v9 = vsub.f32 %v6323_v1, %v2760_v49  ;;  %v2824_v19 = vsub.f32 %v2387_v3, %v2760_v49  ;;  %3605 = vpow2.f32 %v2852_v47  ;;  %v1928_v49 = vadd.f32 %v6136_v45, %v5929_v62 }
 0x5be   :  { %2294 = vadd.xlane.f32.xlu1 %v2186_v37  ;;  %2320 = vadd.xlane.f32.xlu2 %v2199_v58  ;;  %3607 = vrcp.f32 %v2876_v32  ;;  %v2201_v62 = vmul.f32 %v6145_v29, %v2117_v33 }
 0x5bf   :  { %v2802_v57 = vmul.f32 1.442695, %v2776_v9  ;;  %2254 = vadd.xlane.f32.xlu0 %v2166_v41  ;;  %v2850_v1 = vmul.f32 1.442695, %v2824_v19  ;;  %v6451_v61 = vpop.eup %3597  ;;  %3609 = vrcp.f32 %v2875_v22 }
 0x5c0   :  { %v3600_v2 = vpop.eup %3599 }
 0x5c1   :  { %v6455_v51 = vpop.xlane.xlu1 %2370  ;;  %v2379_v38 = vpop.xlane.xlu2 %2378  ;;  %v2877_v53 = vadd.f32 %v3600_v2, %v6451_v61  ;;  %3611 = vpow2.f32 %v2802_v57 }
 0x5c2   :  { %v2351_v12 = vpop.xlane.xlu0 %2350  ;;  %v6465_v24 = vpop.eup %3601  ;;  %v2756_v46 = vmax.f32 %v6376_v56, %v2379_v38  ;;  %3613 = vpow2.f32 %v2850_v1 }
 0x5c3   :  { %v2758_v10 = vmax.f32 %v2351_v12, %v6363_v5  ;;  %v6471_v50 = vpop.eup %3603  ;;  %3615 = vrcp.f32 %v2877_v53  ;;  %v2874_v60 = vadd.f32 %v6465_v24, %v6448_v25 }
 0x5c4   :  { %v6474_v52 = vpop.eup %3605  ;;  %v2772_v15 = vsub.f32 %v6376_v56, %v2756_v46  ;;  %3617 = vpow2.f32 %v2800_v28  ;;  %v2820_v3 = vsub.f32 %v2379_v38, %v2756_v46  ;;  %v7407_v28 = vld [vmem:[#allocation32_spill] sm:$0xff] }
 0x5c5   :  { %v2774_v43 = vsub.f32 %v2351_v12, %v2758_v10  ;;  %v2822_v18 = vsub.f32 %v6363_v5, %v2758_v10  ;;  %v3608_v30 = vpop.eup %3607  ;;  %v6483_v5 = vadd.f32 %v6136_v45, %v6209_v31  ;;  %v2873_v56 = vadd.f32 %v6474_v52, %v6471_v50  ;;  %v7403_v31 = vld [vmem:[#allocation47_spill] sm:$0xff]  ;;  %v7406_v10 = vld [vmem:[#allocation48_spill] sm:$0xff] }
 0x5c6   :  { %2296 = vadd.xlane.f32.xlu1 %v2187_v23  ;;  %2322 = vadd.xlane.f32.xlu2 %v2200_v39  ;;  %v3610_v42 = vpop.eup %3609  ;;  %3619 = vpow2.f32 %v2848_v8  ;;  %v6498_v7 = vadd.f32 %v6136_v45, %v7403_v31  ;;  %v2908_v19 = vmul.f32 %v3608_v30, %v6416_v17  ;;  %v2794_v22 = vmul.f32 1.442695, %v2772_v15  ;;  %v7410_v31 = vld [vmem:[#allocation35_spill] sm:$0xff] }
 0x5c7   :  { %v2798_v41 = vmul.f32 1.442695, %v2774_v43  ;;  %2256 = vadd.xlane.f32.xlu0 %v2167_v34  ;;  %v2846_v37 = vmul.f32 1.442695, %v2822_v18  ;;  %v6485_v21 = vpop.eup %3611  ;;  %3621 = vrcp.f32 %v2874_v60  ;;  %v2940_v57 = vmul.f32 %v3608_v30, %v6424_v14  ;;  %v7405_v14 = vld [vmem:[#allocation34_spill] sm:$0xff] }
 0x5c8   :  { %v6494_v47 = vpop.eup %3613  ;;  %v2842_v27 = vmul.f32 1.442695, %v2820_v3  ;;  %v2907_v38 = vmul.f32 %v3610_v42, %v6413_v13  ;;  %v2105_v17 = vmax.f32 %v1928_v49, 0.0  ;;  %v2939_v13 = vmul.f32 %v3610_v42, %v6433_v4  ;;  %v7408_v4 = vld [vmem:[#allocation39_spill] sm:$0xff] }
 0x5c9   :  { %v6491_v58 = vpop.xlane.xlu2 %2342  ;;  %v6500_v32 = vpop.xlane.xlu1 %2238  ;;  %3623 = vpow2.f32 %v2798_v41  ;;  %v2872_v36 = vadd.f32 %v6494_v47, %v6485_v21  ;;  %v2924_v11 = vmul.f32 %v2908_v19, %v7406_v10  ;;  %v2956_v39 = vmul.f32 %v2940_v57, %v7407_v28  ;;  %v7414_v10 = vld [vmem:[#allocation28_spill] sm:$0xff]  ;;  %v7415_v28 = vld [vmem:[#allocation22_spill] sm:$0xff] }
 0x5ca   :  { %v2381_v9 = vpop.xlane.xlu0 %2380  ;;  %v3616_v59 = vpop.eup %3615  ;;  %3625 = vpow2.f32 %v2846_v37  ;;  %v2086_v43 = vmax.f32 %v6483_v5, 0.0  ;;  %v2118_v18 = vmax.f32 %v6498_v7, 0.0  ;;  %v2169_v60 = vmul.f32 %v6145_v29, %v2085_v55 }
 0x5cb   :  { %v2757_v6 = vmax.f32 %v6421_v20, %v2381_v9  ;;  %v2941_v16 = vmul.f32 %v3616_v59, %v3600_v2  ;;  %v2909_v1 = vmul.f32 %v3616_v59, %v6451_v61  ;;  %3627 = vrcp.f32 %v2873_v56  ;;  %v6509_v34 = vpop.eup %3617 }
 0x5cc   :  { %v6515_v23 = vpop.eup %3619  ;;  %3629 = vpow2.f32 %v2794_v22  ;;  %v1970_v15 = vadd.f32 %v6136_v45, %v7408_v4  ;;  %v2189_v42 = vmul.f32 %v6145_v29, %v2105_v17  ;;  %v2972_v56 = vadd.f32 %v2956_v39, %v2924_v11  ;;  %v7409_v45 = vld [vmem:[#allocation46_spill] sm:$0xff]  ;;  %v7411_v17 = vld [vmem:[#allocation43_spill] sm:$0xff] }
 0x5cd   :  { %v2773_v48 = vsub.f32 %v6421_v20, %v2757_v6  ;;  %v2821_v26 = vsub.f32 %v2381_v9, %v2757_v6  ;;  %v2925_v12 = vmul.f32 %v2909_v1, %v7404_v0  ;;  %v2957_v2 = vmul.f32 %v2941_v16, %v7405_v14  ;;  %v3622_v53 = vpop.eup %3621  ;;  %v7412_v0 = vld [vmem:[#allocation29_spill] sm:$0xff] }
 0x5ce   :  { %2298 = vadd.xlane.f32.xlu1 %v2188_v44  ;;  %2324 = vadd.xlane.f32.xlu2 %v2201_v62  ;;  %3631 = vpow2.f32 %v2842_v27  ;;  %v2871_v41 = vadd.f32 %v6515_v23, %v6509_v34  ;;  %v2906_v55 = vmul.f32 %v3622_v53, %v6448_v25  ;;  %v2923_v44 = vmul.f32 %v2907_v38, %v7409_v45 }
 0x5cf   :  { %v2796_v61 = vmul.f32 1.442695, %v2773_v48  ;;  %v2844_v20 = vmul.f32 1.442695, %v2821_v26  ;;  %2258 = vadd.xlane.f32.xlu0 %v2168_v35  ;;  %v2973_v46 = vadd.f32 %v2957_v2, %v2925_v12  ;;  %v6520_v8 = vpop.eup %3623  ;;  %v2955_v7 = vmul.f32 %v2939_v13, %v7410_v31 }
 0x5d0   :  { %v6525_v30 = vpop.eup %3625  ;;  %v2938_v9 = vmul.f32 %v3622_v53, %v6465_v24  ;;  %v2202_v6 = vmul.f32 %v6145_v29, %v2118_v18  ;;  %v2119_v27 = vmax.f32 %v1970_v15, 0.0 }
 0x5d1   :  { %3633 = vpow2.f32 %v2796_v61  ;;  %v2373_v33 = vpop.xlane.xlu2 %2372  ;;  %2974 = vmatpush.xpose.msra.mxu2 %v2973_v46  ;;  %v3628_v5 = vpop.eup %3627  ;;  %v2870_v19 = vadd.f32 %v6525_v30, %v6520_v8  ;;  %v2971_v38 = vadd.f32 %v2955_v7, %v2923_v44 }
 0x5d2   :  { %3635 = vrcp.f32 %v2872_v36  ;;  %v2345_v35 = vpop.xlane.xlu0 %2344  ;;  %v2753_v3 = vmax.f32 %v6419_v54, %v2373_v33  ;;  %v6535_v49 = vpop.xlane.xlu1 %2334  ;;  %v2905_v57 = vmul.f32 %v3628_v5, %v6471_v50  ;;  %v2937_v16 = vmul.f32 %v3628_v5, %v6474_v52  ;;  %v6560_v50 = vld [vmem:[%s6967_s6] ss:$0 sm:$0xff]  ;;  %v7413_v52 = vld [vmem:[#allocation26_spill] sm:$0xff] }
 0x5d3   :  { %3637 = vpow2.f32 %v2844_v20  ;;  %v2755_v37 = vmax.f32 %v2345_v35, %v6391_v40  ;;  %v6540_v62 = vpop.eup %3629  ;;  %v2922_v36 = vmul.f32 %v2906_v55, %v7411_v17  ;;  %v2954_v12 = vmul.f32 %v2938_v9, %v7412_v0  ;;  %v6571_v20 = vld [vmem:[%s6967_s6 + $0x1] ss:$0 sm:$0xff] }
 0x5d4   :  { %v6546_v25 = vpop.eup %3631  ;;  %3639 = vrcp.f32 %v2871_v41  ;;  %v2769_v1 = vsub.f32 %v6419_v54, %v2753_v3  ;;  %v2817_v29 = vsub.f32 %v2373_v33, %v2753_v3  ;;  %v1874_v54 = vadd.f32 %v6560_v50, %v7413_v52 }
 0x5d5   :  { %v2771_v59 = vsub.f32 %v2345_v35, %v2755_v37  ;;  %v2819_v22 = vsub.f32 %v6391_v40, %v2755_v37  ;;  %2975 = vmatpush.xpose.msra.mxu2 %v2972_v56  ;;  %v2868_v2 = vadd.f32 %v6546_v25, %v6540_v62  ;;  %3641 = vrcp.f32 %v2870_v19 }
 0x5d6   :  { %2300 = vadd.xlane.f32.xlu1 %v2189_v42  ;;  %2326 = vadd.xlane.f32.xlu2 %v2202_v6  ;;  %v2170_v13 = vmul.f32 %v6571_v20, %v2086_v43  ;;  %v2921_v11 = vmul.f32 %v2905_v57, %v7414_v10  ;;  %v2953_v39 = vmul.f32 %v2937_v16, %v7415_v28  ;;  %v2788_v18 = vmul.f32 1.442695, %v2769_v1  ;;  %v7416_v42 = vld [vmem:[#allocation49_spill] sm:$0xff] }
 0x5d7   :  { %v6550_v24 = vpop.eup %3633  ;;  %v2792_v48 = vmul.f32 1.442695, %v2771_v59  ;;  %v2840_v26 = vmul.f32 1.442695, %v2819_v22  ;;  %2260 = vadd.xlane.f32.xlu0 %v2169_v60  ;;  %v2203_v60 = vmul.f32 %v6571_v20, %v2119_v27  ;;  %v2836_v15 = vmul.f32 1.442695, %v2817_v29 }
 0x5d8   :  { %v3636_v40 = vpop.eup %3635  ;;  %v2970_v41 = vadd.f32 %v2954_v12, %v2922_v36  ;;  %v1973_v5 = vadd.f32 %v6560_v50, %v7416_v42  ;;  %v2087_v55 = vmax.f32 %v1874_v54, 0.0  ;;  %v1877_v56 = vadd.f32 %v6560_v50, %v6221_v63  ;;  %v7418_v59 = vld [vmem:[#allocation25_spill] sm:$0xff]  ;;  %v7419_v36 = vld [vmem:[#allocation31_spill] sm:$0xff]  ;;  %v7420_v12 = vld [vmem:[#allocation40_spill] sm:$0xff] }
 0x5d9   :  { %v6555_v14 = vpop.eup %3637  ;;  %v6566_v61 = vpop.xlane.xlu2 %2336  ;;  %3643 = vpow2.f32 %v2792_v48  ;;  %2976 = vmatpush.xpose.msra.mxu2 %v2971_v38  ;;  %v2904_v43 = vmul.f32 %v3636_v40, %v6485_v21  ;;  %v2936_v35 = vmul.f32 %v3636_v40, %v6494_v47  ;;  %v2969_v44 = vadd.f32 %v2953_v39, %v2921_v11 }
 0x5da   :  { %v2869_v53 = vadd.f32 %v6555_v14, %v6550_v24  ;;  %v2375_v46 = vpop.xlane.xlu0 %2374  ;;  %3645 = vpow2.f32 %v2840_v26  ;;  %v3640_v4 = vpop.eup %3639  ;;  %v2120_v57 = vmax.f32 %v1973_v5, 0.0  ;;  %v2171_v40 = vmul.f32 %v6571_v20, %v2087_v55 }
 0x5db   :  { %v2754_v33 = vmax.f32 %v6491_v58, %v2375_v46  ;;  %3647 = vrcp.f32 %v2868_v2  ;;  %v6587_v45 = vpop.xlane.xlu1 %2272  ;;  %v3642_v31 = vpop.eup %3641  ;;  %v2903_v7 = vmul.f32 %v3640_v4, %v6509_v34  ;;  %v2952_v63 = vmul.f32 %v2936_v35, %v7418_v59  ;;  %v7421_v2 = vld [vmem:[#allocation44_spill] sm:$0xff] }
 0x5dc   :  { %3649 = vrcp.f32 %v2869_v53  ;;  %v2935_v22 = vmul.f32 %v3640_v4, %v6515_v23  ;;  %v2902_v1 = vmul.f32 %v3642_v31, %v6520_v8  ;;  %v2934_v23 = vmul.f32 %v3642_v31, %v6525_v30  ;;  %v7422_v30 = vld [vmem:[#allocation71_spill] sm:$0xff]  ;;  %v7424_v31 = vld [vmem:[#allocation38_spill] sm:$0xff] }
 0x5dd   :  { %v2770_v3 = vsub.f32 %v6491_v58, %v2754_v33  ;;  %v2818_v37 = vsub.f32 %v2375_v46, %v2754_v33  ;;  %2977 = vmatpush.xpose.msra.mxu2 %v2970_v41  ;;  %3651 = vpow2.f32 %v2788_v18  ;;  %v7417_v58 = vld [vmem:[#allocation41_spill] sm:$0xff]  ;;  %v2088_v38 = vmax.f32 %v1877_v56, 0.0 }
 0x5de   :  { %2328 = vadd.xlane.f32.xlu2 %v2203_v60  ;;  %3653 = vpow2.f32 %v2836_v15  ;;  %v2920_v19 = vmul.f32 %v2904_v43, %v7417_v58  ;;  %v2919_v0 = vmul.f32 %v2903_v7, %v7419_v36  ;;  %v2951_v52 = vmul.f32 %v2935_v22, %v7420_v12  ;;  %v7423_v33 = vld [vmem:[#allocation21_spill] sm:$0xff] }
 0x5df   :  { %v2790_v21 = vmul.f32 1.442695, %v2770_v3  ;;  %v2838_v47 = vmul.f32 1.442695, %v2818_v37  ;;  %2262 = vadd.xlane.f32.xlu0 %v2170_v13  ;;  %v6590_v9 = vpop.eup %3643  ;;  %v1976_v8 = vadd.f32 %v6560_v50, %v7421_v2  ;;  %v2204_v46 = vmul.f32 %v6571_v20, %v2120_v57 }
 0x5e0   :  { %v6595_v6 = vpop.eup %3645  ;;  %v2968_v17 = vadd.f32 %v2952_v63, %v2920_v19  ;;  %v2918_v11 = vmul.f32 %v2902_v1, %v7422_v30  ;;  %v2950_v60 = vmul.f32 %v2934_v23, %v7423_v33  ;;  %v2172_v5 = vmul.f32 %v6571_v20, %v2088_v38  ;;  %v7425_v19 = vld [vmem:[#allocation42_spill] sm:$0xff]  ;;  %v7429_v30 = vld [vmem:[#allocation69_spill] sm:$0xff] }
 0x5e1   :  { %3655 = vpow2.f32 %v2790_v21  ;;  %v6597_v16 = vpop.xlane.xlu2 %2270  ;;  %v2867_v27 = vadd.f32 %v6595_v6, %v6590_v9  ;;  %2978 = vmatpush.xpose.msra.mxu2 %v2969_v44  ;;  %v3648_v48 = vpop.eup %3647  ;;  %v2121_v35 = vmax.f32 %v1976_v8, 0.0  ;;  %v7426_v63 = vld [vmem:[#allocation18_spill] sm:$0xff] }
 0x5e2   :  { %v2339_v34 = vpop.xlane.xlu0 %2338  ;;  %3657 = vpow2.f32 %v2838_v47  ;;  %v3650_v29 = vpop.eup %3649  ;;  %v2900_v3 = vmul.f32 %v3648_v48, %v6540_v62  ;;  %v2966_v44 = vadd.f32 %v2950_v60, %v2918_v11  ;;  %v2932_v47 = vmul.f32 %v3648_v48, %v6546_v25 }
 0x5e3   :  { %v2752_v26 = vmax.f32 %v2339_v34, %v6455_v51  ;;  %v6607_v54 = vpop.eup %3651  ;;  %3659 = vrcp.f32 %v2867_v27  ;;  %v2901_v4 = vmul.f32 %v3650_v29, %v6550_v24  ;;  %v6620_v15 = vpop.xlane.xlu1 %2274  ;;  %v2933_v41 = vmul.f32 %v3650_v29, %v6555_v14 }
 0x5e4   :  { %v6613_v10 = vpop.eup %3653  ;;  %v1880_v22 = vadd.f32 %v6560_v50, %v7426_v63  ;;  %v7433_v63 = vld [vmem:[#allocation55_spill] sm:$0xff] }
 0x5e5   :  { %v2768_v13 = vsub.f32 %v2339_v34, %v2752_v26  ;;  %v2816_v53 = vsub.f32 %v6455_v51, %v2752_v26  ;;  %2979 = vmatpush.xpose.msra.mxu2 %v2968_v17  ;;  %v2967_v51 = vadd.f32 %v2951_v52, %v2919_v0  ;;  %v2865_v37 = vadd.f32 %v6613_v10, %v6607_v54  ;;  %v7427_v26 = vld [vmem:[#allocation53_spill] sm:$0xff] }
 0x5e6   :  { %2330 = vadd.xlane.f32.xlu2 %v2204_v46  ;;  %v2917_v21 = vmul.f32 %v2901_v4, %v7424_v31  ;;  %v2949_v59 = vmul.f32 %v2933_v41, %v7425_v19  ;;  %v2205_v34 = vmul.f32 %v6571_v20, %v2121_v35  ;;  %v2916_v25 = vmul.f32 %v2900_v3, %v7427_v26 }
 0x5e7   :  { %v6616_v28 = vpop.eup %3655  ;;  %v2786_v39 = vmul.f32 1.442695, %v2768_v13  ;;  %v2834_v18 = vmul.f32 1.442695, %v2816_v53  ;;  %2264 = vadd.xlane.f32.xlu0 %v2171_v40  ;;  %v2089_v0 = vmax.f32 %v1880_v22, 0.0  ;;  %v2398_v52 = vmax.f32 %v6500_v32, %v6597_v16 }
 0x5e8   :  { %v3658_v43 = vpop.eup %3657  ;;  %v2965_v17 = vadd.f32 %v2949_v59, %v2917_v21 }
 0x5e9   :  { %3661 = vpow2.f32 %v2786_v39  ;;  %v2367_v42 = vpop.xlane.xlu2 %2366  ;;  %v2866_v55 = vadd.f32 %v3658_v43, %v6616_v28  ;;  %2980 = vmatpush.xpose.msra.mxu2 %v2967_v51  ;;  %v3660_v7 = vpop.eup %3659  ;;  %v7430_v39 = vld [vmem:[#allocation37_spill] sm:$0xff]  ;;  %v2173_v35 = vmul.f32 %v6571_v20, %v2089_v0 }
 0x5ea   :  { %3663 = vpow2.f32 %v2834_v18  ;;  %v2369_v24 = vpop.xlane.xlu0 %2368  ;;  %v2750_v56 = vmax.f32 %v6535_v49, %v2367_v42  ;;  %v2899_v38 = vmul.f32 %v3660_v7, %v6590_v9  ;;  %v2931_v36 = vmul.f32 %v3660_v7, %v6595_v6 }
 0x5eb   :  { %v2751_v14 = vmax.f32 %v6566_v61, %v2369_v24  ;;  %3665 = vrcp.f32 %v2866_v55  ;;  %v6646_v13 = vpop.xlane.xlu1 %2276 }
 0x5ec   :  { %v2766_v62 = vsub.f32 %v6535_v49, %v2750_v56  ;;  %v2814_v58 = vsub.f32 %v2367_v42, %v2750_v56  ;;  %3667 = vrcp.f32 %v2865_v37  ;;  %v7428_v49 = vld [vmem:[#allocation57_spill] sm:$0xff]  ;;  %v2915_v11 = vmul.f32 %v2899_v38, %v7429_v30 }
 0x5ed   :  { %v2767_v57 = vsub.f32 %v6566_v61, %v2751_v14  ;;  %v2815_v27 = vsub.f32 %v2369_v24, %v2751_v14  ;;  %2981 = vmatpush.xpose.msra.mxu2 %v2966_v44  ;;  %v2948_v29 = vmul.f32 %v2932_v47, %v7428_v49  ;;  %v2947_v18 = vmul.f32 %v2931_v36, %v7430_v39  ;;  %v7431_v14 = vld [vmem:[#allocation36_spill] sm:$0xff]  ;;  %v7436_v49 = vld [vmem:[#allocation54_spill] sm:$0xff] }
 0x5ee   :  { %v2782_v1 = vmul.f32 1.442695, %v2766_v62  ;;  %2332 = vadd.xlane.f32.xlu2 %v2205_v34  ;;  %v2830_v61 = vmul.f32 1.442695, %v2814_v58  ;;  %v7432_v44 = vld [vmem:[#allocation56_spill] sm:$0xff] }
 0x5ef   :  { %v3662_v48 = vpop.eup %3661  ;;  %v2784_v40 = vmul.f32 1.442695, %v2767_v57  ;;  %v2832_v23 = vmul.f32 1.442695, %v2815_v27  ;;  %2266 = vadd.xlane.f32.xlu0 %v2172_v5  ;;  %v2964_v46 = vadd.f32 %v2948_v29, %v2916_v25  ;;  %v7434_v57 = vld [vmem:[#allocation16_spill] sm:$0xff] }
 0x5f0   :  { %v3664_v50 = vpop.eup %3663  ;;  %3669 = vpow2.f32 %v2782_v1  ;;  %v7435_v1 = vld [vmem:[#allocation67_spill] sm:$0xff] }
 0x5f1   :  { %v2864_v12 = vadd.f32 %v3664_v50, %v3662_v48  ;;  %3671 = vpow2.f32 %v2784_v40  ;;  %v6644_v2 = vpop.xlane.xlu2 %2304  ;;  %v3666_v8 = vpop.eup %3665  ;;  %2982 = vmatpush.xpose.msra.mxu2 %v2965_v17 }
 0x5f2   :  { %3673 = vpow2.f32 %v2832_v23  ;;  %v2303_v9 = vpop.xlane.xlu0 %2302  ;;  %v3668_v6 = vpop.eup %3667  ;;  %v2898_v33 = vmul.f32 %v3666_v8, %v6616_v28  ;;  %v2930_v60 = vmul.f32 %v3666_v8, %v3658_v43  ;;  %v2963_v43 = vadd.f32 %v2947_v18, %v2915_v11  ;;  %v7438_v18 = vld [vmem:[#allocation45_spill] sm:$0xff] }
 0x5f3   :  { %3675 = vrcp.f32 %v2864_v12  ;;  %v2414_v53 = vmax.f32 %v2398_v52, %v2303_v9  ;;  %v2897_v55 = vmul.f32 %v3668_v6, %v6607_v54  ;;  %v2929_v24 = vmul.f32 %v3668_v6, %v6613_v10  ;;  %v6661_v19 = vpop.xlane.xlu1 %2278  ;;  %v7437_v6 = vld [vmem:[#allocation33_spill] sm:$0xff] }
 0x5f4   :  { %3677 = vpow2.f32 %v2830_v61 }
 0x5f5   :  { %v2430_v4 = vsub.f32 %v6500_v32, %v2414_v53  ;;  %v2478_v51 = vsub.f32 %v6597_v16, %v2414_v53  ;;  %v2526_v41 = vsub.f32 %v2303_v9, %v2414_v53  ;;  %2983 = vmatpush.xpose.msra.mxu2 %v2964_v46  ;;  %v2914_v32 = vmul.f32 %v2898_v33, %v7431_v14 }
 0x5f6   :  { %v3670_v42 = vpop.eup %3669  ;;  %v2946_v16 = vmul.f32 %v2930_v60, %v7432_v44  ;;  %v2913_v22 = vmul.f32 %v2897_v55, %v7433_v63  ;;  %v2945_v27 = vmul.f32 %v2929_v24, %v7434_v57  ;;  %v7441_v63 = vld [vmem:[#allocation5_spill] sm:$0xff]  ;;  %v7442_v57 = vld [vmem:[#allocation76_spill] sm:$0xff] }
 0x5f7   :  { %v3672_v5 = vpop.eup %3671  ;;  %v2446_v3 = vmul.f32 1.442695, %v2430_v4  ;;  %v2494_v37 = vmul.f32 1.442695, %v2478_v51  ;;  %2268 = vadd.xlane.f32.xlu0 %v2173_v35  ;;  %v2542_v28 = vmul.f32 1.442695, %v2526_v41 }
 0x5f8   :  { %v3674_v56 = vpop.eup %3673  ;;  %v2962_v59 = vadd.f32 %v2946_v16, %v2914_v32 }
 0x5f9   :  { %v3676_v31 = vpop.eup %3675  ;;  %v2863_v21 = vadd.f32 %v3674_v56, %v3672_v5  ;;  %3679 = vpow2.f32 %v2446_v3  ;;  %v6658_v20 = vpop.xlane.xlu2 %2306  ;;  %2984 = vmatpush.xpose.msra.mxu2 %v2963_v43 }
 0x5fa   :  { %v3678_v47 = vpop.eup %3677  ;;  %3681 = vpow2.f32 %v2494_v37  ;;  %v2241_v7 = vpop.xlane.xlu0 %2240  ;;  %v2896_v62 = vmul.f32 %v3676_v31, %v3662_v48  ;;  %v2928_v58 = vmul.f32 %v3676_v31, %v3664_v50  ;;  %v2961_v50 = vadd.f32 %v2945_v27, %v2913_v22 }
 0x5fb   :  { %3683 = vrcp.f32 %v2863_v21  ;;  %v2862_v54 = vadd.f32 %v3678_v47, %v3670_v42  ;;  %v2399_v10 = vmax.f32 %v2241_v7, %v6587_v45  ;;  %v6676_v41 = vpop.xlane.xlu1 %2280 }
 0x5fc   :  { %3685 = vpow2.f32 %v2542_v28  ;;  %v2912_v26 = vmul.f32 %v2896_v62, %v7435_v1  ;;  %v2944_v29 = vmul.f32 %v2928_v58, %v7436_v49 }
 0x5fd   :  { %3687 = vrcp.f32 %v2862_v54  ;;  %v2415_v34 = vmax.f32 %v2399_v10, %v6644_v2  ;;  %2985 = vmatpush.xpose.msra.mxu2 %v2962_v59 }
 0x5fe   :  { %v2960_v11 = vadd.f32 %v2944_v29, %v2912_v26 }
 0x5ff   :  { %v3680_v25 = vpop.eup %3679  ;;  %v2431_v48 = vsub.f32 %v2241_v7, %v2415_v34  ;;  %v2479_v40 = vsub.f32 %v6587_v45, %v2415_v34  ;;  %v2527_v23 = vsub.f32 %v6644_v2, %v2415_v34 }
 0x600   :  { %v3682_v38 = vpop.eup %3681 }
 0x601   :  { %v3684_v61 = vpop.eup %3683  ;;  %v2574_v17 = vadd.f32 %v3682_v38, %v3680_v25  ;;  %v2448_v36 = vmul.f32 1.442695, %v2431_v48  ;;  %v2496_v0 = vmul.f32 1.442695, %v2479_v40  ;;  %v6670_v12 = vpop.xlane.xlu2 %2308  ;;  %v2544_v8 = vmul.f32 1.442695, %v2527_v23  ;;  %2986 = vmatpush.xpose.msra.mxu2 %v2961_v50 }
 0x602   :  { %v3686_v52 = vpop.eup %3685  ;;  %v2243_v9 = vpop.xlane.xlu0 %2242  ;;  %v2895_v53 = vmul.f32 %v3684_v61, %v3672_v5  ;;  %v2927_v46 = vmul.f32 %v3684_v61, %v3674_v56  ;;  %v7439_v5 = vld [vmem:[#allocation51_spill] sm:$0xff]  ;;  %v7440_v56 = vld [vmem:[#allocation52_spill] sm:$0xff]  ;;  %v7443_v48 = vld [vmem:[#allocation77_spill] sm:$0xff] }
 0x603   :  { %v3688_v30 = vpop.eup %3687  ;;  %v2590_v45 = vadd.f32 %v3686_v52, %v2574_v17  ;;  %3689 = vpow2.f32 %v2448_v36  ;;  %v2400_v2 = vmax.f32 %v2243_v9, %v6620_v15  ;;  %v6689_v40 = vpop.xlane.xlu1 %2282 }
 0x604   :  { %3691 = vpow2.f32 %v2496_v0  ;;  %v2911_v39 = vmul.f32 %v2895_v53, %v7437_v6  ;;  %v2943_v33 = vmul.f32 %v2927_v46, %v7438_v18  ;;  %v2894_v60 = vmul.f32 %v3688_v30, %v3670_v42 }
 0x605   :  { %3693 = vrcp.f32 %v2590_v45  ;;  %v2416_v4 = vmax.f32 %v2400_v2, %v6658_v20  ;;  %v2926_v51 = vmul.f32 %v3688_v30, %v3678_v47  ;;  %2987 = vmatpush.xpose.msra.mxu2 %v2960_v11 }
 0x606   :  { %3695 = vpow2.f32 %v2544_v8  ;;  %v2959_v35 = vadd.f32 %v2943_v33, %v2911_v39  ;;  %v2910_v3 = vmul.f32 %v2894_v60, %v7439_v5  ;;  %v7444_v39 = vld [vmem:[#allocation6_spill] sm:$0xff] }
 0x607   :  { %v2432_v37 = vsub.f32 %v2243_v9, %v2416_v4  ;;  %v2480_v55 = vsub.f32 %v6620_v15, %v2416_v4  ;;  %v2528_v24 = vsub.f32 %v6658_v20, %v2416_v4  ;;  %v2942_v28 = vmul.f32 %v2926_v51, %v7440_v56  ;;  %v7445_v33 = vld [vmem:[#allocation78_spill] sm:$0xff] }
 0x609   :  { %v3690_v43 = vpop.eup %3689  ;;  %v2450_v42 = vmul.f32 1.442695, %v2432_v37  ;;  %v2498_v14 = vmul.f32 1.442695, %v2480_v55  ;;  %v2311_v32 = vpop.xlane.xlu2 %2310  ;;  %v2546_v16 = vmul.f32 1.442695, %v2528_v24  ;;  %2988 = vmatpush.xpose.msra.mxu2 %v2959_v35  ;;  %v2958_v62 = vadd.f32 %v2942_v28, %v2910_v3 }
 0x60a   :  { %v3692_v44 = vpop.eup %3691  ;;  %v2245_v31 = vpop.xlane.xlu0 %2244  ;;  %v7446_v28 = vld [vmem:[#allocation79_spill] sm:$0xff] }
 0x60b   :  { %v3694_v21 = vpop.eup %3693  ;;  %v2575_v47 = vadd.f32 %v3692_v44, %v3690_v43  ;;  %3697 = vpow2.f32 %v2450_v42  ;;  %v2401_v7 = vmax.f32 %v2245_v31, %v6646_v13  ;;  %v6695_v37 = vpop.xlane.xlu1 %2284 }
 0x60c   :  { %v3696_v54 = vpop.eup %3695  ;;  %v2622_v15 = vmul.f32 %v3694_v21, %v3680_v25  ;;  %v2654_v10 = vmul.f32 %v3694_v21, %v3682_v38  ;;  %v2702_v20 = vmul.f32 %v3694_v21, %v3686_v52  ;;  %3699 = vpow2.f32 %v2498_v14 }
 0x60d   :  { %v2591_v58 = vadd.f32 %v3696_v54, %v2575_v47  ;;  %v2417_v59 = vmax.f32 %v2401_v7, %v6670_v12  ;;  %3701 = vpow2.f32 %v2546_v16  ;;  %2989 = vmatpush.xpose.msra.mxu2 %v2958_v62 }
 0x60e   :  { %v2638_v22 = vmul.f32 %v2622_v15, %v7441_v63  ;;  %v2670_v27 = vmul.f32 %v2654_v10, %v7442_v57  ;;  %v2718_v25 = vmul.f32 %v2702_v20, %v7443_v48  ;;  %v7447_v10 = vld [vmem:[#allocation7_spill] sm:$0xff] }
 0x60f   :  { %3703 = vrcp.f32 %v2591_v58  ;;  %v2433_v34 = vsub.f32 %v2245_v31, %v2417_v59  ;;  %v2481_v1 = vsub.f32 %v6646_v13, %v2417_v59  ;;  %v2529_v26 = vsub.f32 %v6670_v12, %v2417_v59  ;;  %v7448_v58 = vld [vmem:[#allocation80_spill] sm:$0xff] }
 0x610   :  { %v2686_v23 = vadd.f32 %v2670_v27, %v2638_v22 }
 0x611   :  { %v3698_v49 = vpop.eup %3697  ;;  %v2452_v29 = vmul.f32 1.442695, %v2433_v34  ;;  %v2500_v38 = vmul.f32 1.442695, %v2481_v1  ;;  %v2313_v50 = vpop.xlane.xlu2 %2312  ;;  %v2548_v17 = vmul.f32 1.442695, %v2529_v26 }
 0x612   :  { %v3700_v61 = vpop.eup %3699  ;;  %v2247_v36 = vpop.xlane.xlu0 %2246  ;;  %v2734_v0 = vadd.f32 %v2718_v25, %v2686_v23  ;;  %v7449_v25 = vld [vmem:[#allocation81_spill] sm:$0xff] }
 0x613   :  { %v2576_v52 = vadd.f32 %v3700_v61, %v3698_v49  ;;  %3705 = vpow2.f32 %v2452_v29  ;;  %v2402_v8 = vmax.f32 %v2247_v36, %v6661_v19  ;;  %v3702_v13 = vpop.eup %3701 }
 0x614   :  { %3707 = vpow2.f32 %v2500_v38  ;;  %2990 = vmatmul.f32.vlgmr.msra.gmra.mxu2 %v2734_v0  ;;  %v6704_v38 = vpop.xlane.xlu1 %2286 }
 0x615   :  { %v3704_v12 = vpop.eup %3703  ;;  %v2592_v9 = vadd.f32 %v3702_v13, %v2576_v52  ;;  %v2418_v53 = vmax.f32 %v2402_v8, %v2311_v32  ;;  %3709 = vpow2.f32 %v2548_v17 }
 0x616   :  { %v2623_v46 = vmul.f32 %v3704_v12, %v3690_v43  ;;  %v2655_v30 = vmul.f32 %v3704_v12, %v3692_v44  ;;  %v2703_v45 = vmul.f32 %v3704_v12, %v3696_v54 }
 0x617   :  { %3711 = vrcp.f32 %v2592_v9  ;;  %v2434_v2 = vsub.f32 %v2247_v36, %v2418_v53  ;;  %v2482_v11 = vsub.f32 %v6661_v19, %v2418_v53  ;;  %v2530_v6 = vsub.f32 %v2311_v32, %v2418_v53  ;;  %v7450_v53 = vld [vmem:[#allocation8_spill] sm:$0xff] }
 0x618   :  { %v2639_v18 = vmul.f32 %v2623_v46, %v7444_v39  ;;  %v2671_v60 = vmul.f32 %v2655_v30, %v7445_v33  ;;  %v2719_v43 = vmul.f32 %v2703_v45, %v7446_v28  ;;  %v7451_v30 = vld [vmem:[#allocation82_spill] sm:$0xff] }
 0x619   :  { %v3706_v4 = vpop.eup %3705  ;;  %v2454_v51 = vmul.f32 1.442695, %v2434_v2  ;;  %v2502_v35 = vmul.f32 1.442695, %v2482_v11  ;;  %v2315_v5 = vpop.xlane.xlu2 %2314  ;;  %v2550_v55 = vmul.f32 1.442695, %v2530_v6 }
 0x61a   :  { %v3708_v3 = vpop.eup %3707  ;;  %v2249_v24 = vpop.xlane.xlu0 %2248  ;;  %v2687_v56 = vadd.f32 %v2671_v60, %v2639_v18 }
 0x61b   :  { %v2577_v42 = vadd.f32 %v3708_v3, %v3706_v4  ;;  %3713 = vpow2.f32 %v2454_v51  ;;  %v2403_v19 = vmax.f32 %v2249_v24, %v6676_v41  ;;  %v3710_v14 = vpop.eup %3709  ;;  %v7452_v51 = vld [vmem:[#allocation83_spill] sm:$0xff] }
 0x61c   :  { %3715 = vpow2.f32 %v2502_v35  ;;  %v2735_v32 = vadd.f32 %v2719_v43, %v2687_v56 }
 0x61d   :  { %v3712_v44 = vpop.eup %3711  ;;  %v2593_v16 = vadd.f32 %v3710_v14, %v2577_v42  ;;  %v2419_v31 = vmax.f32 %v2403_v19, %v2313_v50  ;;  %3717 = vpow2.f32 %v2550_v55  ;;  %v6711_v42 = vpop.xlane.xlu1 %2288 }
 0x61e   :  { %v2624_v21 = vmul.f32 %v3712_v44, %v3698_v49  ;;  %2993 = vmatmul.f32.gmra.mxu2 %v2735_v32  ;;  %v2656_v47 = vmul.f32 %v3712_v44, %v3700_v61  ;;  %v2704_v7 = vmul.f32 %v3712_v44, %v3702_v13 }
 0x61f   :  { %3719 = vrcp.f32 %v2593_v16  ;;  %v2435_v62 = vsub.f32 %v2249_v24, %v2419_v31  ;;  %v2483_v54 = vsub.f32 %v6676_v41, %v2419_v31  ;;  %v2531_v15 = vsub.f32 %v2313_v50, %v2419_v31  ;;  %v7453_v31 = vld [vmem:[#allocation9_spill] sm:$0xff] }
 0x620   :  { %v2640_v20 = vmul.f32 %v2624_v21, %v7447_v10  ;;  %v2672_v59 = vmul.f32 %v2656_v47, %v7448_v58  ;;  %v2720_v23 = vmul.f32 %v2704_v7, %v7449_v25  ;;  %v7454_v47 = vld [vmem:[#allocation84_spill] sm:$0xff] }
 0x621   :  { %v3714_v63 = vpop.eup %3713  ;;  %v2456_v22 = vmul.f32 1.442695, %v2435_v62  ;;  %v2504_v57 = vmul.f32 1.442695, %v2483_v54  ;;  %v2317_v27 = vpop.xlane.xlu2 %2316  ;;  %v2552_v1 = vmul.f32 1.442695, %v2531_v15 }
 0x622   :  { %v3716_v34 = vpop.eup %3715  ;;  %v2251_v26 = vpop.xlane.xlu0 %2250  ;;  %v2688_v48 = vadd.f32 %v2672_v59, %v2640_v20 }
 0x623   :  { %v2578_v49 = vadd.f32 %v3716_v34, %v3714_v63  ;;  %3721 = vpow2.f32 %v2456_v22  ;;  %v2404_v29 = vmax.f32 %v2251_v26, %v6689_v40  ;;  %v3718_v41 = vpop.eup %3717  ;;  %v7455_v22 = vld [vmem:[#allocation85_spill] sm:$0xff] }
 0x624   :  { %3723 = vpow2.f32 %v2504_v57  ;;  %v2736_v50 = vadd.f32 %v2720_v23, %v2688_v48 }
 0x625   :  { %v3720_v61 = vpop.eup %3719  ;;  %v2594_v17 = vadd.f32 %v3718_v41, %v2578_v49  ;;  %v2420_v36 = vmax.f32 %v2404_v29, %v2315_v5  ;;  %3725 = vpow2.f32 %v2552_v1 }
 0x626   :  { %v2625_v0 = vmul.f32 %v3720_v61, %v3706_v4  ;;  %2996 = vmatmul.f32.gmra.mxu2 %v2736_v50  ;;  %v2657_v52 = vmul.f32 %v3720_v61, %v3708_v3  ;;  %v2705_v8 = vmul.f32 %v3720_v61, %v3710_v14 }
 0x627   :  { %3727 = vrcp.f32 %v2594_v17  ;;  %v2436_v13 = vsub.f32 %v2251_v26, %v2420_v36  ;;  %v2484_v12 = vsub.f32 %v6689_v40, %v2420_v36  ;;  %v2532_v9 = vsub.f32 %v2315_v5, %v2420_v36  ;;  %v6719_v17 = vpop.xlane.xlu1 %2290  ;;  %v7456_v36 = vld [vmem:[#allocation10_spill] sm:$0xff] }
 0x628   :  { %v2641_v46 = vmul.f32 %v2625_v0, %v7450_v53  ;;  %v2673_v45 = vmul.f32 %v2657_v52, %v7451_v30  ;;  %v2721_v35 = vmul.f32 %v2705_v8, %v7452_v51  ;;  %v7457_v52 = vld [vmem:[#allocation86_spill] sm:$0xff] }
 0x629   :  { %v3722_v2 = vpop.eup %3721  ;;  %v2458_v11 = vmul.f32 1.442695, %v2436_v13  ;;  %v2506_v6 = vmul.f32 1.442695, %v2484_v12  ;;  %v2319_v39 = vpop.xlane.xlu2 %2318  ;;  %v2554_v33 = vmul.f32 1.442695, %v2532_v9 }
 0x62a   :  { %v3724_v18 = vpop.eup %3723  ;;  %v2253_v60 = vpop.xlane.xlu0 %2252  ;;  %v2689_v4 = vadd.f32 %v2673_v45, %v2641_v46 }
 0x62b   :  { %v2579_v3 = vadd.f32 %v3724_v18, %v3722_v2  ;;  %3729 = vpow2.f32 %v2458_v11  ;;  %v2405_v55 = vmax.f32 %v2253_v60, %v6695_v37  ;;  %v3726_v40 = vpop.eup %3725  ;;  %v7458_v11 = vld [vmem:[#allocation87_spill] sm:$0xff] }
 0x62c   :  { %3731 = vpow2.f32 %v2506_v6  ;;  %v2737_v5 = vadd.f32 %v2721_v35, %v2689_v4 }
 0x62d   :  { %v3728_v24 = vpop.eup %3727  ;;  %v2595_v56 = vadd.f32 %v3726_v40, %v2579_v3  ;;  %v2421_v28 = vmax.f32 %v2405_v55, %v2317_v27  ;;  %3733 = vpow2.f32 %v2554_v33 }
 0x62e   :  { %v2626_v43 = vmul.f32 %v3728_v24, %v3714_v63  ;;  %2999 = vmatmul.f32.gmra.mxu2 %v2737_v5  ;;  %v2658_v19 = vmul.f32 %v3728_v24, %v3716_v34  ;;  %v2706_v14 = vmul.f32 %v3728_v24, %v3718_v41 }
 0x62f   :  { %3735 = vrcp.f32 %v2595_v56  ;;  %v2437_v32 = vsub.f32 %v2253_v60, %v2421_v28  ;;  %v2485_v44 = vsub.f32 %v6695_v37, %v2421_v28  ;;  %v2533_v16 = vsub.f32 %v2317_v27, %v2421_v28  ;;  %v7459_v56 = vld [vmem:[#allocation11_spill] sm:$0xff] }
 0x630   :  { %v2642_v21 = vmul.f32 %v2626_v43, %v7453_v31  ;;  %v2674_v7 = vmul.f32 %v2658_v19, %v7454_v47  ;;  %v2722_v57 = vmul.f32 %v2706_v14, %v7455_v22  ;;  %v7460_v43 = vld [vmem:[#allocation88_spill] sm:$0xff]  ;;  %v2293_v31 = vpop.xlane.xlu1 %2292 }
 0x631   :  { %v3730_v62 = vpop.eup %3729  ;;  %v2460_v54 = vmul.f32 1.442695, %v2437_v32  ;;  %v2508_v15 = vmul.f32 1.442695, %v2485_v44  ;;  %v2321_v10 = vpop.xlane.xlu2 %2320  ;;  %v2556_v58 = vmul.f32 1.442695, %v2533_v16 }
 0x632   :  { %v3732_v20 = vpop.eup %3731  ;;  %v2255_v59 = vpop.xlane.xlu0 %2254  ;;  %v2690_v63 = vadd.f32 %v2674_v7, %v2642_v21 }
 0x633   :  { %v2580_v34 = vadd.f32 %v3732_v20, %v3730_v62  ;;  %3737 = vpow2.f32 %v2460_v54  ;;  %v2406_v1 = vmax.f32 %v2255_v59, %v6704_v38  ;;  %v3734_v37 = vpop.eup %3733 }
 0x634   :  { %3739 = vpow2.f32 %v2508_v15  ;;  %v2738_v27 = vadd.f32 %v2722_v57, %v2690_v63 }
 0x635   :  { %v3736_v26 = vpop.eup %3735  ;;  %v2596_v48 = vadd.f32 %v3734_v37, %v2580_v34  ;;  %v2422_v25 = vmax.f32 %v2406_v1, %v2319_v39  ;;  %3741 = vpow2.f32 %v2556_v58 }
 0x636   :  { %v2627_v23 = vmul.f32 %v3736_v26, %v3722_v2  ;;  %3002 = vmatmul.f32.gmra.mxu2 %v2738_v27  ;;  %v2659_v49 = vmul.f32 %v3736_v26, %v3724_v18  ;;  %v2707_v29 = vmul.f32 %v3736_v26, %v3726_v40 }
 0x637   :  { %3743 = vrcp.f32 %v2596_v48  ;;  %v2438_v41 = vsub.f32 %v2255_v59, %v2422_v25  ;;  %v2486_v50 = vsub.f32 %v6704_v38, %v2422_v25  ;;  %v2534_v61 = vsub.f32 %v2319_v39, %v2422_v25  ;;  %v7462_v48 = vld [vmem:[#allocation12_spill] sm:$0xff] }
 0x638   :  { %v2643_v0 = vmul.f32 %v2627_v23, %v7456_v36  ;;  %v2675_v8 = vmul.f32 %v2659_v49, %v7457_v52  ;;  %v2723_v6 = vmul.f32 %v2707_v29, %v7458_v11  ;;  %v7463_v23 = vld [vmem:[#allocation90_spill] sm:$0xff] }
 0x639   :  { %v3738_v13 = vpop.eup %3737  ;;  %v2462_v12 = vmul.f32 1.442695, %v2438_v41  ;;  %v2510_v9 = vmul.f32 1.442695, %v2486_v50  ;;  %v2558_v46 = vmul.f32 1.442695, %v2534_v61  ;;  %v2323_v45 = vpop.xlane.xlu2 %2322 }
 0x63a   :  { %v3740_v53 = vpop.eup %3739  ;;  %v2257_v30 = vpop.xlane.xlu0 %2256  ;;  %v2691_v2 = vadd.f32 %v2675_v8, %v2643_v0  ;;  %v7464_v8 = vld [vmem:[#allocation91_spill] sm:$0xff] }
 0x63b   :  { %v2581_v18 = vadd.f32 %v3740_v53, %v3738_v13  ;;  %3745 = vpow2.f32 %v2462_v12  ;;  %v2407_v38 = vmax.f32 %v2257_v30, %v6711_v42  ;;  %v3742_v39 = vpop.eup %3741 }
 0x63c   :  { %3747 = vpow2.f32 %v2510_v9  ;;  %v2739_v33 = vadd.f32 %v2723_v6, %v2691_v2 }
 0x63d   :  { %v3744_v60 = vpop.eup %3743  ;;  %v2597_v4 = vadd.f32 %v3742_v39, %v2581_v18  ;;  %v2423_v51 = vmax.f32 %v2407_v38, %v2321_v10  ;;  %3749 = vpow2.f32 %v2558_v46  ;;  %v2295_v46 = vpop.xlane.xlu1 %2294 }
 0x63e   :  { %v2628_v35 = vmul.f32 %v3744_v60, %v3730_v62  ;;  %3005 = vmatmul.f32.gmra.mxu2 %v2739_v33  ;;  %v2660_v3 = vmul.f32 %v3744_v60, %v3732_v20  ;;  %v2708_v55 = vmul.f32 %v3744_v60, %v3734_v37  ;;  %v7461_v62 = vld [vmem:[#allocation89_spill] sm:$0xff] }
 0x63f   :  { %3751 = vrcp.f32 %v2597_v4  ;;  %v2439_v40 = vsub.f32 %v2257_v30, %v2423_v51  ;;  %v2487_v5 = vsub.f32 %v6711_v42, %v2423_v51  ;;  %v2535_v24 = vsub.f32 %v2321_v10, %v2423_v51  ;;  %v7465_v4 = vld [vmem:[#allocation13_spill] sm:$0xff] }
 0x640   :  { %v2644_v28 = vmul.f32 %v2628_v35, %v7459_v56  ;;  %v2676_v19 = vmul.f32 %v2660_v3, %v7460_v43  ;;  %v2724_v54 = vmul.f32 %v2708_v55, %v7461_v62  ;;  %v7466_v35 = vld [vmem:[#allocation92_spill] sm:$0xff] }
 0x641   :  { %v3746_v14 = vpop.eup %3745  ;;  %v2464_v32 = vmul.f32 1.442695, %v2439_v40  ;;  %v2512_v44 = vmul.f32 1.442695, %v2487_v5  ;;  %v2560_v21 = vmul.f32 1.442695, %v2535_v24  ;;  %v2325_v10 = vpop.xlane.xlu2 %2324 }
 0x642   :  { %v3748_v16 = vpop.eup %3747  ;;  %v2259_v47 = vpop.xlane.xlu0 %2258  ;;  %v2692_v7 = vadd.f32 %v2676_v19, %v2644_v28  ;;  %v7467_v19 = vld [vmem:[#allocation93_spill] sm:$0xff] }
 0x643   :  { %v2582_v15 = vadd.f32 %v3748_v16, %v3746_v14  ;;  %3753 = vpow2.f32 %v2464_v32  ;;  %v2408_v20 = vmax.f32 %v2259_v47, %v6719_v17  ;;  %v3750_v42 = vpop.eup %3749 }
 0x644   :  { %3755 = vpow2.f32 %v2512_v44  ;;  %v2740_v58 = vadd.f32 %v2724_v54, %v2692_v7 }
 0x645   :  { %v3752_v59 = vpop.eup %3751  ;;  %v2598_v63 = vadd.f32 %v3750_v42, %v2582_v15  ;;  %v2424_v22 = vmax.f32 %v2408_v20, %v2323_v45  ;;  %3757 = vpow2.f32 %v2560_v21  ;;  %v2297_v54 = vpop.xlane.xlu1 %2296 }
 0x646   :  { %v2629_v57 = vmul.f32 %v3752_v59, %v3738_v13  ;;  %3008 = vmatmul.f32.gmra.mxu2 %v2740_v58  ;;  %v2661_v34 = vmul.f32 %v3752_v59, %v3740_v53  ;;  %v2709_v1 = vmul.f32 %v3752_v59, %v3742_v39 }
 0x647   :  { %3759 = vrcp.f32 %v2598_v63  ;;  %v2440_v37 = vsub.f32 %v2259_v47, %v2424_v22  ;;  %v2488_v27 = vsub.f32 %v6719_v17, %v2424_v22  ;;  %v2536_v26 = vsub.f32 %v2323_v45, %v2424_v22  ;;  %v7468_v63 = vld [vmem:[#allocation14_spill] sm:$0xff] }
 0x648   :  { %v2645_v25 = vmul.f32 %v2629_v57, %v7462_v48  ;;  %v2677_v49 = vmul.f32 %v2661_v34, %v7463_v23  ;;  %v2725_v13 = vmul.f32 %v2709_v1, %v7464_v8  ;;  %v7469_v57 = vld [vmem:[#allocation94_spill] sm:$0xff] }
 0x649   :  { %v3754_v29 = vpop.eup %3753  ;;  %v2466_v41 = vmul.f32 1.442695, %v2440_v37  ;;  %v2514_v50 = vmul.f32 1.442695, %v2488_v27  ;;  %v2562_v36 = vmul.f32 1.442695, %v2536_v26  ;;  %v2327_v6 = vpop.xlane.xlu2 %2326 }
 0x64a   :  { %v3756_v61 = vpop.eup %3755  ;;  %v2261_v0 = vpop.xlane.xlu0 %2260  ;;  %v2693_v52 = vadd.f32 %v2677_v49, %v2645_v25  ;;  %v7470_v49 = vld [vmem:[#allocation95_spill] sm:$0xff] }
 0x64b   :  { %v2583_v12 = vadd.f32 %v3756_v61, %v3754_v29  ;;  %3761 = vpow2.f32 %v2466_v41  ;;  %v2409_v9 = vmax.f32 %v2261_v0, %v2293_v31  ;;  %v3758_v53 = vpop.eup %3757 }
 0x64c   :  { %3763 = vpow2.f32 %v2514_v50  ;;  %v2741_v17 = vadd.f32 %v2725_v13, %v2693_v52 }
 0x64d   :  { %v3760_v30 = vpop.eup %3759  ;;  %v2599_v45 = vadd.f32 %v3758_v53, %v2583_v12  ;;  %v2425_v2 = vmax.f32 %v2409_v9, %v2325_v10  ;;  %3765 = vpow2.f32 %v2562_v36 }
 0x64e   :  { %v2630_v11 = vmul.f32 %v3760_v30, %v3746_v14  ;;  %3011 = vmatmul.f32.gmra.mxu2 %v2741_v17  ;;  %v2662_v18 = vmul.f32 %v3760_v30, %v3748_v16  ;;  %v2710_v38 = vmul.f32 %v3760_v30, %v3750_v42  ;;  %v2299_v30 = vpop.xlane.xlu1 %2298 }
 0x64f   :  { %3767 = vrcp.f32 %v2599_v45  ;;  %v2441_v39 = vsub.f32 %v2261_v0, %v2425_v2  ;;  %v2489_v33 = vsub.f32 %v2293_v31, %v2425_v2  ;;  %v2537_v60 = vsub.f32 %v2325_v10, %v2425_v2  ;;  %v7471_v45 = vld [vmem:[#allocation15_spill] sm:$0xff] }
 0x650   :  { %v2646_v51 = vmul.f32 %v2630_v11, %v7465_v4  ;;  %v2678_v3 = vmul.f32 %v2662_v18, %v7466_v35  ;;  %v2726_v14 = vmul.f32 %v2710_v38, %v7467_v19  ;;  %v7472_v11 = vld [vmem:[#allocation96_spill] sm:$0xff] }
 0x651   :  { %v3762_v55 = vpop.eup %3761  ;;  %v2468_v40 = vmul.f32 1.442695, %v2441_v39  ;;  %v2516_v5 = vmul.f32 1.442695, %v2489_v33  ;;  %v2564_v56 = vmul.f32 1.442695, %v2537_v60  ;;  %v2329_v59 = vpop.xlane.xlu2 %2328 }
 0x652   :  { %v3764_v24 = vpop.eup %3763  ;;  %v2263_v28 = vpop.xlane.xlu0 %2262  ;;  %v2694_v43 = vadd.f32 %v2678_v3, %v2646_v51  ;;  %v7473_v3 = vld [vmem:[#allocation97_spill] sm:$0xff] }
 0x653   :  { %v2584_v32 = vadd.f32 %v3764_v24, %v3762_v55  ;;  %3769 = vpow2.f32 %v2468_v40  ;;  %v2410_v44 = vmax.f32 %v2263_v28, %v2295_v46  ;;  %v3766_v16 = vpop.eup %3765 }
 0x654   :  { %3771 = vpow2.f32 %v2516_v5  ;;  %v2742_v31 = vadd.f32 %v2726_v14, %v2694_v43 }
 0x655   :  { %v3768_v21 = vpop.eup %3767  ;;  %v2600_v47 = vadd.f32 %v3766_v16, %v2584_v32  ;;  %v2426_v7 = vmax.f32 %v2410_v44, %v2327_v6  ;;  %3773 = vpow2.f32 %v2564_v56 }
 0x656   :  { %v2631_v62 = vmul.f32 %v3768_v21, %v3754_v29  ;;  %3014 = vmatmul.f32.gmra.mxu2 %v2742_v31  ;;  %v2663_v15 = vmul.f32 %v3768_v21, %v3756_v61  ;;  %v2711_v20 = vmul.f32 %v3768_v21, %v3758_v53 }
 0x657   :  { %3775 = vrcp.f32 %v2600_v47  ;;  %v2442_v42 = vsub.f32 %v2263_v28, %v2426_v7  ;;  %v2490_v10 = vsub.f32 %v2295_v46, %v2426_v7  ;;  %v2538_v58 = vsub.f32 %v2327_v6, %v2426_v7  ;;  %v7474_v47 = vld [vmem:[#allocation17_spill] sm:$0xff] }
 0x658   :  { %v2647_v22 = vmul.f32 %v2631_v62, %v7468_v63  ;;  %v2679_v34 = vmul.f32 %v2663_v15, %v7469_v57  ;;  %v2727_v29 = vmul.f32 %v2711_v20, %v7470_v49  ;;  %v7475_v62 = vld [vmem:[#allocation98_spill] sm:$0xff]  ;;  %v7476_v57 = vld [vmem:[#allocation99_spill] sm:$0xff] }
 0x659   :  { %v3770_v1 = vpop.eup %3769  ;;  %v2470_v37 = vmul.f32 1.442695, %v2442_v42  ;;  %v2518_v27 = vmul.f32 1.442695, %v2490_v10  ;;  %v2566_v48 = vmul.f32 1.442695, %v2538_v58  ;;  %v2331_v60 = vpop.xlane.xlu2 %2330 }
 0x65a   :  { %v3772_v26 = vpop.eup %3771  ;;  %v2265_v25 = vpop.xlane.xlu0 %2264  ;;  %v2695_v23 = vadd.f32 %v2679_v34, %v2647_v22 }
 0x65b   :  { %v2585_v41 = vadd.f32 %v3772_v26, %v3770_v1  ;;  %3777 = vpow2.f32 %v2470_v37  ;;  %v2411_v50 = vmax.f32 %v2265_v25, %v2297_v54  ;;  %v3774_v61 = vpop.eup %3773  ;;  %v2301_v58 = vpop.xlane.xlu1 %2300 }
 0x65c   :  { %3779 = vpow2.f32 %v2518_v27  ;;  %v2743_v36 = vadd.f32 %v2727_v29, %v2695_v23 }
 0x65d   :  { %v3776_v0 = vpop.eup %3775  ;;  %v2601_v52 = vadd.f32 %v3774_v61, %v2585_v41  ;;  %v2427_v8 = vmax.f32 %v2411_v50, %v2329_v59  ;;  %3781 = vpow2.f32 %v2566_v48 }
 0x65e   :  { %v2632_v13 = vmul.f32 %v3776_v0, %v3762_v55  ;;  %3017 = vmatmul.f32.gmra.mxu2 %v2743_v36  ;;  %v2664_v12 = vmul.f32 %v3776_v0, %v3764_v24  ;;  %v2712_v9 = vmul.f32 %v3776_v0, %v3766_v16 }
 0x65f   :  { %3783 = vrcp.f32 %v2601_v52  ;;  %v2443_v53 = vsub.f32 %v2265_v25, %v2427_v8  ;;  %v2491_v46 = vsub.f32 %v2297_v54, %v2427_v8  ;;  %v2539_v17 = vsub.f32 %v2329_v59, %v2427_v8  ;;  %v7477_v52 = vld [vmem:[#allocation19_spill] sm:$0xff] }
 0x660   :  { %v2648_v2 = vmul.f32 %v2632_v13, %v7471_v45  ;;  %v2680_v6 = vmul.f32 %v2664_v12, %v7472_v11  ;;  %v2728_v55 = vmul.f32 %v2712_v9, %v7473_v3  ;;  %v7478_v13 = vld [vmem:[#allocation70_spill] sm:$0xff] }
 0x661   :  { %v3778_v18 = vpop.eup %3777  ;;  %v2472_v38 = vmul.f32 1.442695, %v2443_v53  ;;  %v2520_v39 = vmul.f32 1.442695, %v2491_v46  ;;  %v2568_v4 = vmul.f32 1.442695, %v2539_v17 }
 0x662   :  { %v3780_v33 = vpop.eup %3779  ;;  %v2267_v51 = vpop.xlane.xlu0 %2266  ;;  %v2696_v35 = vadd.f32 %v2680_v6, %v2648_v2  ;;  %v7479_v2 = vld [vmem:[#allocation100_spill] sm:$0xff] }
 0x663   :  { %v2586_v40 = vadd.f32 %v3780_v33, %v3778_v18  ;;  %3785 = vpow2.f32 %v2472_v38  ;;  %v2412_v5 = vmax.f32 %v2267_v51, %v2299_v30  ;;  %v3782_v24 = vpop.eup %3781 }
 0x664   :  { %3787 = vpow2.f32 %v2520_v39  ;;  %v2744_v56 = vadd.f32 %v2728_v55, %v2696_v35  ;;  %v7480_v35 = vld [vmem:[#allocation23_spill] sm:$0xff]  ;;  %v7481_v55 = vld [vmem:[#allocation72_spill] sm:$0xff] }
 0x665   :  { %v3784_v28 = vpop.eup %3783  ;;  %v2602_v43 = vadd.f32 %v3782_v24, %v2586_v40  ;;  %v2428_v19 = vmax.f32 %v2412_v5, %v2331_v60  ;;  %3789 = vpow2.f32 %v2568_v4 }
 0x666   :  { %v2633_v14 = vmul.f32 %v3784_v28, %v3770_v1  ;;  %3020 = vmatmul.f32.gmra.mxu2 %v2744_v56  ;;  %v2665_v32 = vmul.f32 %v3784_v28, %v3772_v26  ;;  %v2713_v44 = vmul.f32 %v3784_v28, %v3774_v61  ;;  %v2333_v26 = vpop.xlane.xlu2 %2332  ;;  %v7482_v28 = vld [vmem:[#allocation101_spill] sm:$0xff] }
 0x667   :  { %3791 = vrcp.f32 %v2602_v43  ;;  %v2444_v16 = vsub.f32 %v2267_v51, %v2428_v19  ;;  %v2492_v31 = vsub.f32 %v2299_v30, %v2428_v19  ;;  %v2540_v21 = vsub.f32 %v2331_v60, %v2428_v19 }
 0x668   :  { %v2649_v7 = vmul.f32 %v2633_v14, %v7474_v47  ;;  %v2681_v54 = vmul.f32 %v2665_v32, %v7475_v62  ;;  %v2729_v34 = vmul.f32 %v2713_v44, %v7476_v57 }
 0x669   :  { %v3786_v15 = vpop.eup %3785  ;;  %v2474_v20 = vmul.f32 1.442695, %v2444_v16  ;;  %v2522_v42 = vmul.f32 1.442695, %v2492_v31  ;;  %v2570_v59 = vmul.f32 1.442695, %v2540_v21 }
 0x66a   :  { %v3788_v10 = vpop.eup %3787  ;;  %v2269_v63 = vpop.xlane.xlu0 %2268  ;;  %v2697_v22 = vadd.f32 %v2681_v54, %v2649_v7  ;;  %v7483_v7 = vld [vmem:[#allocation27_spill] sm:$0xff]  ;;  %v7484_v54 = vld [vmem:[#allocation73_spill] sm:$0xff] }
 0x66b   :  { %v2587_v1 = vadd.f32 %v3788_v10, %v3786_v15  ;;  %3793 = vpow2.f32 %v2474_v20  ;;  %v2413_v37 = vmax.f32 %v2269_v63, %v2301_v58  ;;  %v3790_v27 = vpop.eup %3789 }
 0x66c   :  { %3795 = vpow2.f32 %v2522_v42  ;;  %v2745_v48 = vadd.f32 %v2729_v34, %v2697_v22  ;;  %v7485_v42 = vld [vmem:[#allocation102_spill] sm:$0xff] }
 0x66d   :  { %v3792_v25 = vpop.eup %3791  ;;  %v2603_v23 = vadd.f32 %v3790_v27, %v2587_v1  ;;  %v2429_v49 = vmax.f32 %v2413_v37, %v2333_v26  ;;  %3797 = vpow2.f32 %v2570_v59  ;;  %v7486_v34 = vld [vmem:[#allocation74_spill] sm:$0xff]  ;;  %v7487_v37 = vld [vmem:[#allocation75_spill] sm:$0xff] }
 0x66e   :  { %v2634_v29 = vmul.f32 %v3792_v25, %v3778_v18  ;;  %3023 = vmatmul.f32.gmra.mxu2 %v2745_v48  ;;  %v2666_v41 = vmul.f32 %v3792_v25, %v3780_v33  ;;  %v2714_v50 = vmul.f32 %v3792_v25, %v3782_v24  ;;  %v7488_v48 = vld [vmem:[#allocation103_spill] sm:$0xff] }
 0x66f   :  { %3799 = vrcp.f32 %v2603_v23  ;;  %v2445_v61 = vsub.f32 %v2269_v63, %v2429_v49  ;;  %v2493_v36 = vsub.f32 %v2301_v58, %v2429_v49  ;;  %v2541_v0 = vsub.f32 %v2333_v26, %v2429_v49 }
 0x670   :  { %v2650_v8 = vmul.f32 %v2634_v29, %v7477_v52  ;;  %v2682_v12 = vmul.f32 %v2666_v41, %v7478_v13  ;;  %v2730_v11 = vmul.f32 %v2714_v50, %v7479_v2 }
 0x671   :  { %v3794_v9 = vpop.eup %3793  ;;  %v2476_v53 = vmul.f32 1.442695, %v2445_v61  ;;  %v2524_v46 = vmul.f32 1.442695, %v2493_v36  ;;  %v2572_v30 = vmul.f32 1.442695, %v2541_v0 }
 0x672   :  { %v3796_v17 = vpop.eup %3795  ;;  %v2698_v45 = vadd.f32 %v2682_v12, %v2650_v8 }
 0x673   :  { %v2588_v6 = vadd.f32 %v3796_v17, %v3794_v9  ;;  %3801 = vpow2.f32 %v2476_v53  ;;  %v3798_v18 = vpop.eup %3797 }
 0x674   :  { %3803 = vpow2.f32 %v2524_v46  ;;  %v2746_v38 = vadd.f32 %v2730_v11, %v2698_v45 }
 0x675   :  { %v3800_v39 = vpop.eup %3799  ;;  %v2604_v33 = vadd.f32 %v3798_v18, %v2588_v6  ;;  %3805 = vpow2.f32 %v2572_v30 }
 0x676   :  { %v2635_v60 = vmul.f32 %v3800_v39, %v3786_v15  ;;  %3026 = vmatmul.f32.gmra.mxu2 %v2746_v38  ;;  %v2667_v4 = vmul.f32 %v3800_v39, %v3788_v10  ;;  %v2715_v51 = vmul.f32 %v3800_v39, %v3790_v27 }
 0x677   :  { %3807 = vrcp.f32 %v2604_v33 }
 0x678   :  { %v2651_v3 = vmul.f32 %v2635_v60, %v7480_v35  ;;  %v2683_v40 = vmul.f32 %v2667_v4, %v7481_v55  ;;  %v2731_v43 = vmul.f32 %v2715_v51, %v7482_v28  ;;  %v3359_v35 = vld [vmem:[%s6972_s11] sm:$0xff] }
 0x679   :  { %v3802_v5 = vpop.eup %3801 }
 0x67a   :  { %v3804_v24 = vpop.eup %3803  ;;  %v2699_v56 = vadd.f32 %v2683_v40, %v2651_v3 }
 0x67b   :  { %v2589_v19 = vadd.f32 %v3804_v24, %v3802_v5  ;;  %v3806_v14 = vpop.eup %3805 }
 0x67c   :  { %v2747_v32 = vadd.f32 %v2731_v43, %v2699_v56 }
 0x67d   :  { %v3808_v44 = vpop.eup %3807  ;;  %v2605_v16 = vadd.f32 %v3806_v14, %v2589_v19 }
 0x67e   :  { %v2636_v31 = vmul.f32 %v3808_v44, %v3794_v9  ;;  %3029 = vmatmul.f32.gmra.mxu2 %v2747_v32  ;;  %v2668_v21 = vmul.f32 %v3808_v44, %v3796_v17  ;;  %v2716_v47 = vmul.f32 %v3808_v44, %v3798_v18  ;;  %v3360_v44 = vld [vmem:[%s6972_s11 + $0x10] sm:$0xff] }
 0x67f   :  { %3809 = vrcp.f32 %v2605_v16 }
 0x680   :  { %v2652_v62 = vmul.f32 %v2636_v31, %v7483_v7  ;;  %v2684_v15 = vmul.f32 %v2668_v21, %v7484_v54  ;;  %v2732_v10 = vmul.f32 %v2716_v47, %v7485_v42  ;;  %v3376_v7 = vld [vmem:[%s6972_s11 + $0x18] sm:$0xff] }
 0x682   :  { %v2700_v20 = vadd.f32 %v2684_v15, %v2652_v62 }
 0x684   :  { %v2748_v58 = vadd.f32 %v2732_v10, %v2700_v20 }
 0x685   :  { %v3810_v59 = vpop.eup %3809 }
 0x686   :  { %v2637_v63 = vmul.f32 %v3810_v59, %v3802_v5  ;;  %3032 = vmatmul.f32.gmra.mxu2 %v2748_v58  ;;  %v2669_v22 = vmul.f32 %v3810_v59, %v3804_v24  ;;  %v2717_v57 = vmul.f32 %v3810_v59, %v3806_v14  ;;  %v3375_v14 = vld [vmem:[%s6972_s11 + $0x8] sm:$0xff] }
 0x688   :  { %v2653_v1 = vmul.f32 %v2637_v63, %v7486_v34  ;;  %v2685_v27 = vmul.f32 %v2669_v22, %v7487_v37  ;;  %v2733_v25 = vmul.f32 %v2717_v57, %v7488_v48 }
 0x68a   :  { %v2701_v26 = vadd.f32 %v2685_v27, %v2653_v1 }
 0x68c   :  { %v2749_v23 = vadd.f32 %v2733_v25, %v2701_v26  ;;  %v3361_v26 = vld [vmem:[%s6972_s11 + $0x20] sm:$0xff] }
 0x68e   :  { %3035 = vmatmul.f32.gmra.mxu2 %v2749_v23 }
 0x697   :  { %v2991_v49 = vpop.f32.mrf.mxu2 }
 0x698   :  { %v3484_v29 = vmul.f32 -1.442695, %v2991_v49 }
 0x69a   :  { %3811 = vpow2.f32 %v3484_v29 }
 0x6a0   :  { %v3812_v41 = vpop.eup %3811 }
 0x6a1   :  { %v3087_v50 = vadd.f32 1.0, %v3812_v41  ;;  %v2994_v61 = vpop.f32.mrf.mxu2  ;;  %v3377_v41 = vld [vmem:[%s6972_s11 + $0x28] sm:$0xff] }
 0x6a2   :  { %v3485_v36 = vmul.f32 -1.442695, %v2994_v61 }
 0x6a3   :  { %3813 = vrcp.f32 %v3087_v50  ;;  %v3114_v46 = vand.u32 2147483648, %v3087_v50  ;;  %v3112_v30 = vand.u32 2147483647, %v3087_v50  ;;  %vm3108_vm1 = vweird.f32 %v3087_v50 }
 0x6a4   :  { %3815 = vpow2.f32 %v3485_v36 }
 0x6a5   :  { %v3115_v2 = vor.u32 1.1754944e-38, %v3114_v46  ;;  %vm3113_vm3 = vcmp.eq.f32.partialorder %v3112_v30, 8.507059e+37  ;;  %v3362_v30 = vld [vmem:[%s6972_s11 + $0x30] sm:$0xff] }
 0x6a9   :  { %v3814_v0 = vpop.eup %3813  ;;  %v2997_v52 = vpop.f32.mrf.mxu2 }
 0x6aa   :  { %v3816_v8 = vpop.eup %3815  ;;  %v3104_v13 = vmul.f32 %v3814_v0, %v3087_v50  ;;  %v3486_v12 = vmul.f32 -1.442695, %v2997_v52  ;;  %vm3109_vm0 = vweird.f32 %v3814_v0 }
 0x6ab   :  { %v3088_v9 = vadd.f32 1.0, %v3816_v8  ;;  %vm3110_vm2 = vmor %vm3108_vm1, %vm3109_vm0 }
 0x6ac   :  { %v3105_v53 = vsub.f32 1.0, %v3104_v13  ;;  %3817 = vpow2.f32 %v3486_v12 }
 0x6ad   :  { %3819 = vrcp.f32 %v3088_v9  ;;  %v3129_v3 = vand.u32 2147483648, %v3088_v9  ;;  %v3127_v40 = vand.u32 2147483647, %v3088_v9  ;;  %vm3123_vm5 = vweird.f32 %v3088_v9 }
 0x6ae   :  { %v3106_v17 = vmul.f32 %v3814_v0, %v3105_v53 }
 0x6af   :  { %v3130_v32 = vor.u32 1.1754944e-38, %v3129_v3  ;;  %vm3128_vm7 = vcmp.eq.f32.partialorder %v3127_v40, 8.507059e+37 }
 0x6b0   :  { %v3107_v45 = vadd.f32 %v3814_v0, %v3106_v17 }
 0x6b1   :  { %v3000_v11 = vpop.f32.mrf.mxu2 }
 0x6b2   :  { %v3818_v6 = vpop.eup %3817  ;;  %v3111_v18 = vsel %vm3110_vm2, %v3814_v0, %v3107_v45  ;;  %v3487_v38 = vmul.f32 -1.442695, %v3000_v11 }
 0x6b3   :  { %v3820_v39 = vpop.eup %3819  ;;  %v3116_v33 = vsel %vm3113_vm3, %v3115_v2, %v3111_v18  ;;  %v3089_v60 = vadd.f32 1.0, %v3818_v6 }
 0x6b4   :  { %3343 = vst [vmem:[%s6973_s12] sm:$0xff] %v3116_v33  ;;  %v3119_v4 = vmul.f32 %v3820_v39, %v3088_v9  ;;  %3821 = vpow2.f32 %v3487_v38  ;;  %vm3124_vm4 = vweird.f32 %v3820_v39  ;;  %v3391_v56 = vsub.f32 %v3116_v33, %v3359_v35  ;;  %v3378_v38 = vld [vmem:[%s6972_s11 + $0x38] sm:$0xff] }
 0x6b5   :  { %3823 = vrcp.f32 %v3089_v60  ;;  %vm3125_vm6 = vmor %vm3123_vm5, %vm3124_vm4  ;;  %v3144_v20 = vand.u32 2147483648, %v3089_v60  ;;  %v3142_v58 = vand.u32 2147483647, %v3089_v60  ;;  %vm3138_vm9 = vweird.f32 %v3089_v60 }
 0x6b6   :  { %v3120_v51 = vsub.f32 1.0, %v3119_v4  ;;  %v3407_v62 = vmul.f32 %v3391_v56, %v3375_v14 }
 0x6b7   :  { %v3145_v27 = vor.u32 1.1754944e-38, %v3144_v20  ;;  %vm3143_vm11 = vcmp.eq.f32.partialorder %v3142_v58, 8.507059e+37 }
 0x6b8   :  { %v3121_v55 = vmul.f32 %v3820_v39, %v3120_v51  ;;  %v3423_v22 = vmul.f32 %v3407_v62, %v3407_v62 }
 0x6b9   :  { %v3003_v5 = vpop.f32.mrf.mxu2 }
 0x6ba   :  { %v3822_v24 = vpop.eup %3821  ;;  %v3122_v28 = vadd.f32 %v3820_v39, %v3121_v55  ;;  %v3488_v43 = vmul.f32 -1.442695, %v3003_v5 }
 0x6bb   :  { %v3824_v19 = vpop.eup %3823  ;;  %v3090_v16 = vadd.f32 1.0, %v3822_v24 }
 0x6bc   :  { %v3126_v31 = vsel %vm3125_vm6, %v3820_v39, %v3122_v28  ;;  %v3134_v21 = vmul.f32 %v3824_v19, %v3089_v60  ;;  %3825 = vpow2.f32 %v3488_v43  ;;  %vm3139_vm8 = vweird.f32 %v3824_v19  ;;  %v3363_v43 = vld [vmem:[%s6972_s11 + $0x40] sm:$0xff] }
 0x6bd   :  { %v3131_v47 = vsel %vm3128_vm7, %v3130_v32, %v3126_v31  ;;  %3827 = vrcp.f32 %v3090_v16  ;;  %vm3140_vm10 = vmor %vm3138_vm9, %vm3139_vm8  ;;  %v3159_v36 = vand.u32 2147483648, %v3090_v16  ;;  %v3157_v8 = vand.u32 2147483647, %v3090_v16  ;;  %v3379_v31 = vld [vmem:[%s6972_s11 + $0x48] sm:$0xff] }
 0x6be   :  { %3344 = vst [vmem:[%s6973_s12 + $0x8] sm:$0xff] %v3131_v47  ;;  %v3392_v54 = vsub.f32 %v3131_v47, %v3360_v44  ;;  %v3135_v15 = vsub.f32 1.0, %v3134_v21  ;;  %vm3153_vm13 = vweird.f32 %v3090_v16 }
 0x6bf   :  { %v3160_v17 = vor.u32 1.1754944e-38, %v3159_v36  ;;  %vm3158_vm15 = vcmp.eq.f32.partialorder %v3157_v8, 8.507059e+37 }
 0x6c0   :  { %v3408_v42 = vmul.f32 %v3392_v54, %v3376_v7  ;;  %v3136_v10 = vmul.f32 %v3824_v19, %v3135_v15 }
 0x6c1   :  { %v3006_v59 = vpop.f32.mrf.mxu2 }
 0x6c2   :  { %v3826_v63 = vpop.eup %3825  ;;  %v3424_v57 = vmul.f32 %v3408_v42, %v3408_v42  ;;  %v3137_v34 = vadd.f32 %v3824_v19, %v3136_v10  ;;  %v3489_v1 = vmul.f32 -1.442695, %v3006_v59 }
 0x6c3   :  { %v3828_v37 = vpop.eup %3827  ;;  %v3091_v48 = vadd.f32 1.0, %v3826_v63 }
 0x6c4   :  { %v3439_v25 = vadd.f32 %v3424_v57, %v3423_v22  ;;  %v3141_v23 = vsel %vm3140_vm10, %v3824_v19, %v3137_v34  ;;  %v3149_v49 = vmul.f32 %v3828_v37, %v3090_v16  ;;  %vm3154_vm12 = vweird.f32 %v3828_v37 }
 0x6c5   :  { %v3146_v29 = vsel %vm3143_vm11, %v3145_v27, %v3141_v23  ;;  %3829 = vrcp.f32 %v3091_v48  ;;  %vm3155_vm14 = vmor %vm3153_vm13, %vm3154_vm12  ;;  %v3172_v4 = vand.u32 2147483647, %v3091_v48  ;;  %v3174_v51 = vand.u32 2147483648, %v3091_v48 }
 0x6c6   :  { %3345 = vst [vmem:[%s6973_s12 + $0x10] sm:$0xff] %v3146_v29  ;;  %v3393_v50 = vsub.f32 %v3146_v29, %v3361_v26  ;;  %v3150_v61 = vsub.f32 1.0, %v3149_v49  ;;  %3831 = vpow2.f32 %v3489_v1  ;;  %vm3168_vm1 = vweird.f32 %v3091_v48 }
 0x6c7   :  { %vm3173_vm3 = vcmp.eq.f32.partialorder %v3172_v4, 8.507059e+37  ;;  %v3175_v28 = vor.u32 1.1754944e-38, %v3174_v51 }
 0x6c8   :  { %v3409_v0 = vmul.f32 %v3393_v50, %v3377_v41  ;;  %v3151_v52 = vmul.f32 %v3828_v37, %v3150_v61 }
 0x6c9   :  { %v3009_v13 = vpop.f32.mrf.mxu2 }
 0x6ca   :  { %v3425_v12 = vmul.f32 %v3409_v0, %v3409_v0  ;;  %v3152_v9 = vadd.f32 %v3828_v37, %v3151_v52  ;;  %v3490_v53 = vmul.f32 -1.442695, %v3009_v13 }
 0x6cb   :  { %v3830_v46 = vpop.eup %3829 }
 0x6cc   :  { %v3832_v45 = vpop.eup %3831  ;;  %v3440_v2 = vadd.f32 %v3439_v25, %v3425_v12  ;;  %v3156_v11 = vsel %vm3155_vm14, %v3828_v37, %v3152_v9  ;;  %v3164_v6 = vmul.f32 %v3830_v46, %v3091_v48  ;;  %3833 = vpow2.f32 %v3490_v53 }
 0x6cd   :  { %v3161_v18 = vsel %vm3158_vm15, %v3160_v17, %v3156_v11  ;;  %v3092_v39 = vadd.f32 1.0, %v3832_v45  ;;  %vm3169_vm0 = vweird.f32 %v3830_v46 }
 0x6ce   :  { %3346 = vst [vmem:[%s6973_s12 + $0x18] sm:$0xff] %v3161_v18  ;;  %v3394_v33 = vsub.f32 %v3161_v18, %v3362_v30  ;;  %v3165_v60 = vsub.f32 1.0, %v3164_v6  ;;  %vm3170_vm2 = vmor %vm3168_vm1, %vm3169_vm0 }
 0x6cf   :  { %3835 = vrcp.f32 %v3092_v39  ;;  %v3187_v54 = vand.u32 2147483647, %v3092_v39  ;;  %v3189_v15 = vand.u32 2147483648, %v3092_v39  ;;  %vm3183_vm5 = vweird.f32 %v3092_v39 }
 0x6d0   :  { %v3410_v35 = vmul.f32 %v3394_v33, %v3378_v38  ;;  %v3166_v3 = vmul.f32 %v3830_v46, %v3165_v60 }
 0x6d1   :  { %v3012_v55 = vpop.f32.mrf.mxu2  ;;  %v3190_v1 = vor.u32 1.1754944e-38, %v3189_v15  ;;  %vm3188_vm7 = vcmp.eq.f32.partialorder %v3187_v54, 8.507059e+37 }
 0x6d2   :  { %v3426_v40 = vmul.f32 %v3410_v35, %v3410_v35  ;;  %v3167_v5 = vadd.f32 %v3830_v46, %v3166_v3  ;;  %v3491_v24 = vmul.f32 -1.442695, %v3012_v55  ;;  %v3834_v56 = vpop.eup %3833 }
 0x6d3   :  { %v3093_v32 = vadd.f32 1.0, %v3834_v56 }
 0x6d4   :  { %v3441_v19 = vadd.f32 %v3440_v2, %v3426_v40  ;;  %v3171_v14 = vsel %vm3170_vm2, %v3830_v46, %v3167_v5  ;;  %3837 = vpow2.f32 %v3491_v24 }
 0x6d5   :  { %v3836_v44 = vpop.eup %3835  ;;  %v3176_v16 = vsel %vm3173_vm3, %v3175_v28, %v3171_v14  ;;  %3839 = vrcp.f32 %v3093_v32  ;;  %v3204_v25 = vand.u32 2147483648, %v3093_v32  ;;  %v3202_v49 = vand.u32 2147483647, %v3093_v32 }
 0x6d6   :  { %3347 = vst [vmem:[%s6973_s12 + $0x20] sm:$0xff] %v3176_v16  ;;  %v3395_v21 = vsub.f32 %v3176_v16, %v3363_v43  ;;  %v3179_v47 = vmul.f32 %v3836_v44, %v3092_v39  ;;  %vm3184_vm4 = vweird.f32 %v3836_v44  ;;  %vm3198_vm9 = vweird.f32 %v3093_v32 }
 0x6d7   :  { %vm3185_vm6 = vmor %vm3183_vm5, %vm3184_vm4  ;;  %v3205_v52 = vor.u32 1.1754944e-38, %v3204_v25  ;;  %vm3203_vm11 = vcmp.eq.f32.partialorder %v3202_v49, 8.507059e+37 }
 0x6d8   :  { %v3411_v7 = vmul.f32 %v3395_v21, %v3379_v31  ;;  %v3180_v62 = vsub.f32 1.0, %v3179_v47 }
 0x6d9   :  { %v3015_v20 = vpop.f32.mrf.mxu2 }
 0x6da   :  { %v3838_v42 = vpop.eup %3837  ;;  %v3427_v10 = vmul.f32 %v3411_v7, %v3411_v7  ;;  %v3181_v58 = vmul.f32 %v3836_v44, %v3180_v62  ;;  %v3492_v59 = vmul.f32 -1.442695, %v3015_v20 }
 0x6db   :  { %v3094_v63 = vadd.f32 1.0, %v3838_v42  ;;  %v3840_v22 = vpop.eup %3839 }
 0x6dc   :  { %v3182_v57 = vadd.f32 %v3836_v44, %v3181_v58  ;;  %3841 = vpow2.f32 %v3492_v59  ;;  %v6803_v34 = vadd.f32 %v3441_v19, %v3427_v10  ;;  %v3194_v37 = vmul.f32 %v3840_v22, %v3093_v32 }
 0x6dd   :  { %3843 = vrcp.f32 %v3094_v63  ;;  %vm3199_vm8 = vweird.f32 %v3840_v22  ;;  %v3219_v53 = vand.u32 2147483648, %v3094_v63  ;;  %v3217_v17 = vand.u32 2147483647, %v3094_v63 }
 0x6de   :  { %v3186_v27 = vsel %vm3185_vm6, %v3836_v44, %v3182_v57  ;;  %v3195_v48 = vsub.f32 1.0, %v3194_v37  ;;  %vm3200_vm10 = vmor %vm3198_vm9, %vm3199_vm8  ;;  %vm3213_vm13 = vweird.f32 %v3094_v63 }
 0x6df   :  { %v6805_v26 = vsel %vm3188_vm7, %v3190_v1, %v3186_v27  ;;  %v3220_v18 = vor.u32 1.1754944e-38, %v3219_v53  ;;  %vm3218_vm15 = vcmp.eq.f32.partialorder %v3217_v17, 8.507059e+37 }
 0x6e0   :  { %3348 = vst [vmem:[%s6973_s12 + $0x28] sm:$0xff] %v6805_v26  ;;  %v3196_v23 = vmul.f32 %v3840_v22, %v3195_v48 }
 0x6e1   :  { %v3018_v29 = vpop.f32.mrf.mxu2 }
 0x6e2   :  { %v3842_v41 = vpop.eup %3841  ;;  %v3493_v50 = vmul.f32 -1.442695, %v3018_v29  ;;  %v3197_v36 = vadd.f32 %v3840_v22, %v3196_v23 }
 0x6e3   :  { %v3844_v61 = vpop.eup %3843  ;;  %v3095_v0 = vadd.f32 1.0, %v3842_v41 }
 0x6e4   :  { %v3209_v8 = vmul.f32 %v3844_v61, %v3094_v63  ;;  %3845 = vpow2.f32 %v3493_v50  ;;  %v3201_v13 = vsel %vm3200_vm10, %v3840_v22, %v3197_v36  ;;  %vm3214_vm12 = vweird.f32 %v3844_v61 }
 0x6e5   :  { %3847 = vrcp.f32 %v3095_v0  ;;  %v6811_v12 = vsel %vm3203_vm11, %v3205_v52, %v3201_v13  ;;  %vm3215_vm14 = vmor %vm3213_vm13, %vm3214_vm12  ;;  %v3234_v51 = vand.u32 2147483648, %v3095_v0  ;;  %v3232_v3 = vand.u32 2147483647, %v3095_v0 }
 0x6e6   :  { %v3210_v9 = vsub.f32 1.0, %v3209_v8  ;;  %3349 = vst [vmem:[%s6973_s12 + $0x30] sm:$0xff] %v6811_v12  ;;  %vm3228_vm1 = vweird.f32 %v3095_v0 }
 0x6e7   :  { %v3235_v28 = vor.u32 1.1754944e-38, %v3234_v51  ;;  %vm3233_vm3 = vcmp.eq.f32.partialorder %v3232_v3, 8.507059e+37 }
 0x6e8   :  { %v3211_v46 = vmul.f32 %v3844_v61, %v3210_v9 }
 0x6e9   :  { %v3021_v30 = vpop.f32.mrf.mxu2 }
 0x6ea   :  { %v3846_v45 = vpop.eup %3845  ;;  %v3212_v2 = vadd.f32 %v3844_v61, %v3211_v46  ;;  %v3494_v11 = vmul.f32 -1.442695, %v3021_v30 }
 0x6eb   :  { %v3848_v6 = vpop.eup %3847  ;;  %v3096_v38 = vadd.f32 1.0, %v3846_v45 }
 0x6ec   :  { %v3216_v39 = vsel %vm3215_vm14, %v3844_v61, %v3212_v2  ;;  %v3224_v33 = vmul.f32 %v3848_v6, %v3095_v0  ;;  %3849 = vpow2.f32 %v3494_v11  ;;  %vm3229_vm0 = vweird.f32 %v3848_v6 }
 0x6ed   :  { %v6817_v60 = vsel %vm3218_vm15, %v3220_v18, %v3216_v39  ;;  %3851 = vrcp.f32 %v3096_v38  ;;  %vm3230_vm2 = vmor %vm3228_vm1, %vm3229_vm0  ;;  %v3249_v16 = vand.u32 2147483648, %v3096_v38  ;;  %v3247_v21 = vand.u32 2147483647, %v3096_v38 }
 0x6ee   :  { %3350 = vst [vmem:[%s6973_s12 + $0x38] sm:$0xff] %v6817_v60  ;;  %v3225_v4 = vsub.f32 1.0, %v3224_v33  ;;  %vm3243_vm5 = vweird.f32 %v3096_v38  ;;  %v3365_v33 = vld [vmem:[%s6972_s11 + $0x60] sm:$0xff] }
 0x6ef   :  { %v3250_v20 = vor.u32 1.1754944e-38, %v3249_v16  ;;  %vm3248_vm7 = vcmp.eq.f32.partialorder %v3247_v21, 8.507059e+37  ;;  %v3381_v16 = vld [vmem:[%s6972_s11 + $0x68] sm:$0xff]  ;;  %v3367_v21 = vld [vmem:[%s6972_s11 + $0x80] sm:$0xff] }
 0x6f0   :  { %v3226_v35 = vmul.f32 %v3848_v6, %v3225_v4 }
 0x6f1   :  { %v3024_v55 = vpop.f32.mrf.mxu2 }
 0x6f2   :  { %v3850_v40 = vpop.eup %3849  ;;  %v3227_v5 = vadd.f32 %v3848_v6, %v3226_v35  ;;  %v3495_v24 = vmul.f32 -1.442695, %v3024_v55 }
 0x6f3   :  { %v3852_v56 = vpop.eup %3851  ;;  %v3097_v43 = vadd.f32 1.0, %v3850_v40 }
 0x6f4   :  { %v3231_v19 = vsel %vm3230_vm2, %v3848_v6, %v3227_v5  ;;  %v3239_v14 = vmul.f32 %v3852_v56, %v3096_v38  ;;  %3853 = vpow2.f32 %v3495_v24  ;;  %vm3244_vm4 = vweird.f32 %v3852_v56  ;;  %v3364_v38 = vld [vmem:[%s6972_s11 + $0x50] sm:$0xff] }
 0x6f5   :  { %v6823_v32 = vsel %vm3233_vm3, %v3235_v28, %v3231_v19  ;;  %3855 = vrcp.f32 %v3097_v43  ;;  %vm3245_vm6 = vmor %vm3243_vm5, %vm3244_vm4  ;;  %v3264_v57 = vand.u32 2147483648, %v3097_v43  ;;  %v3262_v1 = vand.u32 2147483647, %v3097_v43 }
 0x6f6   :  { %3351 = vst [vmem:[%s6973_s12 + $0x40] sm:$0xff] %v6823_v32  ;;  %v3240_v44 = vsub.f32 1.0, %v3239_v14  ;;  %vm3258_vm9 = vweird.f32 %v3097_v43  ;;  %v3396_v55 = vsub.f32 %v6805_v26, %v3364_v38  ;;  %v3397_v28 = vsub.f32 %v6811_v12, %v3365_v33  ;;  %v3366_v14 = vld [vmem:[%s6972_s11 + $0x70] sm:$0xff] }
 0x6f7   :  { %v3265_v41 = vor.u32 1.1754944e-38, %v3264_v57  ;;  %vm3263_vm11 = vcmp.eq.f32.partialorder %v3262_v1, 8.507059e+37  ;;  %v3369_v57 = vld [vmem:[%s6972_s11 + $0xa0] sm:$0xff]  ;;  %v3383_v1 = vld [vmem:[%s6972_s11 + $0x88] sm:$0xff] }
 0x6f8   :  { %v3241_v31 = vmul.f32 %v3852_v56, %v3240_v44 }
 0x6f9   :  { %v3027_v47 = vpop.f32.mrf.mxu2 }
 0x6fa   :  { %v3854_v7 = vpop.eup %3853  ;;  %v3242_v62 = vadd.f32 %v3852_v56, %v3241_v31  ;;  %v3496_v54 = vmul.f32 -1.442695, %v3027_v47 }
 0x6fb   :  { %v3856_v15 = vpop.eup %3855  ;;  %v3098_v42 = vadd.f32 1.0, %v3854_v7  ;;  %v3398_v7 = vsub.f32 %v6817_v60, %v3366_v14 }
 0x6fc   :  { %v3246_v10 = vsel %vm3245_vm6, %v3852_v56, %v3242_v62  ;;  %v3254_v58 = vmul.f32 %v3856_v15, %v3097_v43  ;;  %3857 = vpow2.f32 %v3496_v54  ;;  %vm3259_vm8 = vweird.f32 %v3856_v15  ;;  %v3380_v56 = vld [vmem:[%s6972_s11 + $0x58] sm:$0xff] }
 0x6fd   :  { %v6829_v59 = vsel %vm3248_vm7, %v3250_v20, %v3246_v10  ;;  %3859 = vrcp.f32 %v3098_v42  ;;  %vm3260_vm10 = vmor %vm3258_vm9, %vm3259_vm8  ;;  %v3279_v0 = vand.u32 2147483648, %v3098_v42  ;;  %v3277_v8 = vand.u32 2147483647, %v3098_v42  ;;  %v3382_v10 = vld [vmem:[%s6972_s11 + $0x78] sm:$0xff] }
 0x6fe   :  { %3352 = vst [vmem:[%s6973_s12 + $0x48] sm:$0xff] %v6829_v59  ;;  %v3255_v63 = vsub.f32 1.0, %v3254_v58  ;;  %vm3273_vm13 = vweird.f32 %v3098_v42  ;;  %v3412_v31 = vmul.f32 %v3396_v55, %v3380_v56  ;;  %v3413_v54 = vmul.f32 %v3397_v28, %v3381_v16 }
 0x6ff   :  { %v3280_v30 = vor.u32 1.1754944e-38, %v3279_v0  ;;  %vm3278_vm15 = vcmp.eq.f32.partialorder %v3277_v8, 8.507059e+37  ;;  %v3399_v58 = vsub.f32 %v6823_v32, %v3367_v21  ;;  %v3385_v8 = vld [vmem:[%s6972_s11 + $0xa8] sm:$0xff] }
 0x700   :  { %v3256_v22 = vmul.f32 %v3856_v15, %v3255_v63 }
 0x701   :  { %v3030_v37 = vpop.f32.mrf.mxu2 }
 0x702   :  { %v3858_v27 = vpop.eup %3857  ;;  %v3257_v48 = vadd.f32 %v3856_v15, %v3256_v22  ;;  %v3497_v25 = vmul.f32 -1.442695, %v3030_v37  ;;  %v3428_v22 = vmul.f32 %v3412_v31, %v3412_v31  ;;  %v3389_v31 = vld [vmem:[%s6972_s11 + $0xe8] sm:$0xff] }
 0x703   :  { %v3860_v23 = vpop.eup %3859  ;;  %v3099_v49 = vadd.f32 1.0, %v3858_v27 }
 0x704   :  { %v3261_v29 = vsel %vm3260_vm10, %v3856_v15, %v3257_v48  ;;  %v3269_v50 = vmul.f32 %v3860_v23, %v3098_v42  ;;  %3861 = vpow2.f32 %v3497_v25  ;;  %vm3274_vm12 = vweird.f32 %v3860_v23  ;;  %v3368_v42 = vld [vmem:[%s6972_s11 + $0x90] sm:$0xff] }
 0x705   :  { %3863 = vrcp.f32 %v3099_v49  ;;  %v6835_v36 = vsel %vm3263_vm11, %v3265_v41, %v3261_v29  ;;  %vm3275_vm14 = vmor %vm3273_vm13, %vm3274_vm12  ;;  %v3294_v39 = vand.u32 2147483648, %v3099_v49  ;;  %v3292_v51 = vand.u32 2147483647, %v3099_v49  ;;  %v3370_v29 = vld [vmem:[%s6972_s11 + $0xb0] sm:$0xff]  ;;  %v3384_v41 = vld [vmem:[%s6972_s11 + $0x98] sm:$0xff] }
 0x706   :  { %v3270_v61 = vsub.f32 1.0, %v3269_v50  ;;  %3353 = vst [vmem:[%s6973_s12 + $0x50] sm:$0xff] %v6835_v36  ;;  %vm3288_vm1 = vweird.f32 %v3099_v49  ;;  %v3400_v32 = vsub.f32 %v6829_v59, %v3368_v42  ;;  %v3414_v25 = vmul.f32 %v3398_v7, %v3382_v10 }
 0x707   :  { %v3295_v43 = vor.u32 1.1754944e-38, %v3294_v39  ;;  %vm3293_vm3 = vcmp.eq.f32.partialorder %v3292_v51, 8.507059e+37  ;;  %v3429_v50 = vmul.f32 %v3413_v54, %v3413_v54  ;;  %v3401_v0 = vsub.f32 %v6835_v36, %v3369_v57  ;;  %v3373_v51 = vld [vmem:[%s6972_s11 + $0xe0] sm:$0xff] }
 0x708   :  { %v3271_v52 = vmul.f32 %v3860_v23, %v3270_v61  ;;  %v3415_v59 = vmul.f32 %v3399_v58, %v3383_v1 }
 0x709   :  { %v3033_v13 = vpop.f32.mrf.mxu2 }
 0x70a   :  { %v3862_v9 = vpop.eup %3861  ;;  %v3272_v53 = vadd.f32 %v3860_v23, %v3271_v52  ;;  %v3498_v46 = vmul.f32 -1.442695, %v3033_v13  ;;  %v3443_v13 = vadd.f32 %v6803_v34, %v3428_v22  ;;  %v3372_v34 = vld [vmem:[%s6972_s11 + $0xd0] sm:$0xff] }
 0x70b   :  { %v3864_v17 = vpop.eup %3863  ;;  %v6841_v45 = vadd.f32 1.0, %v3862_v9 }
 0x70c   :  { %v3284_v2 = vmul.f32 %v3864_v17, %v3099_v49  ;;  %3865 = vpow2.f32 %v3498_v46  ;;  %v3276_v11 = vsel %vm3275_vm14, %v3860_v23, %v3272_v53  ;;  %vm3289_vm0 = vweird.f32 %v3864_v17  ;;  %v3371_v53 = vld [vmem:[%s6972_s11 + $0xc0] sm:$0xff] }
 0x70d   :  { %3867 = vrcp.f32 %v6841_v45  ;;  %v6844_v6 = vsel %vm3278_vm15, %v3280_v30, %v3276_v11  ;;  %vm3290_vm2 = vmor %vm3288_vm1, %vm3289_vm0  ;;  %v3309_v62 = vand.u32 2147483648, %v6841_v45  ;;  %v3307_v20 = vand.u32 2147483647, %v6841_v45 }
 0x70e   :  { %v3285_v18 = vsub.f32 1.0, %v3284_v2  ;;  %3354 = vst [vmem:[%s6973_s12 + $0x58] sm:$0xff] %v6844_v6  ;;  %vm3303_vm5 = vweird.f32 %v6841_v45  ;;  %v3402_v36 = vsub.f32 %v6844_v6, %v3370_v29  ;;  %v3416_v46 = vmul.f32 %v3400_v32, %v3384_v41  ;;  %v3386_v2 = vld [vmem:[%s6972_s11 + $0xb8] sm:$0xff] }
 0x70f   :  { %v3310_v48 = vor.u32 1.1754944e-38, %v3309_v62  ;;  %vm3308_vm7 = vcmp.eq.f32.partialorder %v3307_v20, 8.507059e+37  ;;  %v3417_v11 = vmul.f32 %v3401_v0, %v3385_v8  ;;  %v3444_v38 = vadd.f32 %v3443_v13, %v3429_v50 }
 0x710   :  { %v3286_v4 = vmul.f32 %v3864_v17, %v3285_v18  ;;  %v3431_v18 = vmul.f32 %v3415_v59, %v3415_v59  ;;  %v3432_v55 = vmul.f32 %v3416_v46, %v3416_v46 }
 0x711   :  { %v3036_v35 = vpop.f32.mrf.mxu2 }
 0x712   :  { %v3866_v3 = vpop.eup %3865  ;;  %v3499_v40 = vmul.f32 -1.442695, %v3036_v35  ;;  %v3287_v5 = vadd.f32 %v3864_v17, %v3286_v4  ;;  %v3387_v35 = vld [vmem:[%s6972_s11 + $0xc8] sm:$0xff] }
 0x713   :  { %v3868_v24 = vpop.eup %3867  ;;  %v6861_v19 = vadd.f32 1.0, %v3866_v3  ;;  %v3418_v3 = vmul.f32 %v3402_v36, %v3386_v2 }
 0x714   :  { %v3299_v26 = vmul.f32 %v3868_v24, %v6841_v45  ;;  %3869 = vpow2.f32 %v3499_v40  ;;  %v3291_v44 = vsel %vm3290_vm2, %v3864_v17, %v3287_v5  ;;  %vm3304_vm4 = vweird.f32 %v3868_v24 }
 0x715   :  { %3871 = vrcp.f32 %v6861_v19  ;;  %v6871_v12 = vsel %vm3293_vm3, %v3295_v43, %v3291_v44  ;;  %vm3305_vm6 = vmor %vm3303_vm5, %vm3304_vm4  ;;  %v3324_v9 = vand.u32 2147483648, %v6861_v19  ;;  %v3430_v17 = vmul.f32 %v3414_v25, %v3414_v25  ;;  %v3388_v43 = vld [vmem:[%s6972_s11 + $0xd8] sm:$0xff] }
 0x716   :  { %v3300_v47 = vsub.f32 1.0, %v3299_v26  ;;  %3355 = vst [vmem:[%s6973_s12 + $0x60] sm:$0xff] %v6871_v12  ;;  %v3322_v45 = vand.u32 2147483647, %v6861_v19  ;;  %vm3318_vm9 = vweird.f32 %v6861_v19  ;;  %v3403_v6 = vsub.f32 %v6871_v12, %v3371_v53 }
 0x717   :  { %v3325_v4 = vor.u32 1.1754944e-38, %v3324_v9  ;;  %v3445_v40 = vadd.f32 %v3444_v38, %v3430_v17  ;;  %v3434_v21 = vmul.f32 %v3418_v3, %v3418_v3 }
 0x718   :  { %v3301_v15 = vmul.f32 %v3868_v24, %v3300_v47  ;;  %vm3323_vm11 = vcmp.eq.f32.partialorder %v3322_v45, 8.507059e+37  ;;  %v3419_v16 = vmul.f32 %v3403_v6, %v3387_v35 }
 0x719   :  { %v3446_v14 = vadd.f32 %v3445_v40, %v3431_v18 }
 0x71a   :  { %v3870_v63 = vpop.eup %3869  ;;  %v3302_v60 = vadd.f32 %v3868_v24, %v3301_v15  ;;  %v3435_v10 = vmul.f32 %v3419_v16, %v3419_v16 }
 0x71b   :  { %v3872_v37 = vpop.eup %3871  ;;  %v6897_v27 = vadd.f32 1.0, %v3870_v63  ;;  %v3447_v47 = vadd.f32 %v3446_v14, %v3432_v55  ;;  %v3374_v63 = vld [vmem:[%s6972_s11 + $0xf0] sm:$0xff] }
 0x71c   :  { %v3314_v23 = vmul.f32 %v3872_v37, %v6861_v19  ;;  %v3306_v49 = vsel %vm3305_vm6, %v3868_v24, %v3302_v60  ;;  %vm3319_vm8 = vweird.f32 %v3872_v37  ;;  %v3433_v19 = vmul.f32 %v3417_v11, %v3417_v11 }
 0x71d   :  { %3873 = vrcp.f32 %v6897_v27  ;;  %v3311_v61 = vsel %vm3308_vm7, %v3310_v48, %v3306_v49  ;;  %vm3320_vm10 = vmor %vm3318_vm9, %vm3319_vm8  ;;  %v3339_v12 = vand.u32 2147483648, %v6897_v27  ;;  %v3337_v62 = vand.u32 2147483647, %v6897_v27 }
 0x71e   :  { %v3315_v52 = vsub.f32 1.0, %v3314_v23  ;;  %3356 = vst [vmem:[%s6973_s12 + $0x68] sm:$0xff] %v3311_v61  ;;  %v3404_v56 = vsub.f32 %v3311_v61, %v3372_v34  ;;  %v3448_v15 = vadd.f32 %v3447_v47, %v3433_v19  ;;  %vm3333_vm13 = vweird.f32 %v6897_v27 }
 0x71f   :  { %v3340_v58 = vor.u32 1.1754944e-38, %v3339_v12  ;;  %vm3338_vm15 = vcmp.eq.f32.partialorder %v3337_v62, 8.507059e+37 }
 0x720   :  { %v3316_v30 = vmul.f32 %v3872_v37, %v3315_v52  ;;  %v3420_v54 = vmul.f32 %v3404_v56, %v3388_v43  ;;  %v3449_v57 = vadd.f32 %v3448_v15, %v3434_v21 }
 0x722   :  { %v3317_v39 = vadd.f32 %v3872_v37, %v3316_v30  ;;  %v3436_v60 = vmul.f32 %v3420_v54, %v3420_v54 }
 0x723   :  { %v3874_v33 = vpop.eup %3873 }
 0x724   :  { %v3329_v5 = vmul.f32 %v3874_v33, %v6897_v27  ;;  %v3321_v24 = vsel %vm3320_vm10, %v3872_v37, %v3317_v39  ;;  %vm3334_vm12 = vweird.f32 %v3874_v33  ;;  %v3390_v37 = vld [vmem:[%s6972_s11 + $0xf8] sm:$0xff]  ;;  %v3450_v27 = vadd.f32 %v3449_v57, %v3435_v10 }
 0x725   :  { %v3326_v28 = vsel %vm3323_vm11, %v3325_v4, %v3321_v24  ;;  %vm3335_vm14 = vmor %vm3333_vm13, %vm3334_vm12 }
 0x726   :  { %v3330_v26 = vsub.f32 1.0, %v3329_v5  ;;  %3357 = vst [vmem:[%s6973_s12 + $0x70] sm:$0xff] %v3326_v28  ;;  %v3405_v44 = vsub.f32 %v3326_v28, %v3373_v51  ;;  %v3451_v23 = vadd.f32 %v3450_v27, %v3436_v60 }
 0x728   :  { %v3331_v7 = vmul.f32 %v3874_v33, %v3330_v26  ;;  %v3421_v42 = vmul.f32 %v3405_v44, %v3389_v31 }
 0x72a   :  { %v3332_v20 = vadd.f32 %v3874_v33, %v3331_v7  ;;  %v3437_v32 = vmul.f32 %v3421_v42, %v3421_v42 }
 0x72c   :  { %v3336_v22 = vsel %vm3335_vm14, %v3874_v33, %v3332_v20  ;;  %v3452_v29 = vadd.f32 %v3451_v23, %v3437_v32 }
 0x72d   :  { %v3341_v1 = vsel %vm3338_vm15, %v3340_v58, %v3336_v22 }
 0x72e   :  { %v3406_v48 = vsub.f32 %v3341_v1, %v3374_v63  ;;  %3358 = vst [vmem:[%s6973_s12 + $0x78] sm:$0xff] %v3341_v1 }
 0x730   :  { %v3422_v25 = vmul.f32 %v3406_v48, %v3390_v37 }
 0x732   :  { %v3438_v49 = vmul.f32 %v3422_v25, %v3422_v25 }
 0x734   :  { %v3453_v41 = vadd.f32 %v3452_v29, %v3438_v49 }
 0x736   :  { %3454 = vadd.xlane.f32.xlu0 %v3453_v41 }
 0x7a9   :  { %v3455_v50 = vpop.xlane.xlu0 %3454 }
 0x7aa   :  { %v3456_v61 = vrot.slane %v3455_v50, 4 }
 0x7ac   :  { %v3457_v0 = vadd.f32 %v3456_v61, %v3455_v50 }
 0x7ae   :  { %v3458_v59 = vrot.slane %v3457_v0, 2 }
 0x7b0   :  { %v3459_v52 = vadd.f32 %v3458_v59, %v3457_v0 }
 0x7b2   :  { %v3460_v8 = vrot.slane %v3459_v52, 1 }
 0x7b4   :  { %v3461_v13 = vadd.f32 %v3460_v8, %v3459_v52 }
 0x7b6   :  { %3548 = vpush %v3461_v13 }
 0x7e7   :  { %s3549_s12 = spop %3548 }
 0x7e8   :  { %3464 = sst [smem:[#allocation2]] %s3549_s12 }
 0x7e9   :  { %3475 = dma.smem_to_hbm %s3894_s23, 16, %s3473_s22, [#allocation3]  }
 0x7ea   :  { %3889 = dma.done.wait [#allocation3], 16  }
 0x7eb   :  { %3890 = vsyncadd [#allocation3], 4294967280 }
 0x7ec   :  { %3482 = sfence }
 0x7ed   :  { %3483 = vsyncpa [#allocation3], 1 }

</bundles_post_ra>
